<compile_context>
chip_gen: v7x
topology: tpu7x:2x2x1
jax: 0.10.0
libtpu: 0.0.40
codegen_flags: <defaults>
</compile_context>

<pallas_src>
import math

import jax
import jax.numpy as jnp
from jax import lax
from jax.experimental import pallas as pl
from jax.experimental.pallas import tpu as pltpu

# ----- scaled-down ViT-B/16-style config (same structure, small dims) -------
IMG = 32            # image side        (224 in ViT-B/16)
PATCH = 16          # patch size        (16, same)
IN_CH = 3
HIDDEN = 64         # hidden dim        (768)
HEADS = 4           # attention heads   (12)
HEAD_DIM = HIDDEN // HEADS
MLP_DIM = 128       # MLP dim           (3072)
DEPTH = 2           # encoder layers    (12)
NUM_CLASSES = 5     # df['class_label'].nunique() stand-in
LN_EPS = 1e-6       # torchvision ViT LayerNorm eps
N_PATCH = (IMG // PATCH) ** 2
SEQ = N_PATCH + 1          # patches + class token
PATCH_DIM = IN_CH * PATCH * PATCH
NUM_OUT = NUM_CLASSES + 4  # fused class_head + bbox_head output width

TB = 8                     # images folded into one grid step (TB*SEQ % 8 == 0)
NTOK = TB * SEQ            # token rows per grid step (40)

# bf16 MXU operands, f32 accumulation + f32 elementwise (LN/softmax/GELU).
COMPUTE_DTYPE = jnp.bfloat16


# =========================== fused Pallas kernel =============================
def _mm(a, b):
    return jnp.dot(a.astype(COMPUTE_DTYPE), b.astype(COMPUTE_DTYPE),
                   preferred_element_type=jnp.float32)


def _mm_nt(a, b):
    """a @ b.T without materializing the transpose (MXU handles it)."""
    return lax.dot_general(a.astype(COMPUTE_DTYPE), b.astype(COMPUTE_DTYPE),
                           (((1,), (1,)), ((), ())),
                           preferred_element_type=jnp.float32)


def _layernorm(x, g, b):
    x = x.astype(jnp.float32)
    mu = jnp.mean(x, axis=-1, keepdims=True)
    var = jnp.mean(jnp.square(x - mu), axis=-1, keepdims=True)
    return (x - mu) * jax.lax.rsqrt(var + LN_EPS) * g + b


def _erf(x):
    # Abramowitz & Stegun 7.1.26: erf-style GELU parity with torch.nn.GELU()
    # using only guaranteed Mosaic lowerings; the divide goes to the EUP slot.
    a1, a2, a3, a4, a5 = (0.254829592, -0.284496736, 1.421413741,
                          -1.453152027, 1.061405429)
    p = 0.3275911
    ax = jnp.abs(x)
    t = pl.reciprocal(1.0 + p * ax, approx=True)
    poly = t * (a1 + t * (a2 + t * (a3 + t * (a4 + t * a5))))
    y = 1.0 - poly * jnp.exp(-ax * ax)
    return jnp.where(x >= 0.0, y, -y)


def _gelu(x):
    return 0.5 * x * (1.0 + _erf(x * (1.0 / math.sqrt(2.0))))


def _vit_kernel(patches_ref, conv_w_ref, base_ref,
                head_m_ref, attn_bias_ref, sel_ref,
                ln1_g_ref, ln1_b_ref, in_w_ref, in_b_ref,
                out_w_ref, out_b_ref, ln2_g_ref, ln2_b_ref,
                mlp_w1_ref, mlp_b1_ref, mlp_w2_ref, mlp_b2_ref,
                lnf_g_ref, lnf_b_ref, head_w_ref, head_b_ref,
                out_ref):
    """Full ViT forward for TB images; all activations stay in VMEM."""
    # Loop-invariant constants, loaded once per grid step.
    head_m = head_m_ref[...]          # [HEADS*NTOK, HIDDEN] 0/1 head-block mask
    attn_bias = attn_bias_ref[...]    # [HEADS*NTOK, NTOK]   0 / -1e9 image mask
    scale = 1.0 / math.sqrt(HEAD_DIM)

    # Patch embedding (conv_proj as one batched matmul).  Rows b*SEQ are zeros
    # (class-token slots); `base` carries cls_token + pos_emb (+ conv bias for
    # patch rows), so matmul + add yields the full [NTOK, HIDDEN] tokens.
    x = _mm(patches_ref[...], conv_w_ref[...]) + base_ref[...]

    for l in range(DEPTH):                       # static unroll, DEPTH=2
        # ----- multi-head self-attention: 2 MXU pushes for all heads --------
        h = _layernorm(x, ln1_g_ref[l:l + 1, :], ln1_b_ref[l:l + 1, :])
        qkv = _mm(h, in_w_ref[l]) + in_b_ref[l:l + 1, :]       # [NTOK, 3*HIDDEN]
        q = qkv[:, :HIDDEN]
        k = qkv[:, HIDDEN:2 * HIDDEN]
        v = qkv[:, 2 * HIDDEN:]

        # Block-diagonal Q over heads: row h*NTOK + r holds q[r] restricted to
        # head h's hidden slice -> one QK^T push gives all heads' scores.
        q_blk = jnp.concatenate([q] * HEADS, axis=0) * head_m  # [H*NTOK, HIDDEN]
        s = _mm_nt(q_blk, k) * scale + attn_bias               # [H*NTOK, NTOK]
        s = s - jnp.max(s, axis=-1, keepdims=True)
        e = jnp.exp(s)
        p = e * pl.reciprocal(jnp.sum(e, axis=-1, keepdims=True), approx=True)

        # One PV push for all heads; keep only each row-block's own head
        # columns, then fold the HEADS row blocks back onto the token rows
        # (lane-concat of head outputs), then a single out_proj matmul.
        o = _mm(p, v) * head_m                                  # [H*NTOK, HIDDEN]
        attn = o[0:NTOK]
        for hh in range(1, HEADS):
            attn = attn + o[hh * NTOK:(hh + 1) * NTOK]
        attn = _mm(attn, out_w_ref[l]) + out_b_ref[l:l + 1, :]
        x = x + attn                                            # fused residual

        # ----- MLP sub-block -------------------------------------------------
        h2 = _layernorm(x, ln2_g_ref[l:l + 1, :], ln2_b_ref[l:l + 1, :])
        h2 = _gelu(_mm(h2, mlp_w1_ref[l]) + mlp_b1_ref[l:l + 1, :])
        h2 = _mm(h2, mlp_w2_ref[l]) + mlp_b2_ref[l:l + 1, :]
        x = x + h2                                              # fused residual

    # ----- class-token gather (selector matmul), final LN, fused heads ------
    feat = jnp.dot(sel_ref[...], x, preferred_element_type=jnp.float32)  # [TB, HIDDEN]
    feat = _layernorm(feat, lnf_g_ref[...], lnf_b_ref[...])
    out = _mm(feat, head_w_ref[...]) + head_b_ref[...]          # [TB, NUM_OUT]
    out_ref[...] = out.astype(out_ref.dtype)


# ============================ JAX glue =======================================
def extract_patches(x):
    """NCHW -> [B, n_patches, C*p*p] matching conv_proj(kernel=stride=p)."""
    B, C, H, W = x.shape
    hp, wp = H // PATCH, W // PATCH
    x = x.reshape(B, C, hp, PATCH, wp, PATCH)
    x = x.transpose(0, 2, 4, 1, 3, 5)             # B, hp, wp, C, p, p
    return x.reshape(B, hp * wp, C * PATCH * PATCH)


def init_params(key):
    keys = iter(jax.random.split(key, 64))

    def nrm(shape, std=0.02):
        return std * jax.random.normal(next(keys), shape, jnp.float32)

    def zeros(shape):
        return jnp.zeros(shape, jnp.float32)

    def ones(shape):
        return jnp.ones(shape, jnp.float32)

    params = {
        # conv_proj weight [HIDDEN, C, p, p] stored flattened as [C*p*p, HIDDEN]
        "conv_w": nrm((PATCH_DIM, HIDDEN)),
        "conv_b": zeros((HIDDEN,)),
        "cls_token": zeros((1, 1, HIDDEN)),
        "pos_emb": nrm((1, SEQ, HIDDEN)),
        "ln_f_g": ones((HIDDEN,)),
        "ln_f_b": zeros((HIDDEN,)),
        "cls_w": nrm((HIDDEN, NUM_CLASSES)),
        "cls_b": zeros((NUM_CLASSES,)),
        "bbox_w": nrm((HIDDEN, 4)),
        "bbox_b": zeros((4,)),
        "layers": [],
    }
    for _ in range(DEPTH):
        params["layers"].append({
            "ln1_g": ones((HIDDEN,)), "ln1_b": zeros((HIDDEN,)),
            "in_proj_w": nrm((HIDDEN, 3 * HIDDEN)),
            "in_proj_b": zeros((3 * HIDDEN,)),
            "out_proj_w": nrm((HIDDEN, HIDDEN)),
            "out_proj_b": zeros((HIDDEN,)),
            "ln2_g": ones((HIDDEN,)), "ln2_b": zeros((HIDDEN,)),
            "mlp_w1": nrm((HIDDEN, MLP_DIM)), "mlp_b1": zeros((MLP_DIM,)),
            "mlp_w2": nrm((MLP_DIM, HIDDEN)), "mlp_b2": zeros((HIDDEN,)),
        })
    return params


def forward(params, x):
    """x: [B, 3, IMG, IMG] (NCHW) -> (class_out [B, NUM_CLASSES], bbox_out [B, 4])."""
    B = x.shape[0]
    B_pad = ((B + TB - 1) // TB) * TB
    if B_pad != B:
        x = jnp.pad(x, ((0, B_pad - B), (0, 0), (0, 0), (0, 0)))
    grid = (B_pad // TB,)

    # --- one-time layout plumbing in XLA (outside the fused kernel) ---------
    patches = extract_patches(x)                                  # [Bp, n, C*p*p]
    patches = jnp.pad(patches, ((0, 0), (1, 0), (0, 0)))          # row 0 = cls slot
    patches = patches.reshape(B_pad * SEQ, PATCH_DIM)             # token rows

    # base[0] = cls_token + pos[0]; base[s>0] = pos[s] + conv_b; tiled per image.
    base = params["pos_emb"][0] + jnp.concatenate(
        [params["cls_token"].reshape(1, HIDDEN),
         jnp.broadcast_to(params["conv_b"], (N_PATCH, HIDDEN))], axis=0)
    base = jnp.tile(base, (TB, 1))                                # [NTOK, HIDDEN]

    head_w = jnp.concatenate([params["cls_w"], params["bbox_w"]], axis=1)
    head_b = jnp.concatenate([params["cls_b"], params["bbox_b"]]).reshape(1, NUM_OUT)

    # --- loop-invariant masks, built once here (never inside the kernel loop)
    tok = jnp.arange(NTOK)
    # head-block mask: row block h of the block-diagonal layout keeps only
    # hidden columns belonging to head h.
    head_m = (jnp.arange(HEADS * NTOK)[:, None] // NTOK ==
              jnp.arange(HIDDEN)[None, :] // HEAD_DIM).astype(jnp.float32)
    # additive attention bias: queries attend only to their own image's tokens.
    img_blk = (tok[:, None] // SEQ) == (tok[None, :] // SEQ)
    attn_bias = jnp.tile(jnp.where(img_blk, 0.0, -1e9).astype(jnp.float32),
                         (HEADS, 1))
    # class-token row selector (row b*SEQ of each image).
    sel = (tok[None, :] == SEQ * jnp.arange(TB)[:, None]).astype(jnp.float32)

    def stack(name, dtype=None):
        s = jnp.stack([lp[name] for lp in params["layers"]])
        return s.astype(dtype) if dtype is not None else s

    def full(shape):
        return pl.BlockSpec(shape, lambda i, _n=len(shape): (0,) * _n)

    out = pl.pallas_call(
        _vit_kernel,
        grid=grid,
        out_shape=jax.ShapeDtypeStruct((B_pad, NUM_OUT), jnp.float32),
        in_specs=[
            pl.BlockSpec((NTOK, PATCH_DIM), lambda i: (i, 0)),        # patches
            full((PATCH_DIM, HIDDEN)),                                # conv_w
            full((NTOK, HIDDEN)),                                     # base
            full((HEADS * NTOK, HIDDEN)),                             # head_m
            full((HEADS * NTOK, NTOK)),                               # attn_bias
            full((TB, NTOK)),                                         # sel
            full((DEPTH, HIDDEN)), full((DEPTH, HIDDEN)),             # ln1 g/b
            full((DEPTH, HIDDEN, 3 * HIDDEN)), full((DEPTH, 3 * HIDDEN)),  # in_proj
            full((DEPTH, HIDDEN, HIDDEN)), full((DEPTH, HIDDEN)),     # out_proj
            full((DEPTH, HIDDEN)), full((DEPTH, HIDDEN)),             # ln2 g/b
            full((DEPTH, HIDDEN, MLP_DIM)), full((DEPTH, MLP_DIM)),   # mlp_w1/b1
            full((DEPTH, MLP_DIM, HIDDEN)), full((DEPTH, HIDDEN)),    # mlp_w2/b2
            full((1, HIDDEN)), full((1, HIDDEN)),                     # final LN g/b
            full((HIDDEN, NUM_OUT)), full((1, NUM_OUT)),              # fused heads
        ],
        out_specs=pl.BlockSpec((TB, NUM_OUT), lambda i: (i, 0)),
        compiler_params=pltpu.CompilerParams(
            dimension_semantics=("parallel",)),   # shard batch chunks across TCs
    )(patches, params["conv_w"].astype(COMPUTE_DTYPE), base,
      head_m, attn_bias, sel,
      stack("ln1_g"), stack("ln1_b"),
      stack("in_proj_w", COMPUTE_DTYPE), stack("in_proj_b"),
      stack("out_proj_w", COMPUTE_DTYPE), stack("out_proj_b"),
      stack("ln2_g"), stack("ln2_b"),
      stack("mlp_w1", COMPUTE_DTYPE), stack("mlp_b1"),
      stack("mlp_w2", COMPUTE_DTYPE), stack("mlp_b2"),
      params["ln_f_g"].reshape(1, HIDDEN), params["ln_f_b"].reshape(1, HIDDEN),
      head_w.astype(COMPUTE_DTYPE), head_b)

    out = out[:B]
    return out[:, :NUM_CLASSES], out[:, NUM_CLASSES:]


if __name__ == "__main__":
    key = jax.random.PRNGKey(0)
    k_param, k_x = jax.random.split(key)
    params = init_params(k_param)
    B = 16  # -> 2 grid steps of TB=8 images (keeps both v7x TensorCores busy)
    x = jax.random.normal(k_x, (B, IN_CH, IMG, IMG), jnp.float32)  # NCHW, like PyTorch

    class_out, bbox_out = jax.jit(forward)(params, x)
    jax.block_until_ready((class_out, bbox_out))

    assert class_out.shape == (B, NUM_CLASSES) and bbox_out.shape == (B, 4)
    print("KERNEL_OK")
</pallas_src>

<mosaic_0001>
module attributes {stable_mosaic.version = 11 : i64} {
  func.func @_vit_kernel(%arg0: i32, %arg1: memref<40x768xf32, #tpu.memory_space<vmem>>, %arg2: memref<768x64xbf16, #tpu.memory_space<vmem>>, %arg3: memref<40x64xf32, #tpu.memory_space<vmem>>, %arg4: memref<160x64xf32, #tpu.memory_space<vmem>>, %arg5: memref<160x40xf32, #tpu.memory_space<vmem>>, %arg6: memref<8x40xf32, #tpu.memory_space<vmem>>, %arg7: memref<2x64xf32, #tpu.memory_space<vmem>>, %arg8: memref<2x64xf32, #tpu.memory_space<vmem>>, %arg9: memref<2x64x192xbf16, #tpu.memory_space<vmem>>, %arg10: memref<2x192xf32, #tpu.memory_space<vmem>>, %arg11: memref<2x64x64xbf16, #tpu.memory_space<vmem>>, %arg12: memref<2x64xf32, #tpu.memory_space<vmem>>, %arg13: memref<2x64xf32, #tpu.memory_space<vmem>>, %arg14: memref<2x64xf32, #tpu.memory_space<vmem>>, %arg15: memref<2x64x128xbf16, #tpu.memory_space<vmem>>, %arg16: memref<2x128xf32, #tpu.memory_space<vmem>>, %arg17: memref<2x128x64xbf16, #tpu.memory_space<vmem>>, %arg18: memref<2x64xf32, #tpu.memory_space<vmem>>, %arg19: memref<1x64xf32, #tpu.memory_space<vmem>>, %arg20: memref<1x64xf32, #tpu.memory_space<vmem>>, %arg21: memref<64x9xbf16, #tpu.memory_space<vmem>>, %arg22: memref<1x9xf32, #tpu.memory_space<vmem>>, %arg23: memref<8x9xf32, #tpu.memory_space<vmem>>) attributes {dimension_semantics = [#tpu.dimension_semantics<parallel>], iteration_bounds = array<i64: 2>, scalar_prefetch = 0 : i64, scratch_operands = 0 : i64, tpu.core_type = #tpu.core_type<tc>, window_params = [{transform_indices = @transform_0, window_bounds = array<i64: 40, 768>}, {pipeline_mode = #tpu.pipeline_mode<synchronous>, transform_indices = @transform_1, window_bounds = array<i64: 768, 64>}, {pipeline_mode = #tpu.pipeline_mode<synchronous>, transform_indices = @transform_2, window_bounds = array<i64: 40, 64>}, {pipeline_mode = #tpu.pipeline_mode<synchronous>, transform_indices = @transform_3, window_bounds = array<i64: 160, 64>}, {pipeline_mode = #tpu.pipeline_mode<synchronous>, transform_indices = @transform_4, window_bounds = array<i64: 160, 40>}, {pipeline_mode = #tpu.pipeline_mode<synchronous>, transform_indices = @transform_5, window_bounds = array<i64: 8, 40>}, {pipeline_mode = #tpu.pipeline_mode<synchronous>, transform_indices = @transform_6, window_bounds = array<i64: 2, 64>}, {pipeline_mode = #tpu.pipeline_mode<synchronous>, transform_indices = @transform_7, window_bounds = array<i64: 2, 64>}, {pipeline_mode = #tpu.pipeline_mode<synchronous>, transform_indices = @transform_8, window_bounds = array<i64: 2, 64, 192>}, {pipeline_mode = #tpu.pipeline_mode<synchronous>, transform_indices = @transform_9, window_bounds = array<i64: 2, 192>}, {pipeline_mode = #tpu.pipeline_mode<synchronous>, transform_indices = @transform_10, window_bounds = array<i64: 2, 64, 64>}, {pipeline_mode = #tpu.pipeline_mode<synchronous>, transform_indices = @transform_11, window_bounds = array<i64: 2, 64>}, {pipeline_mode = #tpu.pipeline_mode<synchronous>, transform_indices = @transform_12, window_bounds = array<i64: 2, 64>}, {pipeline_mode = #tpu.pipeline_mode<synchronous>, transform_indices = @transform_13, window_bounds = array<i64: 2, 64>}, {pipeline_mode = #tpu.pipeline_mode<synchronous>, transform_indices = @transform_14, window_bounds = array<i64: 2, 64, 128>}, {pipeline_mode = #tpu.pipeline_mode<synchronous>, transform_indices = @transform_15, window_bounds = array<i64: 2, 128>}, {pipeline_mode = #tpu.pipeline_mode<synchronous>, transform_indices = @transform_16, window_bounds = array<i64: 2, 128, 64>}, {pipeline_mode = #tpu.pipeline_mode<synchronous>, transform_indices = @transform_17, window_bounds = array<i64: 2, 64>}, {pipeline_mode = #tpu.pipeline_mode<synchronous>, transform_indices = @transform_18, window_bounds = array<i64: 1, 64>}, {pipeline_mode = #tpu.pipeline_mode<synchronous>, transform_indices = @transform_19, window_bounds = array<i64: 1, 64>}, {pipeline_mode = #tpu.pipeline_mode<synchronous>, transform_indices = @transform_20, window_bounds = array<i64: 64, 9>}, {pipeline_mode = #tpu.pipeline_mode<synchronous>, transform_indices = @transform_21, window_bounds = array<i64: 1, 9>}, {transform_indices = @transform_22, window_bounds = array<i64: 8, 9>}]} {
    %c0 = arith.constant 0 : index
    %c0_0 = arith.constant 0 : index
    %0 = vector.load %arg4[%c0, %c0_0] : memref<160x64xf32, #tpu.memory_space<vmem>>, vector<160x64xf32>
    %c0_1 = arith.constant 0 : index
    %c0_2 = arith.constant 0 : index
    %1 = vector.load %arg5[%c0_1, %c0_2] : memref<160x40xf32, #tpu.memory_space<vmem>>, vector<160x40xf32>
    %c0_3 = arith.constant 0 : index
    %c0_4 = arith.constant 0 : index
    %2 = vector.load %arg1[%c0_3, %c0_4] : memref<40x768xf32, #tpu.memory_space<vmem>>, vector<40x768xf32>
    %c0_5 = arith.constant 0 : index
    %c0_6 = arith.constant 0 : index
    %3 = vector.load %arg2[%c0_5, %c0_6] : memref<768x64xbf16, #tpu.memory_space<vmem>>, vector<768x64xbf16>
    %4 = arith.truncf %2 : vector<40x768xf32> to vector<40x768xbf16>
    %cst = arith.constant dense<0.000000e+00> : vector<40x64xf32>
    %5 = tpu.matmul %4, %3, %cst {dimension_numbers = #tpu.dot_dimension_numbers<[1], [0], [0], [1], [0, 0, 1, 1], [], []>} : vector<40x768xbf16>, vector<768x64xbf16>, vector<40x64xf32> -> vector<40x64xf32>
    %c0_7 = arith.constant 0 : index
    %c0_8 = arith.constant 0 : index
    %6 = vector.load %arg3[%c0_7, %c0_8] : memref<40x64xf32, #tpu.memory_space<vmem>>, vector<40x64xf32>
    %7 = arith.addf %5, %6 : vector<40x64xf32>
    %c0_9 = arith.constant 0 : index
    %c0_10 = arith.constant 0 : index
    %8 = vector.load %arg7[%c0_9, %c0_10] : memref<2x64xf32, #tpu.memory_space<vmem>>, vector<1x64xf32>
    %c0_11 = arith.constant 0 : index
    %c0_12 = arith.constant 0 : index
    %9 = vector.load %arg8[%c0_11, %c0_12] : memref<2x64xf32, #tpu.memory_space<vmem>>, vector<1x64xf32>
    %cst_13 = arith.constant dense<0.000000e+00> : vector<40xf32>
    %10 = vector.multi_reduction <add>, %7, %cst_13 [1] : vector<40x64xf32> to vector<40xf32>
    %11 = vector.shape_cast %10 : vector<40xf32> to vector<40x1xf32>
    %cst_14 = arith.constant 6.400000e+01 : f32
    %12 = vector.broadcast %cst_14 : f32 to vector<40x1xf32>
    %13 = arith.divf %11, %12 : vector<40x1xf32>
    %14 = vector.broadcast %13 : vector<40x1xf32> to vector<40x64xf32>
    %15 = arith.subf %7, %14 : vector<40x64xf32>
    %16 = arith.mulf %15, %15 : vector<40x64xf32>
    %cst_15 = arith.constant dense<0.000000e+00> : vector<40xf32>
    %17 = vector.multi_reduction <add>, %16, %cst_15 [1] : vector<40x64xf32> to vector<40xf32>
    %18 = vector.shape_cast %17 : vector<40xf32> to vector<40x1xf32>
    %cst_16 = arith.constant 6.400000e+01 : f32
    %19 = vector.broadcast %cst_16 : f32 to vector<40x1xf32>
    %20 = arith.divf %18, %19 : vector<40x1xf32>
    %21 = vector.broadcast %13 : vector<40x1xf32> to vector<40x64xf32>
    %22 = arith.subf %7, %21 : vector<40x64xf32>
    %cst_17 = arith.constant 9.99999997E-7 : f32
    %23 = vector.broadcast %cst_17 : f32 to vector<40x1xf32>
    %24 = arith.addf %20, %23 : vector<40x1xf32>
    %25 = math.rsqrt %24 : vector<40x1xf32>
    %26 = vector.broadcast %25 : vector<40x1xf32> to vector<40x64xf32>
    %27 = arith.mulf %22, %26 : vector<40x64xf32>
    %28 = vector.broadcast %8 : vector<1x64xf32> to vector<40x64xf32>
    %29 = arith.mulf %27, %28 : vector<40x64xf32>
    %30 = vector.broadcast %9 : vector<1x64xf32> to vector<40x64xf32>
    %31 = arith.addf %29, %30 : vector<40x64xf32>
    %c0_18 = arith.constant 0 : index
    %c0_19 = arith.constant 0 : index
    %c0_20 = arith.constant 0 : index
    %32 = vector.load %arg9[%c0_18, %c0_19, %c0_20] : memref<2x64x192xbf16, #tpu.memory_space<vmem>>, vector<1x64x192xbf16>
    %33 = vector.shape_cast %32 : vector<1x64x192xbf16> to vector<64x192xbf16>
    %34 = arith.truncf %31 : vector<40x64xf32> to vector<40x64xbf16>
    %cst_21 = arith.constant dense<0.000000e+00> : vector<40x192xf32>
    %35 = tpu.matmul %34, %33, %cst_21 {dimension_numbers = #tpu.dot_dimension_numbers<[1], [0], [0], [1], [0, 0, 1, 1], [], []>} : vector<40x64xbf16>, vector<64x192xbf16>, vector<40x192xf32> -> vector<40x192xf32>
    %c0_22 = arith.constant 0 : index
    %c0_23 = arith.constant 0 : index
    %36 = vector.load %arg10[%c0_22, %c0_23] : memref<2x192xf32, #tpu.memory_space<vmem>>, vector<1x192xf32>
    %37 = vector.broadcast %36 : vector<1x192xf32> to vector<40x192xf32>
    %38 = arith.addf %35, %37 : vector<40x192xf32>
    %39 = vector.extract_strided_slice %38 {offsets = [0, 0], sizes = [40, 64], strides = [1, 1]} : vector<40x192xf32> to vector<40x64xf32>
    %40 = vector.extract_strided_slice %38 {offsets = [0, 64], sizes = [40, 64], strides = [1, 1]} : vector<40x192xf32> to vector<40x64xf32>
    %41 = vector.extract_strided_slice %38 {offsets = [0, 128], sizes = [40, 64], strides = [1, 1]} : vector<40x192xf32> to vector<40x64xf32>
    %42 = tpu.concatenate %39, %39, %39, %39 in 0 : vector<40x64xf32>, vector<40x64xf32>, vector<40x64xf32>, vector<40x64xf32> -> vector<160x64xf32>
    %43 = arith.mulf %42, %0 : vector<160x64xf32>
    %44 = arith.truncf %43 : vector<160x64xf32> to vector<160x64xbf16>
    %45 = arith.truncf %40 : vector<40x64xf32> to vector<40x64xbf16>
    %cst_24 = arith.constant dense<0.000000e+00> : vector<160x40xf32>
    %46 = tpu.matmul %44, %45, %cst_24 {dimension_numbers = #tpu.dot_dimension_numbers<[1], [1], [0], [0], [0, 0, 1, 0], [], []>} : vector<160x64xbf16>, vector<40x64xbf16>, vector<160x40xf32> -> vector<160x40xf32>
    %cst_25 = arith.constant 2.500000e-01 : f32
    %47 = vector.broadcast %cst_25 : f32 to vector<160x40xf32>
    %48 = arith.mulf %46, %47 : vector<160x40xf32>
    %49 = arith.addf %48, %1 : vector<160x40xf32>
    %cst_26 = arith.constant dense<0xFF800000> : vector<160xf32>
    %50 = vector.multi_reduction <maximumf>, %49, %cst_26 [1] : vector<160x40xf32> to vector<160xf32>
    %51 = vector.shape_cast %50 : vector<160xf32> to vector<160x1xf32>
    %52 = vector.broadcast %51 : vector<160x1xf32> to vector<160x40xf32>
    %53 = arith.subf %49, %52 : vector<160x40xf32>
    %54 = math.exp %53 : vector<160x40xf32>
    %cst_27 = arith.constant dense<0.000000e+00> : vector<160xf32>
    %55 = vector.multi_reduction <add>, %54, %cst_27 [1] : vector<160x40xf32> to vector<160xf32>
    %56 = vector.shape_cast %55 : vector<160xf32> to vector<160x1xf32>
    %57 = tpu.reciprocal %56 {approx = true} : vector<160x1xf32> -> vector<160x1xf32>
    %58 = vector.broadcast %57 : vector<160x1xf32> to vector<160x40xf32>
    %59 = arith.mulf %54, %58 : vector<160x40xf32>
    %60 = arith.truncf %59 : vector<160x40xf32> to vector<160x40xbf16>
    %61 = arith.truncf %41 : vector<40x64xf32> to vector<40x64xbf16>
    %cst_28 = arith.constant dense<0.000000e+00> : vector<160x64xf32>
    %62 = tpu.matmul %60, %61, %cst_28 {dimension_numbers = #tpu.dot_dimension_numbers<[1], [0], [0], [1], [0, 0, 1, 1], [], []>} : vector<160x40xbf16>, vector<40x64xbf16>, vector<160x64xf32> -> vector<160x64xf32>
    %63 = arith.mulf %62, %0 : vector<160x64xf32>
    %64 = vector.extract_strided_slice %63 {offsets = [0, 0], sizes = [40, 64], strides = [1, 1]} : vector<160x64xf32> to vector<40x64xf32>
    %65 = vector.extract_strided_slice %63 {offsets = [40, 0], sizes = [40, 64], strides = [1, 1]} : vector<160x64xf32> to vector<40x64xf32>
    %66 = arith.addf %64, %65 : vector<40x64xf32>
    %67 = vector.extract_strided_slice %63 {offsets = [80, 0], sizes = [40, 64], strides = [1, 1]} : vector<160x64xf32> to vector<40x64xf32>
    %68 = arith.addf %66, %67 : vector<40x64xf32>
    %69 = vector.extract_strided_slice %63 {offsets = [120, 0], sizes = [40, 64], strides = [1, 1]} : vector<160x64xf32> to vector<40x64xf32>
    %70 = arith.addf %68, %69 : vector<40x64xf32>
    %c0_29 = arith.constant 0 : index
    %c0_30 = arith.constant 0 : index
    %c0_31 = arith.constant 0 : index
    %71 = vector.load %arg11[%c0_29, %c0_30, %c0_31] : memref<2x64x64xbf16, #tpu.memory_space<vmem>>, vector<1x64x64xbf16>
    %72 = vector.shape_cast %71 : vector<1x64x64xbf16> to vector<64x64xbf16>
    %73 = arith.truncf %70 : vector<40x64xf32> to vector<40x64xbf16>
    %cst_32 = arith.constant dense<0.000000e+00> : vector<40x64xf32>
    %74 = tpu.matmul %73, %72, %cst_32 {dimension_numbers = #tpu.dot_dimension_numbers<[1], [0], [0], [1], [0, 0, 1, 1], [], []>} : vector<40x64xbf16>, vector<64x64xbf16>, vector<40x64xf32> -> vector<40x64xf32>
    %c0_33 = arith.constant 0 : index
    %c0_34 = arith.constant 0 : index
    %75 = vector.load %arg12[%c0_33, %c0_34] : memref<2x64xf32, #tpu.memory_space<vmem>>, vector<1x64xf32>
    %76 = vector.broadcast %75 : vector<1x64xf32> to vector<40x64xf32>
    %77 = arith.addf %74, %76 : vector<40x64xf32>
    %78 = arith.addf %7, %77 : vector<40x64xf32>
    %c0_35 = arith.constant 0 : index
    %c0_36 = arith.constant 0 : index
    %79 = vector.load %arg13[%c0_35, %c0_36] : memref<2x64xf32, #tpu.memory_space<vmem>>, vector<1x64xf32>
    %c0_37 = arith.constant 0 : index
    %c0_38 = arith.constant 0 : index
    %80 = vector.load %arg14[%c0_37, %c0_38] : memref<2x64xf32, #tpu.memory_space<vmem>>, vector<1x64xf32>
    %cst_39 = arith.constant dense<0.000000e+00> : vector<40xf32>
    %81 = vector.multi_reduction <add>, %78, %cst_39 [1] : vector<40x64xf32> to vector<40xf32>
    %82 = vector.shape_cast %81 : vector<40xf32> to vector<40x1xf32>
    %cst_40 = arith.constant 6.400000e+01 : f32
    %83 = vector.broadcast %cst_40 : f32 to vector<40x1xf32>
    %84 = arith.divf %82, %83 : vector<40x1xf32>
    %85 = vector.broadcast %84 : vector<40x1xf32> to vector<40x64xf32>
    %86 = arith.subf %78, %85 : vector<40x64xf32>
    %87 = arith.mulf %86, %86 : vector<40x64xf32>
    %cst_41 = arith.constant dense<0.000000e+00> : vector<40xf32>
    %88 = vector.multi_reduction <add>, %87, %cst_41 [1] : vector<40x64xf32> to vector<40xf32>
    %89 = vector.shape_cast %88 : vector<40xf32> to vector<40x1xf32>
    %cst_42 = arith.constant 6.400000e+01 : f32
    %90 = vector.broadcast %cst_42 : f32 to vector<40x1xf32>
    %91 = arith.divf %89, %90 : vector<40x1xf32>
    %92 = vector.broadcast %84 : vector<40x1xf32> to vector<40x64xf32>
    %93 = arith.subf %78, %92 : vector<40x64xf32>
    %cst_43 = arith.constant 9.99999997E-7 : f32
    %94 = vector.broadcast %cst_43 : f32 to vector<40x1xf32>
    %95 = arith.addf %91, %94 : vector<40x1xf32>
    %96 = math.rsqrt %95 : vector<40x1xf32>
    %97 = vector.broadcast %96 : vector<40x1xf32> to vector<40x64xf32>
    %98 = arith.mulf %93, %97 : vector<40x64xf32>
    %99 = vector.broadcast %79 : vector<1x64xf32> to vector<40x64xf32>
    %100 = arith.mulf %98, %99 : vector<40x64xf32>
    %101 = vector.broadcast %80 : vector<1x64xf32> to vector<40x64xf32>
    %102 = arith.addf %100, %101 : vector<40x64xf32>
    %c0_44 = arith.constant 0 : index
    %c0_45 = arith.constant 0 : index
    %c0_46 = arith.constant 0 : index
    %103 = vector.load %arg15[%c0_44, %c0_45, %c0_46] : memref<2x64x128xbf16, #tpu.memory_space<vmem>>, vector<1x64x128xbf16>
    %104 = vector.shape_cast %103 : vector<1x64x128xbf16> to vector<64x128xbf16>
    %105 = arith.truncf %102 : vector<40x64xf32> to vector<40x64xbf16>
    %cst_47 = arith.constant dense<0.000000e+00> : vector<40x128xf32>
    %106 = tpu.matmul %105, %104, %cst_47 {dimension_numbers = #tpu.dot_dimension_numbers<[1], [0], [0], [1], [0, 0, 1, 1], [], []>} : vector<40x64xbf16>, vector<64x128xbf16>, vector<40x128xf32> -> vector<40x128xf32>
    %c0_48 = arith.constant 0 : index
    %c0_49 = arith.constant 0 : index
    %107 = vector.load %arg16[%c0_48, %c0_49] : memref<2x128xf32, #tpu.memory_space<vmem>>, vector<1x128xf32>
    %108 = vector.broadcast %107 : vector<1x128xf32> to vector<40x128xf32>
    %109 = arith.addf %106, %108 : vector<40x128xf32>
    %cst_50 = arith.constant 5.000000e-01 : f32
    %110 = vector.broadcast %cst_50 : f32 to vector<40x128xf32>
    %111 = arith.mulf %110, %109 : vector<40x128xf32>
    %cst_51 = arith.constant 0.707106769 : f32
    %112 = vector.broadcast %cst_51 : f32 to vector<40x128xf32>
    %113 = arith.mulf %109, %112 : vector<40x128xf32>
    %114 = math.absf %113 : vector<40x128xf32>
    %cst_52 = arith.constant 0.327591091 : f32
    %115 = vector.broadcast %cst_52 : f32 to vector<40x128xf32>
    %116 = arith.mulf %115, %114 : vector<40x128xf32>
    %cst_53 = arith.constant 1.000000e+00 : f32
    %117 = vector.broadcast %cst_53 : f32 to vector<40x128xf32>
    %118 = arith.addf %117, %116 : vector<40x128xf32>
    %119 = tpu.reciprocal %118 {approx = true} : vector<40x128xf32> -> vector<40x128xf32>
    %cst_54 = arith.constant 1.06140542 : f32
    %120 = vector.broadcast %cst_54 : f32 to vector<40x128xf32>
    %121 = arith.mulf %119, %120 : vector<40x128xf32>
    %cst_55 = arith.constant -1.45315206 : f32
    %122 = vector.broadcast %cst_55 : f32 to vector<40x128xf32>
    %123 = arith.addf %122, %121 : vector<40x128xf32>
    %124 = arith.mulf %119, %123 : vector<40x128xf32>
    %cst_56 = arith.constant 1.42141378 : f32
    %125 = vector.broadcast %cst_56 : f32 to vector<40x128xf32>
    %126 = arith.addf %125, %124 : vector<40x128xf32>
    %127 = arith.mulf %119, %126 : vector<40x128xf32>
    %cst_57 = arith.constant -0.284496725 : f32
    %128 = vector.broadcast %cst_57 : f32 to vector<40x128xf32>
    %129 = arith.addf %128, %127 : vector<40x128xf32>
    %130 = arith.mulf %119, %129 : vector<40x128xf32>
    %cst_58 = arith.constant 0.254829586 : f32
    %131 = vector.broadcast %cst_58 : f32 to vector<40x128xf32>
    %132 = arith.addf %131, %130 : vector<40x128xf32>
    %133 = arith.mulf %119, %132 : vector<40x128xf32>
    %cst_59 = arith.constant 0.000000e+00 : f32
    %134 = vector.broadcast %cst_59 : f32 to vector<40x128xf32>
    %135 = arith.subf %134, %114 : vector<40x128xf32>
    %136 = arith.mulf %135, %114 : vector<40x128xf32>
    %137 = math.exp %136 : vector<40x128xf32>
    %138 = arith.mulf %133, %137 : vector<40x128xf32>
    %cst_60 = arith.constant 1.000000e+00 : f32
    %139 = vector.broadcast %cst_60 : f32 to vector<40x128xf32>
    %140 = arith.subf %139, %138 : vector<40x128xf32>
    %cst_61 = arith.constant 0.000000e+00 : f32
    %141 = vector.broadcast %cst_61 : f32 to vector<40x128xf32>
    %142 = arith.cmpf oge, %113, %141 : vector<40x128xf32>
    %cst_62 = arith.constant 0.000000e+00 : f32
    %143 = vector.broadcast %cst_62 : f32 to vector<40x128xf32>
    %144 = arith.subf %143, %140 : vector<40x128xf32>
    %145 = arith.select %142, %140, %144 : vector<40x128xi1>, vector<40x128xf32>
    %cst_63 = arith.constant 1.000000e+00 : f32
    %146 = vector.broadcast %cst_63 : f32 to vector<40x128xf32>
    %147 = arith.addf %146, %145 : vector<40x128xf32>
    %148 = arith.mulf %111, %147 : vector<40x128xf32>
    %c0_64 = arith.constant 0 : index
    %c0_65 = arith.constant 0 : index
    %c0_66 = arith.constant 0 : index
    %149 = vector.load %arg17[%c0_64, %c0_65, %c0_66] : memref<2x128x64xbf16, #tpu.memory_space<vmem>>, vector<1x128x64xbf16>
    %150 = vector.shape_cast %149 : vector<1x128x64xbf16> to vector<128x64xbf16>
    %151 = arith.truncf %148 : vector<40x128xf32> to vector<40x128xbf16>
    %cst_67 = arith.constant dense<0.000000e+00> : vector<40x64xf32>
    %152 = tpu.matmul %151, %150, %cst_67 {dimension_numbers = #tpu.dot_dimension_numbers<[1], [0], [0], [1], [0, 0, 1, 1], [], []>} : vector<40x128xbf16>, vector<128x64xbf16>, vector<40x64xf32> -> vector<40x64xf32>
    %c0_68 = arith.constant 0 : index
    %c0_69 = arith.constant 0 : index
    %153 = vector.load %arg18[%c0_68, %c0_69] : memref<2x64xf32, #tpu.memory_space<vmem>>, vector<1x64xf32>
    %154 = vector.broadcast %153 : vector<1x64xf32> to vector<40x64xf32>
    %155 = arith.addf %152, %154 : vector<40x64xf32>
    %156 = arith.addf %78, %155 : vector<40x64xf32>
    %c1 = arith.constant 1 : index
    %c0_70 = arith.constant 0 : index
    %157 = vector.load %arg7[%c1, %c0_70] : memref<2x64xf32, #tpu.memory_space<vmem>>, vector<1x64xf32>
    %c1_71 = arith.constant 1 : index
    %c0_72 = arith.constant 0 : index
    %158 = vector.load %arg8[%c1_71, %c0_72] : memref<2x64xf32, #tpu.memory_space<vmem>>, vector<1x64xf32>
    %cst_73 = arith.constant dense<0.000000e+00> : vector<40xf32>
    %159 = vector.multi_reduction <add>, %156, %cst_73 [1] : vector<40x64xf32> to vector<40xf32>
    %160 = vector.shape_cast %159 : vector<40xf32> to vector<40x1xf32>
    %cst_74 = arith.constant 6.400000e+01 : f32
    %161 = vector.broadcast %cst_74 : f32 to vector<40x1xf32>
    %162 = arith.divf %160, %161 : vector<40x1xf32>
    %163 = vector.broadcast %162 : vector<40x1xf32> to vector<40x64xf32>
    %164 = arith.subf %156, %163 : vector<40x64xf32>
    %165 = arith.mulf %164, %164 : vector<40x64xf32>
    %cst_75 = arith.constant dense<0.000000e+00> : vector<40xf32>
    %166 = vector.multi_reduction <add>, %165, %cst_75 [1] : vector<40x64xf32> to vector<40xf32>
    %167 = vector.shape_cast %166 : vector<40xf32> to vector<40x1xf32>
    %cst_76 = arith.constant 6.400000e+01 : f32
    %168 = vector.broadcast %cst_76 : f32 to vector<40x1xf32>
    %169 = arith.divf %167, %168 : vector<40x1xf32>
    %170 = vector.broadcast %162 : vector<40x1xf32> to vector<40x64xf32>
    %171 = arith.subf %156, %170 : vector<40x64xf32>
    %cst_77 = arith.constant 9.99999997E-7 : f32
    %172 = vector.broadcast %cst_77 : f32 to vector<40x1xf32>
    %173 = arith.addf %169, %172 : vector<40x1xf32>
    %174 = math.rsqrt %173 : vector<40x1xf32>
    %175 = vector.broadcast %174 : vector<40x1xf32> to vector<40x64xf32>
    %176 = arith.mulf %171, %175 : vector<40x64xf32>
    %177 = vector.broadcast %157 : vector<1x64xf32> to vector<40x64xf32>
    %178 = arith.mulf %176, %177 : vector<40x64xf32>
    %179 = vector.broadcast %158 : vector<1x64xf32> to vector<40x64xf32>
    %180 = arith.addf %178, %179 : vector<40x64xf32>
    %c1_78 = arith.constant 1 : index
    %c0_79 = arith.constant 0 : index
    %c0_80 = arith.constant 0 : index
    %181 = vector.load %arg9[%c1_78, %c0_79, %c0_80] : memref<2x64x192xbf16, #tpu.memory_space<vmem>>, vector<1x64x192xbf16>
    %182 = vector.shape_cast %181 : vector<1x64x192xbf16> to vector<64x192xbf16>
    %183 = arith.truncf %180 : vector<40x64xf32> to vector<40x64xbf16>
    %cst_81 = arith.constant dense<0.000000e+00> : vector<40x192xf32>
    %184 = tpu.matmul %183, %182, %cst_81 {dimension_numbers = #tpu.dot_dimension_numbers<[1], [0], [0], [1], [0, 0, 1, 1], [], []>} : vector<40x64xbf16>, vector<64x192xbf16>, vector<40x192xf32> -> vector<40x192xf32>
    %c1_82 = arith.constant 1 : index
    %c0_83 = arith.constant 0 : index
    %185 = vector.load %arg10[%c1_82, %c0_83] : memref<2x192xf32, #tpu.memory_space<vmem>>, vector<1x192xf32>
    %186 = vector.broadcast %185 : vector<1x192xf32> to vector<40x192xf32>
    %187 = arith.addf %184, %186 : vector<40x192xf32>
    %188 = vector.extract_strided_slice %187 {offsets = [0, 0], sizes = [40, 64], strides = [1, 1]} : vector<40x192xf32> to vector<40x64xf32>
    %189 = vector.extract_strided_slice %187 {offsets = [0, 64], sizes = [40, 64], strides = [1, 1]} : vector<40x192xf32> to vector<40x64xf32>
    %190 = vector.extract_strided_slice %187 {offsets = [0, 128], sizes = [40, 64], strides = [1, 1]} : vector<40x192xf32> to vector<40x64xf32>
    %191 = tpu.concatenate %188, %188, %188, %188 in 0 : vector<40x64xf32>, vector<40x64xf32>, vector<40x64xf32>, vector<40x64xf32> -> vector<160x64xf32>
    %192 = arith.mulf %191, %0 : vector<160x64xf32>
    %193 = arith.truncf %192 : vector<160x64xf32> to vector<160x64xbf16>
    %194 = arith.truncf %189 : vector<40x64xf32> to vector<40x64xbf16>
    %cst_84 = arith.constant dense<0.000000e+00> : vector<160x40xf32>
    %195 = tpu.matmul %193, %194, %cst_84 {dimension_numbers = #tpu.dot_dimension_numbers<[1], [1], [0], [0], [0, 0, 1, 0], [], []>} : vector<160x64xbf16>, vector<40x64xbf16>, vector<160x40xf32> -> vector<160x40xf32>
    %cst_85 = arith.constant 2.500000e-01 : f32
    %196 = vector.broadcast %cst_85 : f32 to vector<160x40xf32>
    %197 = arith.mulf %195, %196 : vector<160x40xf32>
    %198 = arith.addf %197, %1 : vector<160x40xf32>
    %cst_86 = arith.constant dense<0xFF800000> : vector<160xf32>
    %199 = vector.multi_reduction <maximumf>, %198, %cst_86 [1] : vector<160x40xf32> to vector<160xf32>
    %200 = vector.shape_cast %199 : vector<160xf32> to vector<160x1xf32>
    %201 = vector.broadcast %200 : vector<160x1xf32> to vector<160x40xf32>
    %202 = arith.subf %198, %201 : vector<160x40xf32>
    %203 = math.exp %202 : vector<160x40xf32>
    %cst_87 = arith.constant dense<0.000000e+00> : vector<160xf32>
    %204 = vector.multi_reduction <add>, %203, %cst_87 [1] : vector<160x40xf32> to vector<160xf32>
    %205 = vector.shape_cast %204 : vector<160xf32> to vector<160x1xf32>
    %206 = tpu.reciprocal %205 {approx = true} : vector<160x1xf32> -> vector<160x1xf32>
    %207 = vector.broadcast %206 : vector<160x1xf32> to vector<160x40xf32>
    %208 = arith.mulf %203, %207 : vector<160x40xf32>
    %209 = arith.truncf %208 : vector<160x40xf32> to vector<160x40xbf16>
    %210 = arith.truncf %190 : vector<40x64xf32> to vector<40x64xbf16>
    %cst_88 = arith.constant dense<0.000000e+00> : vector<160x64xf32>
    %211 = tpu.matmul %209, %210, %cst_88 {dimension_numbers = #tpu.dot_dimension_numbers<[1], [0], [0], [1], [0, 0, 1, 1], [], []>} : vector<160x40xbf16>, vector<40x64xbf16>, vector<160x64xf32> -> vector<160x64xf32>
    %212 = arith.mulf %211, %0 : vector<160x64xf32>
    %213 = vector.extract_strided_slice %212 {offsets = [0, 0], sizes = [40, 64], strides = [1, 1]} : vector<160x64xf32> to vector<40x64xf32>
    %214 = vector.extract_strided_slice %212 {offsets = [40, 0], sizes = [40, 64], strides = [1, 1]} : vector<160x64xf32> to vector<40x64xf32>
    %215 = arith.addf %213, %214 : vector<40x64xf32>
    %216 = vector.extract_strided_slice %212 {offsets = [80, 0], sizes = [40, 64], strides = [1, 1]} : vector<160x64xf32> to vector<40x64xf32>
    %217 = arith.addf %215, %216 : vector<40x64xf32>
    %218 = vector.extract_strided_slice %212 {offsets = [120, 0], sizes = [40, 64], strides = [1, 1]} : vector<160x64xf32> to vector<40x64xf32>
    %219 = arith.addf %217, %218 : vector<40x64xf32>
    %c1_89 = arith.constant 1 : index
    %c0_90 = arith.constant 0 : index
    %c0_91 = arith.constant 0 : index
    %220 = vector.load %arg11[%c1_89, %c0_90, %c0_91] : memref<2x64x64xbf16, #tpu.memory_space<vmem>>, vector<1x64x64xbf16>
    %221 = vector.shape_cast %220 : vector<1x64x64xbf16> to vector<64x64xbf16>
    %222 = arith.truncf %219 : vector<40x64xf32> to vector<40x64xbf16>
    %cst_92 = arith.constant dense<0.000000e+00> : vector<40x64xf32>
    %223 = tpu.matmul %222, %221, %cst_92 {dimension_numbers = #tpu.dot_dimension_numbers<[1], [0], [0], [1], [0, 0, 1, 1], [], []>} : vector<40x64xbf16>, vector<64x64xbf16>, vector<40x64xf32> -> vector<40x64xf32>
    %c1_93 = arith.constant 1 : index
    %c0_94 = arith.constant 0 : index
    %224 = vector.load %arg12[%c1_93, %c0_94] : memref<2x64xf32, #tpu.memory_space<vmem>>, vector<1x64xf32>
    %225 = vector.broadcast %224 : vector<1x64xf32> to vector<40x64xf32>
    %226 = arith.addf %223, %225 : vector<40x64xf32>
    %227 = arith.addf %156, %226 : vector<40x64xf32>
    %c1_95 = arith.constant 1 : index
    %c0_96 = arith.constant 0 : index
    %228 = vector.load %arg13[%c1_95, %c0_96] : memref<2x64xf32, #tpu.memory_space<vmem>>, vector<1x64xf32>
    %c1_97 = arith.constant 1 : index
    %c0_98 = arith.constant 0 : index
    %229 = vector.load %arg14[%c1_97, %c0_98] : memref<2x64xf32, #tpu.memory_space<vmem>>, vector<1x64xf32>
    %cst_99 = arith.constant dense<0.000000e+00> : vector<40xf32>
    %230 = vector.multi_reduction <add>, %227, %cst_99 [1] : vector<40x64xf32> to vector<40xf32>
    %231 = vector.shape_cast %230 : vector<40xf32> to vector<40x1xf32>
    %cst_100 = arith.constant 6.400000e+01 : f32
    %232 = vector.broadcast %cst_100 : f32 to vector<40x1xf32>
    %233 = arith.divf %231, %232 : vector<40x1xf32>
    %234 = vector.broadcast %233 : vector<40x1xf32> to vector<40x64xf32>
    %235 = arith.subf %227, %234 : vector<40x64xf32>
    %236 = arith.mulf %235, %235 : vector<40x64xf32>
    %cst_101 = arith.constant dense<0.000000e+00> : vector<40xf32>
    %237 = vector.multi_reduction <add>, %236, %cst_101 [1] : vector<40x64xf32> to vector<40xf32>
    %238 = vector.shape_cast %237 : vector<40xf32> to vector<40x1xf32>
    %cst_102 = arith.constant 6.400000e+01 : f32
    %239 = vector.broadcast %cst_102 : f32 to vector<40x1xf32>
    %240 = arith.divf %238, %239 : vector<40x1xf32>
    %241 = vector.broadcast %233 : vector<40x1xf32> to vector<40x64xf32>
    %242 = arith.subf %227, %241 : vector<40x64xf32>
    %cst_103 = arith.constant 9.99999997E-7 : f32
    %243 = vector.broadcast %cst_103 : f32 to vector<40x1xf32>
    %244 = arith.addf %240, %243 : vector<40x1xf32>
    %245 = math.rsqrt %244 : vector<40x1xf32>
    %246 = vector.broadcast %245 : vector<40x1xf32> to vector<40x64xf32>
    %247 = arith.mulf %242, %246 : vector<40x64xf32>
    %248 = vector.broadcast %228 : vector<1x64xf32> to vector<40x64xf32>
    %249 = arith.mulf %247, %248 : vector<40x64xf32>
    %250 = vector.broadcast %229 : vector<1x64xf32> to vector<40x64xf32>
    %251 = arith.addf %249, %250 : vector<40x64xf32>
    %c1_104 = arith.constant 1 : index
    %c0_105 = arith.constant 0 : index
    %c0_106 = arith.constant 0 : index
    %252 = vector.load %arg15[%c1_104, %c0_105, %c0_106] : memref<2x64x128xbf16, #tpu.memory_space<vmem>>, vector<1x64x128xbf16>
    %253 = vector.shape_cast %252 : vector<1x64x128xbf16> to vector<64x128xbf16>
    %254 = arith.truncf %251 : vector<40x64xf32> to vector<40x64xbf16>
    %cst_107 = arith.constant dense<0.000000e+00> : vector<40x128xf32>
    %255 = tpu.matmul %254, %253, %cst_107 {dimension_numbers = #tpu.dot_dimension_numbers<[1], [0], [0], [1], [0, 0, 1, 1], [], []>} : vector<40x64xbf16>, vector<64x128xbf16>, vector<40x128xf32> -> vector<40x128xf32>
    %c1_108 = arith.constant 1 : index
    %c0_109 = arith.constant 0 : index
    %256 = vector.load %arg16[%c1_108, %c0_109] : memref<2x128xf32, #tpu.memory_space<vmem>>, vector<1x128xf32>
    %257 = vector.broadcast %256 : vector<1x128xf32> to vector<40x128xf32>
    %258 = arith.addf %255, %257 : vector<40x128xf32>
    %cst_110 = arith.constant 5.000000e-01 : f32
    %259 = vector.broadcast %cst_110 : f32 to vector<40x128xf32>
    %260 = arith.mulf %259, %258 : vector<40x128xf32>
    %cst_111 = arith.constant 0.707106769 : f32
    %261 = vector.broadcast %cst_111 : f32 to vector<40x128xf32>
    %262 = arith.mulf %258, %261 : vector<40x128xf32>
    %263 = math.absf %262 : vector<40x128xf32>
    %cst_112 = arith.constant 0.327591091 : f32
    %264 = vector.broadcast %cst_112 : f32 to vector<40x128xf32>
    %265 = arith.mulf %264, %263 : vector<40x128xf32>
    %cst_113 = arith.constant 1.000000e+00 : f32
    %266 = vector.broadcast %cst_113 : f32 to vector<40x128xf32>
    %267 = arith.addf %266, %265 : vector<40x128xf32>
    %268 = tpu.reciprocal %267 {approx = true} : vector<40x128xf32> -> vector<40x128xf32>
    %cst_114 = arith.constant 1.06140542 : f32
    %269 = vector.broadcast %cst_114 : f32 to vector<40x128xf32>
    %270 = arith.mulf %268, %269 : vector<40x128xf32>
    %cst_115 = arith.constant -1.45315206 : f32
    %271 = vector.broadcast %cst_115 : f32 to vector<40x128xf32>
    %272 = arith.addf %271, %270 : vector<40x128xf32>
    %273 = arith.mulf %268, %272 : vector<40x128xf32>
    %cst_116 = arith.constant 1.42141378 : f32
    %274 = vector.broadcast %cst_116 : f32 to vector<40x128xf32>
    %275 = arith.addf %274, %273 : vector<40x128xf32>
    %276 = arith.mulf %268, %275 : vector<40x128xf32>
    %cst_117 = arith.constant -0.284496725 : f32
    %277 = vector.broadcast %cst_117 : f32 to vector<40x128xf32>
    %278 = arith.addf %277, %276 : vector<40x128xf32>
    %279 = arith.mulf %268, %278 : vector<40x128xf32>
    %cst_118 = arith.constant 0.254829586 : f32
    %280 = vector.broadcast %cst_118 : f32 to vector<40x128xf32>
    %281 = arith.addf %280, %279 : vector<40x128xf32>
    %282 = arith.mulf %268, %281 : vector<40x128xf32>
    %cst_119 = arith.constant 0.000000e+00 : f32
    %283 = vector.broadcast %cst_119 : f32 to vector<40x128xf32>
    %284 = arith.subf %283, %263 : vector<40x128xf32>
    %285 = arith.mulf %284, %263 : vector<40x128xf32>
    %286 = math.exp %285 : vector<40x128xf32>
    %287 = arith.mulf %282, %286 : vector<40x128xf32>
    %cst_120 = arith.constant 1.000000e+00 : f32
    %288 = vector.broadcast %cst_120 : f32 to vector<40x128xf32>
    %289 = arith.subf %288, %287 : vector<40x128xf32>
    %cst_121 = arith.constant 0.000000e+00 : f32
    %290 = vector.broadcast %cst_121 : f32 to vector<40x128xf32>
    %291 = arith.cmpf oge, %262, %290 : vector<40x128xf32>
    %cst_122 = arith.constant 0.000000e+00 : f32
    %292 = vector.broadcast %cst_122 : f32 to vector<40x128xf32>
    %293 = arith.subf %292, %289 : vector<40x128xf32>
    %294 = arith.select %291, %289, %293 : vector<40x128xi1>, vector<40x128xf32>
    %cst_123 = arith.constant 1.000000e+00 : f32
    %295 = vector.broadcast %cst_123 : f32 to vector<40x128xf32>
    %296 = arith.addf %295, %294 : vector<40x128xf32>
    %297 = arith.mulf %260, %296 : vector<40x128xf32>
    %c1_124 = arith.constant 1 : index
    %c0_125 = arith.constant 0 : index
    %c0_126 = arith.constant 0 : index
    %298 = vector.load %arg17[%c1_124, %c0_125, %c0_126] : memref<2x128x64xbf16, #tpu.memory_space<vmem>>, vector<1x128x64xbf16>
    %299 = vector.shape_cast %298 : vector<1x128x64xbf16> to vector<128x64xbf16>
    %300 = arith.truncf %297 : vector<40x128xf32> to vector<40x128xbf16>
    %cst_127 = arith.constant dense<0.000000e+00> : vector<40x64xf32>
    %301 = tpu.matmul %300, %299, %cst_127 {dimension_numbers = #tpu.dot_dimension_numbers<[1], [0], [0], [1], [0, 0, 1, 1], [], []>} : vector<40x128xbf16>, vector<128x64xbf16>, vector<40x64xf32> -> vector<40x64xf32>
    %c1_128 = arith.constant 1 : index
    %c0_129 = arith.constant 0 : index
    %302 = vector.load %arg18[%c1_128, %c0_129] : memref<2x64xf32, #tpu.memory_space<vmem>>, vector<1x64xf32>
    %303 = vector.broadcast %302 : vector<1x64xf32> to vector<40x64xf32>
    %304 = arith.addf %301, %303 : vector<40x64xf32>
    %305 = arith.addf %227, %304 : vector<40x64xf32>
    %c0_130 = arith.constant 0 : index
    %c0_131 = arith.constant 0 : index
    %306 = vector.load %arg6[%c0_130, %c0_131] : memref<8x40xf32, #tpu.memory_space<vmem>>, vector<8x40xf32>
    %cst_132 = arith.constant dense<0.000000e+00> : vector<8x64xf32>
    %307 = tpu.matmul %306, %305, %cst_132 {dimension_numbers = #tpu.dot_dimension_numbers<[1], [0], [0], [1], [0, 0, 1, 1], [], []>} : vector<8x40xf32>, vector<40x64xf32>, vector<8x64xf32> -> vector<8x64xf32>
    %c0_133 = arith.constant 0 : index
    %c0_134 = arith.constant 0 : index
    %308 = vector.load %arg19[%c0_133, %c0_134] : memref<1x64xf32, #tpu.memory_space<vmem>>, vector<1x64xf32>
    %c0_135 = arith.constant 0 : index
    %c0_136 = arith.constant 0 : index
    %309 = vector.load %arg20[%c0_135, %c0_136] : memref<1x64xf32, #tpu.memory_space<vmem>>, vector<1x64xf32>
    %cst_137 = arith.constant dense<0.000000e+00> : vector<8xf32>
    %310 = vector.multi_reduction <add>, %307, %cst_137 [1] : vector<8x64xf32> to vector<8xf32>
    %311 = vector.shape_cast %310 : vector<8xf32> to vector<8x1xf32>
    %cst_138 = arith.constant 6.400000e+01 : f32
    %312 = vector.broadcast %cst_138 : f32 to vector<8x1xf32>
    %313 = arith.divf %311, %312 : vector<8x1xf32>
    %314 = vector.broadcast %313 : vector<8x1xf32> to vector<8x64xf32>
    %315 = arith.subf %307, %314 : vector<8x64xf32>
    %316 = arith.mulf %315, %315 : vector<8x64xf32>
    %cst_139 = arith.constant dense<0.000000e+00> : vector<8xf32>
    %317 = vector.multi_reduction <add>, %316, %cst_139 [1] : vector<8x64xf32> to vector<8xf32>
    %318 = vector.shape_cast %317 : vector<8xf32> to vector<8x1xf32>
    %cst_140 = arith.constant 6.400000e+01 : f32
    %319 = vector.broadcast %cst_140 : f32 to vector<8x1xf32>
    %320 = arith.divf %318, %319 : vector<8x1xf32>
    %321 = vector.broadcast %313 : vector<8x1xf32> to vector<8x64xf32>
    %322 = arith.subf %307, %321 : vector<8x64xf32>
    %cst_141 = arith.constant 9.99999997E-7 : f32
    %323 = vector.broadcast %cst_141 : f32 to vector<8x1xf32>
    %324 = arith.addf %320, %323 : vector<8x1xf32>
    %325 = math.rsqrt %324 : vector<8x1xf32>
    %326 = vector.broadcast %325 : vector<8x1xf32> to vector<8x64xf32>
    %327 = arith.mulf %322, %326 : vector<8x64xf32>
    %328 = vector.broadcast %308 : vector<1x64xf32> to vector<8x64xf32>
    %329 = arith.mulf %327, %328 : vector<8x64xf32>
    %330 = vector.broadcast %309 : vector<1x64xf32> to vector<8x64xf32>
    %331 = arith.addf %329, %330 : vector<8x64xf32>
    %c0_142 = arith.constant 0 : index
    %c0_143 = arith.constant 0 : index
    %332 = vector.load %arg21[%c0_142, %c0_143] : memref<64x9xbf16, #tpu.memory_space<vmem>>, vector<64x9xbf16>
    %333 = arith.truncf %331 : vector<8x64xf32> to vector<8x64xbf16>
    %cst_144 = arith.constant dense<0.000000e+00> : vector<8x9xf32>
    %334 = tpu.matmul %333, %332, %cst_144 {dimension_numbers = #tpu.dot_dimension_numbers<[1], [0], [0], [1], [0, 0, 1, 1], [], []>} : vector<8x64xbf16>, vector<64x9xbf16>, vector<8x9xf32> -> vector<8x9xf32>
    %c0_145 = arith.constant 0 : index
    %c0_146 = arith.constant 0 : index
    %335 = vector.load %arg22[%c0_145, %c0_146] : memref<1x9xf32, #tpu.memory_space<vmem>>, vector<1x9xf32>
    %336 = vector.broadcast %335 : vector<1x9xf32> to vector<8x9xf32>
    %337 = arith.addf %334, %336 : vector<8x9xf32>
    %c0_147 = arith.constant 0 : index
    %c0_148 = arith.constant 0 : index
    %338 = vector.load %arg23[%c0_147, %c0_148] : memref<8x9xf32, #tpu.memory_space<vmem>>, vector<8x9xf32>
    tpu.vector_store %arg23[%c0_147, %c0_148], %337 {strides = array<i32>} : memref<8x9xf32, #tpu.memory_space<vmem>>, vector<8x9xf32>,
    return
  }
  func.func @transform_0(%arg0: i32) -> (i32, i32) {
    %c0_i32 = arith.constant 0 : i32
    %c0_i32_0 = arith.constant 0 : i32
    return %arg0, %c0_i32 : i32, i32
  }
  func.func @transform_1(%arg0: i32) -> (i32, i32) {
    %c0_i32 = arith.constant 0 : i32
    %c0_i32_0 = arith.constant 0 : i32
    %c0_i32_1 = arith.constant 0 : i32
    return %c0_i32, %c0_i32_0 : i32, i32
  }
  func.func @transform_2(%arg0: i32) -> (i32, i32) {
    %c0_i32 = arith.constant 0 : i32
    %c0_i32_0 = arith.constant 0 : i32
    %c0_i32_1 = arith.constant 0 : i32
    return %c0_i32, %c0_i32_0 : i32, i32
  }
  func.func @transform_3(%arg0: i32) -> (i32, i32) {
    %c0_i32 = arith.constant 0 : i32
    %c0_i32_0 = arith.constant 0 : i32
    %c0_i32_1 = arith.constant 0 : i32
    return %c0_i32, %c0_i32_0 : i32, i32
  }
  func.func @transform_4(%arg0: i32) -> (i32, i32) {
    %c0_i32 = arith.constant 0 : i32
    %c0_i32_0 = arith.constant 0 : i32
    %c0_i32_1 = arith.constant 0 : i32
    return %c0_i32, %c0_i32_0 : i32, i32
  }
  func.func @transform_5(%arg0: i32) -> (i32, i32) {
    %c0_i32 = arith.constant 0 : i32
    %c0_i32_0 = arith.constant 0 : i32
    %c0_i32_1 = arith.constant 0 : i32
    return %c0_i32, %c0_i32_0 : i32, i32
  }
  func.func @transform_6(%arg0: i32) -> (i32, i32) {
    %c0_i32 = arith.constant 0 : i32
    %c0_i32_0 = arith.constant 0 : i32
    %c0_i32_1 = arith.constant 0 : i32
    return %c0_i32, %c0_i32_0 : i32, i32
  }
  func.func @transform_7(%arg0: i32) -> (i32, i32) {
    %c0_i32 = arith.constant 0 : i32
    %c0_i32_0 = arith.constant 0 : i32
    %c0_i32_1 = arith.constant 0 : i32
    return %c0_i32, %c0_i32_0 : i32, i32
  }
  func.func @transform_8(%arg0: i32) -> (i32, i32, i32) {
    %c0_i32 = arith.constant 0 : i32
    %c0_i32_0 = arith.constant 0 : i32
    %c0_i32_1 = arith.constant 0 : i32
    %c0_i32_2 = arith.constant 0 : i32
    return %c0_i32, %c0_i32_0, %c0_i32_1 : i32, i32, i32
  }
  func.func @transform_9(%arg0: i32) -> (i32, i32) {
    %c0_i32 = arith.constant 0 : i32
    %c0_i32_0 = arith.constant 0 : i32
    %c0_i32_1 = arith.constant 0 : i32
    return %c0_i32, %c0_i32_0 : i32, i32
  }
  func.func @transform_10(%arg0: i32) -> (i32, i32, i32) {
    %c0_i32 = arith.constant 0 : i32
    %c0_i32_0 = arith.constant 0 : i32
    %c0_i32_1 = arith.constant 0 : i32
    %c0_i32_2 = arith.constant 0 : i32
    return %c0_i32, %c0_i32_0, %c0_i32_1 : i32, i32, i32
  }
  func.func @transform_11(%arg0: i32) -> (i32, i32) {
    %c0_i32 = arith.constant 0 : i32
    %c0_i32_0 = arith.constant 0 : i32
    %c0_i32_1 = arith.constant 0 : i32
    return %c0_i32, %c0_i32_0 : i32, i32
  }
  func.func @transform_12(%arg0: i32) -> (i32, i32) {
    %c0_i32 = arith.constant 0 : i32
    %c0_i32_0 = arith.constant 0 : i32
    %c0_i32_1 = arith.constant 0 : i32
    return %c0_i32, %c0_i32_0 : i32, i32
  }
  func.func @transform_13(%arg0: i32) -> (i32, i32) {
    %c0_i32 = arith.constant 0 : i32
    %c0_i32_0 = arith.constant 0 : i32
    %c0_i32_1 = arith.constant 0 : i32
    return %c0_i32, %c0_i32_0 : i32, i32
  }
  func.func @transform_14(%arg0: i32) -> (i32, i32, i32) {
    %c0_i32 = arith.constant 0 : i32
    %c0_i32_0 = arith.constant 0 : i32
    %c0_i32_1 = arith.constant 0 : i32
    %c0_i32_2 = arith.constant 0 : i32
    return %c0_i32, %c0_i32_0, %c0_i32_1 : i32, i32, i32
  }
  func.func @transform_15(%arg0: i32) -> (i32, i32) {
    %c0_i32 = arith.constant 0 : i32
    %c0_i32_0 = arith.constant 0 : i32
    %c0_i32_1 = arith.constant 0 : i32
    return %c0_i32, %c0_i32_0 : i32, i32
  }
  func.func @transform_16(%arg0: i32) -> (i32, i32, i32) {
    %c0_i32 = arith.constant 0 : i32
    %c0_i32_0 = arith.constant 0 : i32
    %c0_i32_1 = arith.constant 0 : i32
    %c0_i32_2 = arith.constant 0 : i32
    return %c0_i32, %c0_i32_0, %c0_i32_1 : i32, i32, i32
  }
  func.func @transform_17(%arg0: i32) -> (i32, i32) {
    %c0_i32 = arith.constant 0 : i32
    %c0_i32_0 = arith.constant 0 : i32
    %c0_i32_1 = arith.constant 0 : i32
    return %c0_i32, %c0_i32_0 : i32, i32
  }
  func.func @transform_18(%arg0: i32) -> (i32, i32) {
    %c0_i32 = arith.constant 0 : i32
    %c0_i32_0 = arith.constant 0 : i32
    %c0_i32_1 = arith.constant 0 : i32
    return %c0_i32, %c0_i32_0 : i32, i32
  }
  func.func @transform_19(%arg0: i32) -> (i32, i32) {
    %c0_i32 = arith.constant 0 : i32
    %c0_i32_0 = arith.constant 0 : i32
    %c0_i32_1 = arith.constant 0 : i32
    return %c0_i32, %c0_i32_0 : i32, i32
  }
  func.func @transform_20(%arg0: i32) -> (i32, i32) {
    %c0_i32 = arith.constant 0 : i32
    %c0_i32_0 = arith.constant 0 : i32
    %c0_i32_1 = arith.constant 0 : i32
    return %c0_i32, %c0_i32_0 : i32, i32
  }
  func.func @transform_21(%arg0: i32) -> (i32, i32) {
    %c0_i32 = arith.constant 0 : i32
    %c0_i32_0 = arith.constant 0 : i32
    %c0_i32_1 = arith.constant 0 : i32
    return %c0_i32, %c0_i32_0 : i32, i32
  }
  func.func @transform_22(%arg0: i32) -> (i32, i32) {
    %c0_i32 = arith.constant 0 : i32
    %c0_i32_0 = arith.constant 0 : i32
    return %arg0, %c0_i32 : i32, i32
  }
}

</mosaic_0001>

<bundles_post_ra>
// kernel: tile.14
= control target key start
LH: loop header
LB: loop body
LE: loop exit
PB: predicated region body
PF: predicated region fallthrough
CT: control target
= control target key end

     0   :  { %vm3_vm0 = vcmask 523264   ;;  %s120_s0 = inlined_call_operand.vmem [shape: f32[8,5,64], index: 0, kind: input, shape index: {}]   ;;  %s121_s1 = inlined_call_operand.vmem [shape: f32[40,64], index: 1, kind: output, shape index: {}]  }
   0x1   :  { %v2_v0 = vld [vmem:[%s120_s0] sm:$0x1f]   ;;  %v40_v1 = vld [vmem:[%s120_s0 + $0x8] sm:$0x1f]   ;;  %v42_v2 = vld [vmem:[%s120_s0 + $0x10] sm:$0x1f]  }
   0x2   :  { %4 = vst.msk [vmem:[%s121_s1] sm:$0x1f] %vm3_vm0, %v2_v0   ;;  %41 = vst.msk [vmem:[%s121_s1 + $0x5] sm:$0x1f] %vm3_vm0, %v40_v1   ;;  %v44_v3 = vld [vmem:[%s120_s0 + $0x18] sm:$0x1f]  }
   0x3   :  { %43 = vst.msk [vmem:[%s121_s1 + $0xa] sm:$0x1f] %vm3_vm0, %v42_v2   ;;  %v46_v4 = vld [vmem:[%s120_s0 + $0x20] sm:$0x1f]   ;;  %v48_v5 = vld [vmem:[%s120_s0 + $0x28] sm:$0x1f]  }
   0x4   :  { %45 = vst.msk [vmem:[%s121_s1 + $0xf] sm:$0x1f] %vm3_vm0, %v44_v3   ;;  %47 = vst.msk [vmem:[%s121_s1 + $0x14] sm:$0x1f] %vm3_vm0, %v46_v4   ;;  %v50_v6 = vld [vmem:[%s120_s0 + $0x30] sm:$0x1f]  }
   0x5   :  { %49 = vst.msk [vmem:[%s121_s1 + $0x19] sm:$0x1f] %vm3_vm0, %v48_v5   ;;  %v52_v7 = vld [vmem:[%s120_s0 + $0x38] sm:$0x1f]   ;;  %51 = vst.msk [vmem:[%s121_s1 + $0x1e] sm:$0x1f] %vm3_vm0, %v50_v6  }
   0x6   :  { %53 = vst.msk [vmem:[%s121_s1 + $0x23] sm:$0x1f] %vm3_vm0, %v52_v7  }

// kernel: forward.1
= control target key start
LH: loop header
LB: loop body
LE: loop exit
PB: predicated region body
PF: predicated region fallthrough
CT: control target
= control target key end

     0   :  { %s7435_s0 = inlined_call_operand.vmem [shape: f32[80,768], index: 0, kind: input, shape index: {}]   ;;  %s7436_s1 = inlined_call_operand.vmem [shape: bf16[768,64], index: 1, kind: input, shape index: {}]   ;;  %s7437_s2 = inlined_call_operand.vmem [shape: f32[40,64], index: 2, kind: input, shape index: {}]   ;;  %s7438_s3 = inlined_call_operand.vmem [shape: f32[160,64], index: 3, kind: input, shape index: {}]   ;;  %s7439_s4 = inlined_call_operand.vmem [shape: f32[160,40], index: 4, kind: input, shape index: {}]   ;;  %s7440_s5 = inlined_call_operand.vmem [shape: f32[8,40], index: 5, kind: input, shape index: {}]   ;;  %s7441_s6 = inlined_call_operand.vmem [shape: f32[2,64], index: 6, kind: input, shape index: {}]   ;;  %s7442_s7 = inlined_call_operand.vmem [shape: f32[2,64], index: 7, kind: input, shape index: {}]   ;;  %s7443_s8 = inlined_call_operand.vmem [shape: bf16[2,64,192], index: 8, kind: input, shape index: {}]   ;;  %s7444_s9 = inlined_call_operand.vmem [shape: f32[2,192], index: 9, kind: input, shape index: {}]   ;;  %s7445_s10 = inlined_call_operand.vmem [shape: bf16[2,64,64], index: 10, kind: input, shape index: {}]   ;;  %s7446_s11 = inlined_call_operand.vmem [shape: f32[2,64], index: 11, kind: input, shape index: {}]   ;;  %s7447_s12 = inlined_call_operand.vmem [shape: f32[2,64], index: 12, kind: input, shape index: {}]   ;;  %s7448_s13 = inlined_call_operand.vmem [shape: f32[2,64], index: 13, kind: input, shape index: {}]   ;;  %s7449_s14 = inlined_call_operand.vmem [shape: bf16[2,64,128], index: 14, kind: input, shape index: {}]   ;;  %s7450_s15 = inlined_call_operand.vmem [shape: f32[2,128], index: 15, kind: input, shape index: {}]   ;;  %s7451_s16 = inlined_call_operand.vmem [shape: bf16[2,128,64], index: 16, kind: input, shape index: {}]   ;;  %s7452_s17 = inlined_call_operand.vmem [shape: f32[2,64], index: 17, kind: input, shape index: {}]   ;;  %s7453_s18 = inlined_call_operand.vmem [shape: f32[1,64], index: 18, kind: input, shape index: {}]   ;;  %s7454_s19 = inlined_call_operand.vmem [shape: f32[1,64], index: 19, kind: input, shape index: {}]   ;;  %s7455_s20 = inlined_call_operand.vmem [shape: bf16[64,9], index: 20, kind: input, shape index: {}]   ;;  %s7456_s21 = inlined_call_operand.vmem [shape: f32[1,9], index: 21, kind: input, shape index: {}]   ;;  %s7457_s22 = inlined_call_operand.vmem [shape: f32[16,9], index: 22, kind: output, shape index: {}]  }
   0x1   :  { %7467 = sst [smem:[#allocation2_spill]] %s7435_s0 }
   0x2   :  { %7468 = sst [smem:[#allocation3_spill]] %s7436_s1 }
   0x3   :  { %7469 = sst [smem:[#allocation4_spill]] %s7437_s2 }
   0x4   :  { %7470 = sst [smem:[#allocation5_spill]] %s7438_s3  ;;  %s5695_s3 = smov 0  }
   0x5   :  { %7471 = sst [smem:[#allocation6_spill]] %s7439_s4 }
   0x6   :  { %7472 = sst [smem:[#allocation7_spill]] %s7440_s5 }
   0x7   :  { %7473 = sst [smem:[#allocation8_spill]] %s7441_s6 }
   0x8 LB: > { %s5701_s28 = sadd.s32 4294967295, %s5573_s3   ;;  %p4445_p0 = scmp.ge.s32.totalorder %s5573_s3, 1  ;;  %s5573_s3 = sphi %s5695_s3, %s32_s3  }
   0x9   : > { %p614_p1 = scmp.lt.s32.totalorder %s5573_s3, 3 }
   0xb   : > { %p615_p2 = pnand %p4445_p0, %p614_p1 }
   0xc   : > { %s7474_s4 = sld [smem:[#allocation3_spill]] (!%p615_p2)  ;;  %s676_s0 = smul.u32 (!%p615_p2), 5, %s5701_s28  ;;  %vm1335_vm0 = vcmask (!%p615_p2), 523264   ;;  %vm2051_vm1 = vcmask (!%p615_p2), 1043456   ;;  %vm1787_vm2 = vcmask (!%p615_p2), 326656   ;;  %vm5578_vm3 = vmmov (!%p615_p2), 0  }
   0xd   : > { %618 = sbr.rel (%p615_p2) target bundleno = 6023 (0x1787), region = 108  ;;  %s7475_s1 = sld [smem:[#allocation2_spill]] (!%p615_p2)  ;;  %vm4386_vm14 = vcmask (!%p615_p2), 72704  }
   0xe   : > { %p677_p3 = scmp.lt.s32.totalorder (!%p615_p2), %s676_s0, 9  ;;  %s7476_s30 = sld [smem:[#allocation4_spill]] (!%p615_p2) }
   0xf   : > { %s7477_s6 = sld [smem:[#allocation8_spill]] (!%p615_p2)  ;;  %s7479_s23 = sld [smem:[#allocation6_spill]] (!%p615_p2) }
  0x10   : > { %s7480_s26 = smov (!%p615_p2), 64   ;;  %s7481_s25 = sld [smem:[#allocation7_spill]] (!%p615_p2) }
  0x11   : > { %p683_p4 = scmp.lt.s32.totalorder (!%p615_p2), %s5701_s28, 1 }
  0x12   : > { %v5176_v0 = vld [vmem:[%s7474_s4 + $0x40] sm:$0xff] (!%p615_p2)   ;;  %v5180_v4 = vld [vmem:[%s7474_s4 + $0x48] sm:$0xff] (!%p615_p2)   ;;  %v5184_v8 = vld [vmem:[%s7474_s4 + $0x50] sm:$0xff] (!%p615_p2)  }
  0x13   : > { %v5177_v1 = vld [vmem:[%s7474_s4] sm:$0xff] (!%p615_p2)   ;;  %4668 = vmatprep.subr.bf16.mxu0 (!%p615_p2), %v5176_v0  ;;  %v5181_v5 = vld [vmem:[%s7474_s4 + $0x8] sm:$0xff] (!%p615_p2)   ;;  %v5185_v9 = vld [vmem:[%s7474_s4 + $0x10] sm:$0xff] (!%p615_p2)  }
  0x14   : > { %v5178_v2 = vld [vmem:[%s7474_s4 + $0xc0] sm:$0xff]   ;;  %4669 = vmatpush3.bf16.msra.mxu0 %v5177_v1  ;;  %v5182_v6 = vld [vmem:[%s7474_s4 + $0xc8] sm:$0xff]   ;;  %v5186_v10 = vld [vmem:[%s7474_s4 + $0xd0] sm:$0xff]   ;;  %s7483_s0 = smov (!%p677_p3, %s676_s0), 9  ;;  %s7485_s28 = smov (!%p683_p4, %s5701_s28), 1 }
  0x15   : > { %v5179_v3 = vld [vmem:[%s7474_s4 + $0x80] sm:$0xff]   ;;  %4702 = vmatprep.subr.bf16.mxu1 %v5178_v2  ;;  %4670 = vmatprep.subr.bf16.mxu0 %v5180_v4  ;;  %v5183_v7 = vld [vmem:[%s7474_s4 + $0x88] sm:$0xff]   ;;  %v5187_v11 = vld [vmem:[%s7474_s4 + $0x90] sm:$0xff]   ;;  %s5162_s5 = smul.u32 48, %s7483_s0  ;;  %s7478_s0 = sld [smem:[#allocation5_spill]] }
  0x16   : > { %4703 = vmatpush3.bf16.msra.mxu1 %v5179_v3  ;;  %v5188_v12 = vld [vmem:[%s7474_s4 + $0x58] sm:$0xff]   ;;  %v5192_v16 = vld [vmem:[%s7474_s4 + $0x60] sm:$0xff]   ;;  %v5196_v20 = vld [vmem:[%s7474_s4 + $0x68] sm:$0xff]   ;;  %s4447_s29 = sshll.u32 %s7485_s28, 3 }
  0x17   : > { %4704 = vmatprep.subr.bf16.mxu1 %v5182_v6  ;;  %v5189_v13 = vld [vmem:[%s7474_s4 + $0x18] sm:$0xff]   ;;  %v5193_v17 = vld [vmem:[%s7474_s4 + $0x20] sm:$0xff]   ;;  %v5197_v21 = vld [vmem:[%s7474_s4 + $0x28] sm:$0xff]   ;;  %s5796_s24 = scalar_lea.vmem %s7475_s1, %s5162_s5  ;;  %s7463_s5 = smov 64  }
  0x18   : > { %4671 = vmatpush3.bf16.msra.mxu0 %v5181_v5  ;;  %v5190_v14 = vld [vmem:[%s7474_s4 + $0xd8] sm:$0xff]   ;;  %v5194_v18 = vld [vmem:[%s7474_s4 + $0xe0] sm:$0xff]   ;;  %v5198_v22 = vld [vmem:[%s7474_s4 + $0xe8] sm:$0xff]  }
  0x19   : > { %4672 = vmatprep.subr.bf16.mxu0 %v5184_v8  ;;  %v5191_v15 = vld [vmem:[%s7474_s4 + $0x98] sm:$0xff]   ;;  %v5195_v19 = vld [vmem:[%s7474_s4 + $0xa0] sm:$0xff]   ;;  %v5199_v23 = vld [vmem:[%s7474_s4 + $0xa8] sm:$0xff]  }
  0x1a   : > { %4705 = vmatpush3.bf16.msra.mxu1 %v5183_v7  ;;  %v5200_v24 = vld [vmem:[%s7474_s4 + $0x70] sm:$0xff]   ;;  %v5204_v28 = vld [vmem:[%s7474_s4 + $0x78] sm:$0xff]   ;;  %v729_v31 = vld [vmem:[%s5796_s24 + $0x8] sm:$0xff] }
  0x1b   : > { %4706 = vmatprep.subr.bf16.mxu1 %v5186_v10  ;;  %v5201_v25 = vld [vmem:[%s7474_s4 + $0x30] sm:$0xff]   ;;  %v5205_v29 = vld [vmem:[%s7474_s4 + $0x38] sm:$0xff]   ;;  %v728_v35 = vld [vmem:[%s5796_s24] sm:$0xff] }
  0x1c   : > { %4673 = vmatpush3.bf16.msra.mxu0 %v5185_v9  ;;  %v5202_v26 = vld [vmem:[%s7474_s4 + $0xf0] sm:$0xff]   ;;  %v5206_v30 = vld [vmem:[%s7474_s4 + $0xf8] sm:$0xff]   ;;  %v5208_v38 = vld [vmem:[%s7474_s4 + $0x140] sm:$0xff]  }
  0x1d   : > { %4674 = vmatprep.subr.bf16.mxu0 %v5188_v12  ;;  %v5203_v27 = vld [vmem:[%s7474_s4 + $0xb0] sm:$0xff]   ;;  %v735_v32 = vld [vmem:[%s5796_s24 + $0x38] sm:$0xff]  ;;  %v737_v40 = vld [vmem:[%s5796_s24 + $0x48] sm:$0xff] }
  0x1e   : > { %4707 = vmatpush3.bf16.msra.mxu1 %v5187_v11  ;;  %v855_v33 = vpack.c.bf16 %v735_v32, %v729_v31  ;;  %v5207_v34 = vld [vmem:[%s7474_s4 + $0xb8] sm:$0xff]   ;;  %v734_v36 = vld [vmem:[%s5796_s24 + $0x30] sm:$0xff]  ;;  %v5209_v42 = vld [vmem:[%s7474_s4 + $0x100] sm:$0xff]  }
  0x1f   : > { %4708 = vmatprep.subr.bf16.mxu1 %v5190_v14  ;;  %v854_v37 = vpack.c.bf16 %v734_v36, %v728_v35  ;;  %v731_v39 = vld [vmem:[%s5796_s24 + $0x18] sm:$0xff]  ;;  %v730_v43 = vld [vmem:[%s5796_s24 + $0x10] sm:$0xff]  ;;  %v736_v44 = vld [vmem:[%s5796_s24 + $0x40] sm:$0xff] }
  0x20   : > { %4675 = vmatpush3.bf16.msra.mxu0 %v5189_v13  ;;  %1197 = vmatprep.mubr.bf16.mxu0 %v855_v33  ;;  %v857_v41 = vpack.c.bf16 %v737_v40, %v731_v39  ;;  %v856_v45 = vpack.c.bf16 %v736_v44, %v730_v43  ;;  %v5210_v46 = vld [vmem:[%s7474_s4 + $0x148] sm:$0xff]   ;;  %v5212_v48 = vld [vmem:[%s7474_s4 + $0x150] sm:$0xff]   ;;  %v747_v51 = vld [vmem:[%s5796_s24 + $0x98] sm:$0xff] }
  0x21   : > { %4676 = vmatprep.subr.bf16.mxu0 %v5192_v16  ;;  %v5211_v47 = vld [vmem:[%s7474_s4 + $0x108] sm:$0xff]   ;;  %v5213_v49 = vld [vmem:[%s7474_s4 + $0x110] sm:$0xff]   ;;  %v5214_v53 = vld [vmem:[%s7474_s4 + $0x158] sm:$0xff]  }
  0x22   : > { %4709 = vmatpush3.bf16.msra.mxu1 %v5191_v15  ;;  %1253 = vmatprep.mubr.bf16.mxu1 %v857_v41  ;;  %v741_v50 = vld [vmem:[%s5796_s24 + $0x68] sm:$0xff]  ;;  %v740_v54 = vld [vmem:[%s5796_s24 + $0x60] sm:$0xff]  ;;  %v746_v55 = vld [vmem:[%s5796_s24 + $0x90] sm:$0xff] }
  0x23   : > { %4710 = vmatprep.subr.bf16.mxu1 %v5194_v18  ;;  %v861_v52 = vpack.c.bf16 %v747_v51, %v741_v50  ;;  %v860_v56 = vpack.c.bf16 %v746_v55, %v740_v54  ;;  %v5215_v57 = vld [vmem:[%s7474_s4 + $0x118] sm:$0xff]   ;;  %v749_v59 = vld [vmem:[%s5796_s24 + $0xa8] sm:$0xff]  ;;  %v742_v60 = vld [vmem:[%s5796_s24 + $0x70] sm:$0xff] }
  0x24   : > { %4677 = vmatpush3.bf16.msra.mxu0 %v5193_v17  ;;  %v743_v58 = vld [vmem:[%s5796_s24 + $0x78] sm:$0xff]  ;;  %v748_v62 = vld [vmem:[%s5796_s24 + $0xa0] sm:$0xff]  ;;  %v753_v1 = vld [vmem:[%s5796_s24 + $0xc8] sm:$0xff] }
  0x25   : > { %4678 = vmatprep.subr.bf16.mxu0 %v5196_v20  ;;  %v863_v61 = vpack.c.bf16 %v749_v59, %v743_v58  ;;  %v862_v63 = vpack.c.bf16 %v748_v62, %v742_v60  ;;  %v5216_v0 = vld [vmem:[%s7474_s4 + $0x160] sm:$0xff]   ;;  %v867_v3 = vpack.c.bf16 %v753_v1, %v753_v1  ;;  %v5218_v5 = vld [vmem:[%s7474_s4 + $0x168] sm:$0xff]   ;;  %v755_v7 = vld [vmem:[%s5796_s24 + $0xd8] sm:$0xff] }
  0x26   : > { %4711 = vmatpush3.bf16.msra.mxu1 %v5195_v19  ;;  %v5217_v2 = vld [vmem:[%s7474_s4 + $0x120] sm:$0xff]   ;;  %v869_v8 = vpack.c.bf16 %v755_v7, %v755_v7  ;;  %v754_v9 = vld [vmem:[%s5796_s24 + $0xd0] sm:$0xff]  ;;  %v5219_v11 = vld [vmem:[%s7474_s4 + $0x128] sm:$0xff]  }
  0x27   : > { %4712 = vmatprep.subr.bf16.mxu1 %v5198_v22  ;;  %v752_v4 = vld [vmem:[%s5796_s24 + $0xc0] sm:$0xff]  ;;  %v868_v10 = vpack.c.bf16 %v754_v9, %v754_v9  ;;  %v5220_v12 = vld [vmem:[%s7474_s4 + $0x170] sm:$0xff]   ;;  %v733_v13 = vld [vmem:[%s5796_s24 + $0x28] sm:$0xff] }
  0x28   : > { %4679 = vmatpush3.bf16.msra.mxu0 %v5197_v21  ;;  %v866_v6 = vpack.c.bf16 %v752_v4, %v752_v4  ;;  %v739_v14 = vld [vmem:[%s5796_s24 + $0x58] sm:$0xff]  ;;  %v5221_v16 = vld [vmem:[%s7474_s4 + $0x130] sm:$0xff]   ;;  %v732_v19 = vld [vmem:[%s5796_s24 + $0x20] sm:$0xff] }
  0x29   : > { %4680 = vmatprep.subr.bf16.mxu0 %v5200_v24  ;;  %v859_v15 = vpack.c.bf16 %v739_v14, %v733_v13  ;;  %v5222_v17 = vld [vmem:[%s7474_s4 + $0x178] sm:$0xff]   ;;  %v738_v20 = vld [vmem:[%s5796_s24 + $0x50] sm:$0xff]  ;;  %v745_v21 = vld [vmem:[%s5796_s24 + $0x88] sm:$0xff] }
  0x2a   : > { %4713 = vmatpush3.bf16.msra.mxu1 %v5199_v23  ;;  %v5223_v18 = vld [vmem:[%s7474_s4 + $0x138] sm:$0xff]   ;;  %v858_v23 = vpack.c.bf16 %v738_v20, %v732_v19  ;;  %v872_v33 = vld [vmem:[%s7476_s30] sm:$0xff]  ;;  %v874_v51 = vld [vmem:[%s7476_s30 + $0x10] sm:$0xff] }
  0x2b   : > { %4714 = vmatprep.subr.bf16.mxu1 %v5202_v26  ;;  %v751_v22 = vld [vmem:[%s5796_s24 + $0xb8] sm:$0xff]  ;;  %v750_v26 = vld [vmem:[%s5796_s24 + $0xb0] sm:$0xff] }
  0x2c   : > { %4681 = vmatpush3.bf16.msra.mxu0 %v5201_v25  ;;  %v865_v24 = vpack.c.bf16 %v751_v22, %v745_v21  ;;  %v744_v25 = vld [vmem:[%s5796_s24 + $0x80] sm:$0xff] }
  0x2d   : > { %4682 = vmatprep.subr.bf16.mxu0 %v5204_v28  ;;  %v864_v28 = vpack.c.bf16 %v750_v26, %v744_v25 }
  0x2e   : > { %4715 = vmatpush3.bf16.msra.mxu1 %v5203_v27  ;;  %v757_v27 = vld [vmem:[%s5796_s24 + $0xe8] sm:$0xff] }
  0x2f   : > { %4716 = vmatprep.subr.bf16.mxu1 %v5206_v30  ;;  %v756_v30 = vld [vmem:[%s5796_s24 + $0xe0] sm:$0xff] }
  0x30   : > { %4683 = vmatpush3.bf16.msra.mxu0 %v5205_v29  ;;  %v871_v29 = vpack.c.bf16 %v757_v27, %v757_v27  ;;  %v870_v31 = vpack.c.bf16 %v756_v30, %v756_v30 }
  0x31   : > { %4736 = vmatprep.subr.bf16.mxu0 %v5208_v38  ;;  %v873_v38 = vld [vmem:[%s7476_s30 + $0x8] sm:$0xff] }
  0x32   : > { %4717 = vmatpush3.bf16.msra.mxu1 %v5207_v34 }
  0x33   : > { %1198 = vmatmul.mubr.bf16.vlgmr.msra.gmra.mrb[0].mxu0 %v854_v37 }
  0x34   : > { %4737 = vmatpush3.bf16.msra.mxu0 %v5209_v42  ;;  %1205 = vmatprep.mubr.bf16.mxu0 %v861_v52 }
  0x35   : > { %1254 = vmatmul.mubr.bf16.vlgmr.msra.gmra.mrb[0].mxu1 %v856_v45  ;;  %4738 = vmatprep.subr.bf16.mxu0 %v5210_v46 }
  0x36   : > { %1261 = vmatprep.mubr.bf16.mxu1 %v863_v61 }
  0x38   : > { %4739 = vmatpush3.bf16.msra.mxu0 %v5211_v47 }
  0x39   : > { %4740 = vmatprep.subr.bf16.mxu0 %v5212_v48 }
  0x3b   : > { %1206 = vmatmul.mubr.bf16.gmra.mrb[4].mxu0 %v860_v56  ;;  %v875_v56 = vld [vmem:[%s7476_s30 + $0x18] sm:$0xff] }
  0x3c   : > { %4741 = vmatpush3.bf16.msra.mxu0 %v5213_v49  ;;  %1213 = vmatprep.mubr.bf16.mxu0 %v867_v3 }
  0x3d   : > { %4742 = vmatprep.subr.bf16.mxu0 %v5214_v53  ;;  %1262 = vmatmul.mubr.bf16.gmra.mrb[4].mxu1 %v862_v63 }
  0x3e   : > { %1269 = vmatprep.mubr.bf16.mxu1 %v869_v8 }
  0x40   : > { %4743 = vmatpush3.bf16.msra.mxu0 %v5215_v57 }
  0x41   : > { %4744 = vmatprep.subr.bf16.mxu0 %v5216_v0 }
  0x43   : > { %1214 = vmatmul.mubr.bf16.gmra.mrb[8].mxu0 %v866_v6 }
  0x44   : > { %4745 = vmatpush3.bf16.msra.mxu0 %v5217_v2  ;;  %1309 = vmatprep.mubr.bf16.mxu0 %v859_v15 }
  0x45   : > { %4746 = vmatprep.subr.bf16.mxu0 %v5218_v5  ;;  %1270 = vmatmul.mubr.bf16.gmra.mrb[8].mxu1 %v868_v10  ;;  %v876_v5 = vld [vmem:[%s7476_s30 + $0x20] sm:$0xff]  ;;  %s686_s30 = scalar_lea.vmem %s7457_s22, %s4447_s29 }
  0x48   : > { %4747 = vmatpush3.bf16.msra.mxu0 %v5219_v11 }
  0x49   : > { %4748 = vmatprep.subr.bf16.mxu0 %v5220_v12 }
  0x4c   : > { %4749 = vmatpush3.bf16.msra.mxu0 %v5221_v16 }
  0x4d   : > { %4750 = vmatprep.subr.bf16.mxu0 %v5222_v17 }
  0x50   : > { %4751 = vmatpush3.bf16.msra.mxu0 %v5223_v18 }
  0x53   : > { %1310 = vmatmul.mubr.bf16.vlgmr.msra.gmra.mrb[12].mxu0 %v858_v23 }
  0x54   : > { %1317 = vmatprep.mubr.bf16.mxu0 %v865_v24 }
  0x5b   : > { %1318 = vmatmul.mubr.bf16.gmra.mrb[16].mxu0 %v864_v28 }
  0x5c   : > { %1325 = vmatprep.mubr.bf16.mxu0 %v871_v29 }
  0x63   : > { %1326 = vmatmul.mubr.bf16.gmra.mrb[20].mxu0 %v870_v31 }
 0x106   : > { %v4684_v32 = vpop.f32.mrb[0].mxu0 }
 0x107   : > { %v4685_v34 = vpop.f32.mrb[1].mxu0 }
 0x108   : > { %v4686_v35 = vadd.f32 %v4685_v34, %v4684_v32  ;;  %v4687_v36 = vpop.f32.mrb[2].mxu0  ;;  %v4718_v37 = vpop.f32.mrb[0].mxu1 }
 0x109   : > { %v4688_v39 = vpop.f32.mrb[3].mxu0  ;;  %v4719_v42 = vpop.f32.mrb[1].mxu1 }
 0x10a   : > { %v1200_v40 = vadd.f32 %v4686_v35, %v872_v33  ;;  %v4689_v41 = vadd.f32 %v4688_v39, %v4687_v36  ;;  %v4720_v43 = vadd.f32 %v4719_v42, %v4718_v37  ;;  %v4721_v44 = vpop.f32.mrb[2].mxu1 }
 0x10b   : > { %v4722_v46 = vpop.f32.mrb[3].mxu1 }
 0x10c   : > { %v1203_v45 = vadd.f32 %v4689_v41, %v873_v38  ;;  %v1256_v47 = vadd.f32 %v4720_v43, %v1200_v40  ;;  %v4723_v48 = vadd.f32 %v4722_v46, %v4721_v44 }
 0x10e   : > { %v1259_v49 = vadd.f32 %v4723_v48, %v1203_v45  ;;  %v4690_v50 = vpop.f32.mrb[4].mxu0 }
 0x10f   : > { %v4691_v52 = vpop.f32.mrb[5].mxu0 }
 0x110   : > { %v4692_v53 = vadd.f32 %v4691_v52, %v4690_v50  ;;  %v4693_v54 = vpop.f32.mrb[6].mxu0  ;;  %v4724_v55 = vpop.f32.mrb[4].mxu1 }
 0x111   : > { %v4694_v57 = vpop.f32.mrb[7].mxu0  ;;  %v4725_v58 = vpop.f32.mrb[5].mxu1 }
 0x112   : > { %v1208_v59 = vadd.f32 %v4692_v53, %v874_v51  ;;  %v4695_v60 = vadd.f32 %v4694_v57, %v4693_v54  ;;  %v4726_v61 = vadd.f32 %v4725_v58, %v4724_v55  ;;  %v4727_v62 = vpop.f32.mrb[6].mxu1 }
 0x113   : > { %v4728_v63 = vpop.f32.mrb[7].mxu1 }
 0x114   : > { %v1211_v0 = vadd.f32 %v4695_v60, %v875_v56  ;;  %v1264_v1 = vadd.f32 %v4726_v61, %v1208_v59  ;;  %v4729_v2 = vadd.f32 %v4728_v63, %v4727_v62 }
 0x116   : > { %v1267_v3 = vadd.f32 %v4729_v2, %v1211_v0  ;;  %v4696_v4 = vpop.f32.mrb[8].mxu0 }
 0x117   : > { %v4697_v6 = vpop.f32.mrb[9].mxu0 }
 0x118   : > { %v4698_v7 = vadd.f32 %v4697_v6, %v4696_v4  ;;  %v4699_v8 = vpop.f32.mrb[10].mxu0  ;;  %v4730_v9 = vpop.f32.mrb[8].mxu1  ;;  %v5224_v6 = vld [vmem:[%s7443_s8] ss:$8 sps:$4 sm:$0xff]  }
 0x119   : > { %v4700_v10 = vpop.f32.mrb[11].mxu0  ;;  %v4731_v11 = vpop.f32.mrb[9].mxu1  ;;  %v5227_v8 = vld [vmem:[%s7443_s8 + $0x10] ss:$8 sps:$4 sm:$0xff]  }
 0x11a   : > { %v1216_v12 = vadd.f32 %v4698_v7, %v876_v5  ;;  %v4732_v13 = vadd.f32 %v4731_v11, %v4730_v9  ;;  %v4733_v14 = vpop.f32.mrb[10].mxu1  ;;  %v5226_v5 = vld [vmem:[%s7443_s8 + $0x4] ss:$8 sps:$4 sm:$0xff]   ;;  %v5229_v7 = vld [vmem:[%s7443_s8 + $0x14] ss:$8 sps:$4 sm:$0xff]  }
 0x11b   : > { %v4734_v15 = vpop.f32.mrb[11].mxu1  ;;  %1492 = vmatprep.subr.bf16.mxu1 %v5226_v5  ;;  %v5232_v9 = vld [vmem:[%s7443_s8 + $0x24] ss:$8 sps:$4 sm:$0xff]   ;;  %v5230_v10 = vld [vmem:[%s7443_s8 + $0x20] ss:$8 sps:$4 sm:$0xff]  }
 0x11c   : > { %v1272_v16 = vadd.f32 %v4732_v13, %v1216_v12  ;;  %1493 = vmatpush1.bf16.msra.mxu1 %v5224_v6  ;;  %v5235_v11 = vld [vmem:[%s7443_s8 + $0x34] ss:$8 sps:$4 sm:$0xff]   ;;  %v5233_v12 = vld [vmem:[%s7443_s8 + $0x30] ss:$8 sps:$4 sm:$0xff]   ;;  %v5575_v13 = vmov 0   ;;  %v6007_v5 = vld [vmem:[%s7478_s0] sm:$0xff] }
 0x11d   : > { %1494 = vmatprep.subr.bf16.mxu1 %v5229_v7  ;;  %1524 = vmatprep.mubr.bf16.mxu1 %v5575_v13  ;;  %v6012_v7 = vld [vmem:[%s7478_s0 + $0x8] sm:$0xff] }
 0x120   : > { %1495 = vmatpush1.bf16.msra.mxu1 %v5227_v8  ;;  %v6017_v8 = vld [vmem:[%s7478_s0 + $0x50] sm:$0xff] }
 0x121   : > { %1496 = vmatprep.subr.bf16.mxu1 %v5232_v9  ;;  %v6022_v9 = vld [vmem:[%s7478_s0 + $0x58] sm:$0xff] }
 0x124   : > { %1497 = vmatpush1.bf16.msra.mxu1 %v5230_v10 }
 0x125   : > { %1498 = vmatprep.subr.bf16.mxu1 %v5235_v11 }
 0x126   : > { %v4752_v17 = vpop.f32.mrb[12].mxu0 }
 0x127   : > { %v4753_v18 = vpop.f32.mrb[13].mxu0 }
 0x128   : > { %v4754_v19 = vadd.f32 %v4753_v18, %v4752_v17  ;;  %v4755_v20 = vpop.f32.mrb[14].mxu0  ;;  %1499 = vmatpush1.bf16.msra.mxu1 %v5233_v12 }
 0x129   : > { %v4756_v21 = vpop.f32.mrb[15].mxu0 }
 0x12a   : > { %v5900_v22 = vadd.f32 %v4754_v19, %v1256_v47  ;;  %v4757_v23 = vadd.f32 %v4756_v21, %v4755_v20 }
 0x12c   : > { %v5902_v24 = vadd.f32 %v4757_v23, %v1259_v49  ;;  %v1336_v25 = vsel %vm1335_vm0, %v5900_v22, 0.0 }
 0x12d   : > { %1337 = vadd.xlane.f32.xlu0 %v1336_v25 }
 0x12e   : > { %v4758_v26 = vpop.f32.mrb[16].mxu0  ;;  %v1339_v30 = vsel %vm1335_vm0, %v5902_v24, 0.0 }
 0x12f   : > { %v4759_v27 = vpop.f32.mrb[17].mxu0 }
 0x130   : > { %v4760_v28 = vadd.f32 %v4759_v27, %v4758_v26  ;;  %v4761_v29 = vpop.f32.mrb[18].mxu0 }
 0x131   : > { %v4762_v31 = vpop.f32.mrb[19].mxu0  ;;  %1340 = vadd.xlane.f32.xlu0 %v1339_v30 }
 0x132   : > { %v5908_v32 = vadd.f32 %v4760_v28, %v1264_v1  ;;  %v4763_v33 = vadd.f32 %v4762_v31, %v4761_v29  ;;  %v4496_v31 = vld [vmem:[%s7477_s6] ss:$0 sm:$0xff] }
 0x134   : > { %v5910_v34 = vadd.f32 %v4763_v33, %v1267_v3  ;;  %v1342_v35 = vsel %vm1335_vm0, %v5908_v32, 0.0 }
 0x135   : > { %1343 = vadd.xlane.f32.xlu1 %v1342_v35 }
 0x136   : > { %v4764_v36 = vpop.f32.mrb[20].mxu0  ;;  %v1345_v39 = vsel %vm1335_vm0, %v5910_v34, 0.0 }
 0x137   : > { %v4765_v37 = vpop.f32.mrb[21].mxu0 }
 0x138   : > { %v4766_v38 = vadd.f32 %v4765_v37, %v4764_v36  ;;  %v4767_v40 = vpop.f32.mrb[22].mxu0 }
 0x139   : > { %1346 = vadd.xlane.f32.xlu1 %v1345_v39  ;;  %v4768_v41 = vpop.f32.mrb[23].mxu0  ;;  %v4497_v39 = vld [vmem:[%s7442_s7] ss:$0 sm:$0xff] }
 0x13a   : > { %v5916_v42 = vadd.f32 %v4766_v38, %v1272_v16 }
 0x13c   : > { %v1348_v43 = vsel %vm1335_vm0, %v5916_v42, 0.0 }
 0x13d   : > { %1349 = vadd.xlane.f32.xlu0 %v1348_v43 }
 0x1ba   : > { %v1338_v44 = vpop.xlane.xlu0 %1337 }
 0x1bb   : > { %v1352_v45 = vmul.f32 0.015625, %v1338_v44 }
 0x1bd   : > { %v1357_v46 = vsub.f32 %v5900_v22, %v1352_v45 }
 0x1be   : > { %v1341_v47 = vpop.xlane.xlu0 %1340 }
 0x1bf   : > { %v1353_v48 = vmul.f32 0.015625, %v1341_v47  ;;  %v1362_v49 = vmul.f32 %v1357_v46, %v1357_v46 }
 0x1c1   : > { %v5922_v50 = vsub.f32 %v5902_v24, %v1353_v48  ;;  %v1367_v51 = vsel %vm1335_vm0, %v1362_v49, 0.0 }
 0x1c2   : > { %v1344_v52 = vpop.xlane.xlu1 %1343  ;;  %1368 = vadd.xlane.f32.xlu1 %v1367_v51 }
 0x1c3   : > { %v1354_v53 = vmul.f32 0.015625, %v1344_v52  ;;  %v1363_v54 = vmul.f32 %v5922_v50, %v5922_v50 }
 0x1c5   : > { %v5928_v55 = vsub.f32 %v5908_v32, %v1354_v53  ;;  %v1370_v56 = vsel %vm1335_vm0, %v1363_v54, 0.0 }
 0x1c6   : > { %v1347_v57 = vpop.xlane.xlu1 %1346  ;;  %1371 = vadd.xlane.f32.xlu0 %v1370_v56 }
 0x1c7   : > { %v1355_v58 = vmul.f32 0.015625, %v1347_v57  ;;  %v1364_v59 = vmul.f32 %v5928_v55, %v5928_v55 }
 0x1c9   : > { %v5934_v60 = vsub.f32 %v5910_v34, %v1355_v58  ;;  %v1373_v61 = vsel %vm1335_vm0, %v1364_v59, 0.0  ;;  %v1433_v59 = vlaneseq }
 0x1ca   : > { %1374 = vadd.xlane.f32.xlu1 %v1373_v61  ;;  %v1350_v62 = vpop.xlane.xlu0 %1349 }
 0x1cb   : > { %v1356_v63 = vmul.f32 0.015625, %v1350_v62  ;;  %v1365_v0 = vmul.f32 %v5934_v60, %v5934_v60  ;;  %v1431_v62 = vld [vmem:[%s7444_s9] ss:$2 sm:$0x3] }
 0x1cd   : > { %v5940_v1 = vsub.f32 %v5916_v42, %v1356_v63  ;;  %v1376_v2 = vsel %vm1335_vm0, %v1365_v0, 0.0 }
 0x1ce   : > { %1377 = vadd.xlane.f32.xlu0 %v1376_v2 }
 0x1cf   : > { %v1366_v3 = vmul.f32 %v5940_v1, %v5940_v1 }
 0x1d1   : > { %v1379_v4 = vsel %vm1335_vm0, %v1366_v3, 0.0 }
 0x1d2   : > { %1380 = vadd.xlane.f32.xlu1 %v1379_v4 }
 0x24f   : > { %v1369_v14 = vpop.xlane.xlu1 %1368 }
 0x250   : > { %v1382_v15 = vmul.f32 0.015625, %v1369_v14 }
 0x252   : > { %v1387_v16 = vadd.f32 1e-06, %v1382_v15 }
 0x253   : > { %v1372_v17 = vpop.xlane.xlu0 %1371 }
 0x254   : > { %5284 = vrsqrt.f32 %v1387_v16  ;;  %v1383_v18 = vmul.f32 0.015625, %v1372_v17 }
 0x256   : > { %v1388_v19 = vadd.f32 1e-06, %v1383_v18 }
 0x257   : > { %v1375_v20 = vpop.xlane.xlu1 %1374 }
 0x258   : > { %5286 = vrsqrt.f32 %v1388_v19  ;;  %v1384_v21 = vmul.f32 0.015625, %v1375_v20 }
 0x25a   : > { %v1389_v23 = vadd.f32 1e-06, %v1384_v21 }
 0x25b   : > { %v1378_v25 = vpop.xlane.xlu0 %1377 }
 0x25c   : > { %5288 = vrsqrt.f32 %v1389_v23  ;;  %v1385_v26 = vmul.f32 0.015625, %v1378_v25 }
 0x25e   : > { %v5285_v27 = vpop.eup %5284  ;;  %v1390_v28 = vadd.f32 1e-06, %v1385_v26  ;;  %v6044_v26 = vld [vmem:[%s7478_s0 + $0x30] sm:$0xff] }
 0x25f   : > { %v1397_v29 = vmul.f32 %v5285_v27, %v1357_v46  ;;  %v1381_v30 = vpop.xlane.xlu1 %1380  ;;  %v6049_v27 = vld [vmem:[%s7478_s0 + $0x38] sm:$0xff] }
 0x260   : > { %5290 = vrsqrt.f32 %v1390_v28  ;;  %v1386_v33 = vmul.f32 0.015625, %v1381_v30  ;;  %v6056_v30 = vld [vmem:[%s7478_s0 + $0x80] sm:$0xff] }
 0x261   : > { %v1406_v37 = vmul.f32 %v4496_v31, %v1397_v29 }
 0x262   : > { %v5287_v35 = vpop.eup %5286  ;;  %v1391_v36 = vadd.f32 1e-06, %v1386_v33  ;;  %v6064_v33 = vld [vmem:[%s7478_s0 + $0x10] sm:$0xff] }
 0x263   : > { %v1398_v38 = vmul.f32 %v5287_v35, %v5922_v50  ;;  %v1415_v43 = vadd.f32 %v4497_v39, %v1406_v37  ;;  %v6069_v35 = vld [vmem:[%s7478_s0 + $0x18] sm:$0xff] }
 0x264   : > { %5292 = vrsqrt.f32 %v1391_v36 }
 0x265   : > { %v1407_v40 = vmul.f32 %v4496_v31, %v1398_v38 }
 0x266   : > { %v5289_v41 = vpop.eup %5288 }
 0x267   : > { %v1416_v44 = vadd.f32 %v4497_v39, %v1407_v40  ;;  %v1399_v45 = vmul.f32 %v5289_v41, %v5928_v55  ;;  %v6081_v41 = vld [vmem:[%s7478_s0 + $0x60] sm:$0xff] }
 0x269   : > { %v1428_v46 = vpack.c.bf16 %v1416_v44, %v1415_v43  ;;  %v1408_v49 = vmul.f32 %v4496_v31, %v1399_v45  ;;  %v6086_v43 = vld [vmem:[%s7478_s0 + $0x68] sm:$0xff] }
 0x26a   : > { %v5291_v47 = vpop.eup %5290 }
 0x26b   : > { %4506 = vmatmul.mubr.msk.bf16.vlgmr.msra.gmra.mrb[12].mxu1 %vm1335_vm0, %v1428_v46  ;;  %v1400_v48 = vmul.f32 %v5291_v47, %v5934_v60  ;;  %v1417_v52 = vadd.f32 %v4497_v39, %v1408_v49  ;;  %v5986_v60 = vshrl.u32 %v1433_v59, 7  ;;  %v6117_v59 = vld [vmem:[%s7478_s0 + $0x78] sm:$0xff] }
 0x26c   : > { %1534 = vmatprep.mubr.bf16.mxu1 %v5575_v13 }
 0x26d   : > { %v1409_v50 = vmul.f32 %v4496_v31, %v1400_v48  ;;  %v1435_v61 = vsub.s32 0, %v5986_v60  ;;  %v1439_v63 = vsub.s32 1, %v5986_v60  ;;  %v6761_v60 = vld [vmem:[%s7478_s0 + $0x8] sm:$0xff] }
 0x26e   : > { %v5293_v51 = vpop.eup %5292 }
 0x26f   : > { %v1418_v53 = vadd.f32 %v4497_v39, %v1409_v50  ;;  %v1401_v54 = vmul.f32 %v5293_v51, %v5940_v1  ;;  %v5995_v0 = vrot.slane %v1431_v62, %v1435_v61  ;;  %v5999_v2 = vrot.slane %v1431_v62, %v1439_v63 }
 0x271   : > { %v1429_v56 = vpack.c.bf16 %v1418_v53, %v1417_v52  ;;  %v1410_v57 = vmul.f32 %v4496_v31, %v1401_v54  ;;  %v705_v31 = vld [vmem:[%s7478_s0 + $0x88] sm:$0xff] }
 0x273   : > { %4507 = vmatmul.mubr.msk.bf16.gmra.mrb[16].mxu1 %vm1335_vm0, %v1429_v56  ;;  %v1419_v55 = vadd.f32 %v4497_v39, %v1410_v57 }
 0x274   : > { %1544 = vmatprep.mubr.bf16.mxu1 %v5575_v13 }
 0x275   : > { %v1430_v58 = vpack.c.bf16 %v1419_v55, %v1419_v55  ;;  %v6107_v55 = vld [vmem:[%s7478_s0 + $0x28] sm:$0xff] }
 0x27b   : > { %4508 = vmatmul.mubr.msk.bf16.gmra.mrb[20].mxu1 %vm1335_vm0, %v1430_v58  ;;  %v6112_v58 = vld [vmem:[%s7478_s0 + $0x40] sm:$0xff] }
 0x33e   : > { %v1526_v1 = vpop.f32.mrb[12].mxu1 }
 0x33f   : > { %v6002_v3 = vadd.f32 %v1526_v1, %v5995_v0  ;;  %v1528_v4 = vpop.f32.mrb[13].mxu1  ;;  %v6122_v1 = vld [vmem:[%s7478_s0 + $0x20] sm:$0xff] }
 0x340   : > { %v1530_v6 = vpop.f32.mrb[14].mxu1  ;;  %v1529_v12 = vadd.f32 %v1528_v4, %v5999_v2  ;;  %v6127_v4 = vld [vmem:[%s7478_s0 + $0x48] sm:$0xff] }
 0x341   : > { %v1531_v10 = vadd.f32 %v1530_v6, %v5995_v0  ;;  %v1532_v11 = vpop.f32.mrb[15].mxu1  ;;  %v1553_v15 = vmul.f32 %v6002_v3, %v6007_v5  ;;  %v6033_v18 = vmul.f32 %v6002_v3, %v6017_v8 }
 0x342   : > { %v1533_v14 = vadd.f32 %v1532_v11, %v5999_v2 }
 0x343   : > { %v1583_v16 = vpack.c.bf16 %v1531_v10, %v6002_v3  ;;  %v1554_v17 = vmul.f32 %v1531_v10, %v6012_v7  ;;  %v6036_v19 = vmul.f32 %v1531_v10, %v6022_v9  ;;  %v6073_v39 = vmul.f32 %v1531_v10, %v6044_v26 }
 0x344   : > { %v2018_v20 = vpack.c.bf16 %v1533_v14, %v1529_v12  ;;  %v6091_v46 = vmul.f32 %v1531_v10, %v6056_v30  ;;  %v6132_v10 = vld [vmem:[%s7478_s0 + $0x70] sm:$0xff] }
 0x345   : > { %1589 = vrot.lane.b32.xlu0 %v1583_v16, %s7463_s5  ;;  %v1573_v21 = vpack.c.bf16 %v1554_v17, %v1553_v15  ;;  %v1578_v23 = vpack.c.bf16 %v6036_v19, %v6033_v18  ;;  %v6138_v14 = vld [vmem:[%s7478_s0 + $0x90] sm:$0xff]  ;;  %v6143_v15 = vld [vmem:[%s7478_s0 + $0x98] sm:$0xff]  ;;  %v708_v18 = vld [vmem:[%s7479_s23] sm:$0xff] }
 0x346   : > { %v1536_v25 = vpop.f32.mrb[16].mxu1  ;;  %4909 = vmatprep.subr.bf16.mxu0 %v2018_v20 }
 0x347   : > { %v1537_v28 = vadd.f32 %v1536_v25, %v5995_v0  ;;  %v1538_v29 = vpop.f32.mrb[17].mxu1  ;;  %4889 = vmatprep.mubr.msk.bf16.mxu1 %vm1335_vm0, %v1573_v21  ;;  %4910 = vmatpush3.bf16.msra.mxu0 %v2018_v20  ;;  %v1558_v20 = vmul.f32 %v6002_v3, %v6107_v55  ;;  %v1568_v21 = vmul.f32 %v6002_v3, %v6117_v59 }
 0x348   : > { %v1540_v36 = vpop.f32.mrb[18].mxu1  ;;  %v1539_v44 = vadd.f32 %v1538_v29, %v5999_v2 }
 0x349   : > { %v1541_v37 = vadd.f32 %v1540_v36, %v5995_v0  ;;  %v1542_v38 = vpop.f32.mrb[19].mxu1  ;;  %v6076_v40 = vmul.f32 %v1537_v28, %v6049_v27  ;;  %v6093_v47 = vmul.f32 %v1537_v28, %v705_v31  ;;  %v1555_v48 = vmul.f32 %v1537_v28, %v6064_v33 }
 0x34a   : > { %v1543_v45 = vadd.f32 %v1542_v38, %v5999_v2  ;;  %v1565_v53 = vmul.f32 %v1537_v28, %v6081_v41 }
 0x34b   : > { %v1556_v49 = vmul.f32 %v1541_v37, %v6069_v35  ;;  %v1584_v50 = vpack.c.bf16 %v1541_v37, %v1537_v28  ;;  %v1576_v51 = vpack.c.bf16 %v6076_v40, %v6073_v39  ;;  %v1566_v54 = vmul.f32 %v1541_v37, %v6086_v43 }
 0x34c   : > { %v2019_v52 = vpack.c.bf16 %v1543_v45, %v1539_v44  ;;  %v1581_v56 = vpack.c.bf16 %v6093_v47, %v6091_v46 }
 0x34d   : > { %v1574_v57 = vpack.c.bf16 %v1556_v49, %v1555_v48  ;;  %1591 = vrot.lane.b32.xlu1 %v1584_v50, %s7463_s5  ;;  %v1579_v6 = vpack.c.bf16 %v1566_v54, %v1565_v53 }
 0x34e   : > { %v1546_v62 = vpop.f32.mrb[20].mxu1  ;;  %4911 = vmatprep.subr.bf16.mxu0 %v2019_v52 }
 0x34f   : > { %v1547_v11 = vadd.f32 %v1546_v62, %v5995_v0  ;;  %v1548_v12 = vpop.f32.mrb[21].mxu1  ;;  %4912 = vmatpush3.bf16.msra.mxu0 %v2019_v52  ;;  %v1561_v0 = vmul.f32 %v1541_v37, %v6112_v58 }
 0x350   : > { %v1549_v16 = vadd.f32 %v1548_v12, %v5999_v2  ;;  %v1550_v17 = vpop.f32.mrb[22].mxu1  ;;  %v1571_v2 = vmul.f32 %v1541_v37, %v6138_v14 }
 0x351   : > { %v1551_v25 = vpop.f32.mrb[23].mxu1  ;;  %v1585_v28 = vpack.c.bf16 %v1547_v11, %v1547_v11  ;;  %v1557_v29 = vmul.f32 %v1547_v11, %v6122_v1  ;;  %v1562_v31 = vmul.f32 %v1547_v11, %v6127_v4  ;;  %v1567_v36 = vmul.f32 %v1547_v11, %v6132_v10 }
 0x352   : > { %v2020_v38 = vpack.c.bf16 %v1549_v16, %v1549_v16  ;;  %v1572_v39 = vmul.f32 %v1547_v11, %v6143_v15 }
 0x353   : > { %1593 = vrot.lane.b32.xlu1 %v1585_v28, %s7463_s5  ;;  %v1575_v40 = vpack.c.bf16 %v1558_v20, %v1557_v29  ;;  %v1577_v44 = vpack.c.bf16 %v1562_v31, %v1561_v0  ;;  %v1580_v45 = vpack.c.bf16 %v1568_v21, %v1567_v36  ;;  %v711_v21 = vld [vmem:[%s7479_s23 + $0x18] sm:$0xff]  ;;  %v712_v36 = vld [vmem:[%s7479_s23 + $0x20] sm:$0xff] }
 0x354   : > { %v2053_v3 = vsel %vm2051_vm1, %v2020_v38, 0  ;;  %5157 = vmatprep.subr.msk.bf16.mxu0 %vm2051_vm1, %v2020_v38  ;;  %v1582_v46 = vpack.c.bf16 %v1572_v39, %v1571_v2 }
 0x355   : > { %4914 = vmatpush3.bf16.msra.mxu0 %v2053_v3 }
 0x3b7   : > { %v1590_v47 = vpop.permute.xlu0 %1589 }
 0x3b8   : > { %5154 = vmatprep.subr.msk.bf16.mxu1 %vm1335_vm0, %v1590_v47  ;;  %v1626_v48 = vsel %vm1335_vm0, %v1590_v47, 0 }
 0x3b9   : > { %4884 = vmatpush3.bf16.xpose.msra.mxu1 %v1626_v48 }
 0x3bf   : > { %v1592_v37 = vpop.permute.xlu1 %1591 }
 0x3c0   : > { %5155 = vmatprep.subr.msk.bf16.mxu1 %vm1335_vm0, %v1592_v37  ;;  %v1629_v49 = vsel %vm1335_vm0, %v1592_v37, 0 }
 0x3c1   : > { %4886 = vmatpush3.bf16.xpose.msra.mxu1 %v1629_v49 }
 0x3c5   : > { %v1594_v50 = vpop.permute.xlu1 %1593 }
 0x3c6   : > { %5156 = vmatprep.subr.msk.bf16.mxu1 %vm1335_vm0, %v1594_v50  ;;  %v1632_v52 = vsel %vm1335_vm0, %v1594_v50, 0 }
 0x3c9   : > { %4888 = vmatpush3.bf16.xpose.msra.mxu1 %v1632_v52  ;;  %v715_v52 = vld [vmem:[%s7479_s23 + $0x38] sm:$0xff] }
 0x3d0   : > { %4890 = vmatmul.mubr.msk.bf16.vlgmr.msra.gmra.mrb[24].mxu1 %vm1335_vm0, %v1574_v57 }
 0x3d1   : > { %4893 = vmatprep.mubr.msk.bf16.mxu1 %vm1335_vm0, %v1575_v40 }
 0x3d8   : > { %4894 = vmatmul.mubr.msk.bf16.gmra.mrb[28].mxu1 %vm1335_vm0, %v1576_v51  ;;  %v710_v51 = vld [vmem:[%s7479_s23 + $0x10] sm:$0xff] }
 0x3d9   : > { %4897 = vmatprep.mubr.msk.bf16.mxu1 %vm1335_vm0, %v1577_v44  ;;  %v713_v44 = vld [vmem:[%s7479_s23 + $0x28] sm:$0xff] }
 0x3e0   : > { %4898 = vmatmul.mubr.msk.bf16.gmra.mrb[32].mxu1 %vm1335_vm0, %v1578_v23 }
 0x3e1   : > { %4901 = vmatprep.mubr.msk.bf16.mxu1 %vm1335_vm0, %v1579_v6 }
 0x3e8   : > { %4902 = vmatmul.mubr.msk.bf16.gmra.mrb[36].mxu1 %vm1335_vm0, %v1580_v45  ;;  %v714_v45 = vld [vmem:[%s7479_s23 + $0x30] sm:$0xff] }
 0x3e9   : > { %4905 = vmatprep.mubr.msk.bf16.mxu1 %vm1335_vm0, %v1581_v56  ;;  %v709_v56 = vld [vmem:[%s7479_s23 + $0x8] sm:$0xff] }
 0x3f0   : > { %4906 = vmatmul.mubr.msk.bf16.gmra.mrb[40].mxu1 %vm1335_vm0, %v1582_v46 }
 0x4a3   : > { %v4891_v53 = vpop.f32.mrb[24].mxu1 }
 0x4a4   : > { %v1749_v54 = vmul.f32 0.25, %v4891_v53  ;;  %v1668_v57 = vpop.f32.mrb[25].mxu1 }
 0x4a5   : > { %v1747_v19 = vmul.f32 0.25, %v1668_v57  ;;  %v4892_v23 = vpop.f32.mrb[26].mxu1 }
 0x4a6   : > { %v1671_v62 = vpop.f32.mrb[27].mxu1  ;;  %v6183_v6 = vadd.f32 %v1749_v54, %v710_v51  ;;  %v1750_v16 = vmul.f32 0.25, %v4892_v23 }
 0x4a7   : > { %v1748_v11 = vmul.f32 0.25, %v1671_v62  ;;  %v6188_v12 = vadd.f32 %v1747_v19, %v708_v18  ;;  %v716_v18 = vld [vmem:[%s7479_s23 + $0x40] sm:$0xff] }
 0x4a8   : > { %v1794_v17 = vsel %vm1787_vm2, %v6183_v6, -inf  ;;  %v6201_v31 = vadd.f32 %v1750_v16, %v711_v21  ;;  %v717_v16 = vld [vmem:[%s7479_s23 + $0x48] sm:$0xff] }
 0x4a9   : > { %1795 = vmax.xlane.f32.xlu0 %v1794_v17  ;;  %v1788_v20 = vsel %vm1787_vm2, %v6188_v12, -inf  ;;  %v6194_v0 = vadd.f32 %v1748_v11, %v709_v56  ;;  %v718_v17 = vld [vmem:[%s7479_s23 + $0x50] sm:$0xff] }
 0x4aa   : > { %1789 = vmax.xlane.f32.xlu1 %v1788_v20  ;;  %v1797_v48 = vsel %vm1787_vm2, %v6201_v31, -inf }
 0x4ab   : > { %v4895_v25 = vpop.f32.mrb[28].mxu1  ;;  %v1791_v28 = vsel %vm1787_vm2, %v6194_v0, -inf }
 0x4ac   : > { %v1684_v29 = vpop.f32.mrb[29].mxu1  ;;  %v1753_v38 = vmul.f32 0.25, %v4895_v25 }
 0x4ad   : > { %v1751_v2 = vmul.f32 0.25, %v1684_v29  ;;  %1792 = vmax.xlane.f32.xlu0 %v1791_v28  ;;  %v4896_v39 = vpop.f32.mrb[30].mxu1 }
 0x4ae   : > { %v1687_v40 = vpop.f32.mrb[31].mxu1  ;;  %v1754_v47 = vmul.f32 0.25, %v4896_v39  ;;  %v6220_v50 = vadd.f32 %v1753_v38, %v714_v45 }
 0x4af   : > { %v1752_v3 = vmul.f32 0.25, %v1687_v40  ;;  %v6212_v46 = vadd.f32 %v1751_v2, %v712_v36  ;;  %v719_v2 = vld [vmem:[%s7479_s23 + $0x58] sm:$0xff] }
 0x4b0   : > { %v6227_v57 = vadd.f32 %v1754_v47, %v715_v52  ;;  %v1806_v56 = vsel %vm1787_vm2, %v6220_v50, -inf }
 0x4b1   : > { %1798 = vmax.xlane.f32.xlu0 %v1797_v48  ;;  %v1800_v37 = vsel %vm1787_vm2, %v6212_v46, -inf  ;;  %v6218_v49 = vadd.f32 %v1752_v3, %v713_v44  ;;  %v720_v3 = vld [vmem:[%s7479_s23 + $0x60] sm:$0xff] }
 0x4b2   : > { %1801 = vmax.xlane.f32.xlu1 %v1800_v37  ;;  %v1809_v28 = vsel %vm1787_vm2, %v6227_v57, -inf }
 0x4b3   : > { %v4899_v53 = vpop.f32.mrb[32].mxu1  ;;  %v1803_v51 = vsel %vm1787_vm2, %v6218_v49, -inf }
 0x4b4   : > { %v1700_v54 = vpop.f32.mrb[33].mxu1  ;;  %v1757_v19 = vmul.f32 0.25, %v4899_v53 }
 0x4b5   : > { %v1755_v23 = vmul.f32 0.25, %v1700_v54  ;;  %1804 = vmax.xlane.f32.xlu0 %v1803_v51  ;;  %v4900_v62 = vpop.f32.mrb[34].mxu1  ;;  %v721_v51 = vld [vmem:[%s7479_s23 + $0x68] sm:$0xff]  ;;  %v722_v54 = vld [vmem:[%s7479_s23 + $0x70] sm:$0xff] }
 0x4b6   : > { %1807 = vmax.xlane.f32.xlu1 %v1806_v56  ;;  %v1703_v11 = vpop.f32.mrb[35].mxu1  ;;  %v1758_v25 = vmul.f32 0.25, %v4900_v62  ;;  %v6248_v38 = vadd.f32 %v1757_v19, %v718_v17  ;;  %v723_v17 = vld [vmem:[%s7479_s23 + $0x78] sm:$0xff] }
 0x4b7   : > { %v1756_v20 = vmul.f32 0.25, %v1703_v11  ;;  %v6240_v21 = vadd.f32 %v1755_v23, %v716_v18 }
 0x4b8   : > { %v6255_v45 = vadd.f32 %v1758_v25, %v719_v2  ;;  %v1818_v52 = vsel %vm1787_vm2, %v6248_v38, -inf  ;;  %v724_v2 = vld [vmem:[%s7479_s23 + $0x80] sm:$0xff] }
 0x4b9   : > { %1810 = vmax.xlane.f32.xlu0 %v1809_v28  ;;  %v1812_v29 = vsel %vm1787_vm2, %v6240_v21, -inf  ;;  %v6246_v36 = vadd.f32 %v1756_v20, %v717_v16 }
 0x4ba   : > { %1813 = vmax.xlane.f32.xlu1 %v1812_v29  ;;  %v1821_v62 = vsel %vm1787_vm2, %v6255_v45, -inf }
 0x4bb   : > { %v4903_v39 = vpop.f32.mrb[36].mxu1  ;;  %v1815_v40 = vsel %vm1787_vm2, %v6246_v36, -inf }
 0x4bc   : > { %v1716_v44 = vpop.f32.mrb[37].mxu1  ;;  %v1761_v47 = vmul.f32 0.25, %v4903_v39 }
 0x4bd   : > { %v1759_v48 = vmul.f32 0.25, %v1716_v44  ;;  %1816 = vmax.xlane.f32.xlu0 %v1815_v40  ;;  %v4904_v37 = vpop.f32.mrb[38].mxu1 }
 0x4be   : > { %1819 = vmax.xlane.f32.xlu1 %v1818_v52  ;;  %v1719_v53 = vpop.f32.mrb[39].mxu1  ;;  %v1762_v23 = vmul.f32 0.25, %v4904_v37  ;;  %v6276_v16 = vadd.f32 %v1761_v47, %v722_v54  ;;  %v726_v37 = vld [vmem:[%s7479_s23 + $0x90] sm:$0xff] }
 0x4bf   : > { %v1760_v18 = vmul.f32 0.25, %v1719_v53  ;;  %v6268_v19 = vadd.f32 %v1759_v48, %v720_v3  ;;  %v725_v48 = vld [vmem:[%s7479_s23 + $0x88] sm:$0xff] }
 0x4c0   : > { %v6283_v29 = vadd.f32 %v1762_v23, %v723_v17  ;;  %v1830_v3 = vsel %vm1787_vm2, %v6276_v16, -inf }
 0x4c1   : > { %1822 = vmax.xlane.f32.xlu0 %v1821_v62  ;;  %v1824_v56 = vsel %vm1787_vm2, %v6268_v19, -inf  ;;  %v6274_v11 = vadd.f32 %v1760_v18, %v721_v51 }
 0x4c2   : > { %1825 = vmax.xlane.f32.xlu1 %v1824_v56  ;;  %v1833_v54 = vsel %vm1787_vm2, %v6283_v29, -inf  ;;  %v727_v56 = vld [vmem:[%s7479_s23 + $0x98] sm:$0xff] }
 0x4c3   : > { %v4907_v20 = vpop.f32.mrb[40].mxu1  ;;  %v1827_v25 = vsel %vm1787_vm2, %v6274_v11, -inf }
 0x4c4   : > { %v1732_v28 = vpop.f32.mrb[41].mxu1  ;;  %v1765_v39 = vmul.f32 0.25, %v4907_v20 }
 0x4c5   : > { %v1763_v40 = vmul.f32 0.25, %v1732_v28  ;;  %1828 = vmax.xlane.f32.xlu0 %v1827_v25  ;;  %v4908_v44 = vpop.f32.mrb[42].mxu1 }
 0x4c6   : > { %1831 = vmax.xlane.f32.xlu1 %v1830_v3  ;;  %v1735_v47 = vpop.f32.mrb[43].mxu1  ;;  %v1766_v51 = vmul.f32 0.25, %v4908_v44  ;;  %v6304_v62 = vadd.f32 %v1765_v39, %v726_v37 }
 0x4c7   : > { %v1764_v52 = vmul.f32 0.25, %v1735_v47  ;;  %v6296_v53 = vadd.f32 %v1763_v40, %v724_v2 }
 0x4c8   : > { %v6311_v20 = vadd.f32 %v1766_v51, %v727_v56  ;;  %v1842_v25 = vsel %vm1787_vm2, %v6304_v62, -inf }
 0x4c9   : > { %1834 = vmax.xlane.f32.xlu0 %v1833_v54  ;;  %v1836_v18 = vsel %vm1787_vm2, %v6296_v53, -inf  ;;  %v6302_v23 = vadd.f32 %v1764_v52, %v725_v48 }
 0x4ca   : > { %1837 = vmax.xlane.f32.xlu1 %v1836_v18  ;;  %v1845_v28 = vsel %vm1787_vm2, %v6311_v20, -inf }
 0x4cb   : > { %v1839_v17 = vsel %vm1787_vm2, %v6302_v23, -inf }
 0x4cd   : > { %1840 = vmax.xlane.f32.xlu0 %v1839_v17 }
 0x4ce   : > { %1843 = vmax.xlane.f32.xlu1 %v1842_v25 }
 0x4d1   : > { %1846 = vmax.xlane.f32.xlu0 %v1845_v28 }
 0x536   : > { %v1796_v2 = vpop.xlane.xlu0 %1795 }
 0x537   : > { %v1850_v39 = vsub.f32 %v6183_v6, %v1796_v2  ;;  %v1790_v40 = vpop.xlane.xlu1 %1789 }
 0x538   : > { %v1848_v44 = vsub.f32 %v6188_v12, %v1790_v40 }
 0x539   : > { %v1872_v3 = vmul.f32 1.442695, %v1850_v39 }
 0x53a   : > { %v1868_v47 = vmul.f32 1.442695, %v1848_v44  ;;  %v1793_v48 = vpop.xlane.xlu0 %1792 }
 0x53b   : > { %v1849_v37 = vsub.f32 %v6194_v0, %v1793_v48 }
 0x53c   : > { %5294 = vpow2.f32 %v1868_v47 }
 0x53d   : > { %v1870_v52 = vmul.f32 1.442695, %v1849_v37  ;;  %5296 = vpow2.f32 %v1872_v3 }
 0x53e   : > { %v1799_v51 = vpop.xlane.xlu0 %1798 }
 0x53f   : > { %5298 = vpow2.f32 %v1870_v52  ;;  %v1851_v54 = vsub.f32 %v6201_v31, %v1799_v51  ;;  %v1802_v18 = vpop.xlane.xlu1 %1801 }
 0x540   : > { %v1852_v56 = vsub.f32 %v6212_v46, %v1802_v18 }
 0x541   : > { %v1874_v17 = vmul.f32 1.442695, %v1851_v54 }
 0x542   : > { %v1876_v6 = vmul.f32 1.442695, %v1852_v56  ;;  %v1805_v25 = vpop.xlane.xlu0 %1804 }
 0x543   : > { %5300 = vpow2.f32 %v1874_v17  ;;  %v1853_v12 = vsub.f32 %v6218_v49, %v1805_v25  ;;  %v1808_v28 = vpop.xlane.xlu1 %1807 }
 0x544   : > { %5302 = vpow2.f32 %v1876_v6  ;;  %v1854_v0 = vsub.f32 %v6220_v50, %v1808_v28 }
 0x545   : > { %v1878_v2 = vmul.f32 1.442695, %v1853_v12 }
 0x546   : > { %v6324_v39 = vpop.eup %5294  ;;  %v1880_v40 = vmul.f32 1.442695, %v1854_v0  ;;  %v1811_v44 = vpop.xlane.xlu0 %1810 }
 0x547   : > { %5304 = vpow2.f32 %v1878_v2  ;;  %v1855_v31 = vsub.f32 %v6227_v57, %v1811_v44  ;;  %v1814_v3 = vpop.xlane.xlu1 %1813  ;;  %v1908_v46 = vsel %vm1787_vm2, %v6324_v39, 0.0  ;;  %v6329_v47 = vpop.eup %5296 }
 0x548   : > { %5306 = vpow2.f32 %v1880_v40  ;;  %v1856_v49 = vsub.f32 %v6240_v21, %v1814_v3  ;;  %1909 = vadd.xlane.f32.xlu1 %v1908_v46  ;;  %v1914_v18 = vsel %vm1787_vm2, %v6329_v47, 0.0 }
 0x549   : > { %v6332_v48 = vpop.eup %5298  ;;  %v1882_v50 = vmul.f32 1.442695, %v1855_v31 }
 0x54a   : > { %v1884_v37 = vmul.f32 1.442695, %v1856_v49  ;;  %v1817_v52 = vpop.xlane.xlu0 %1816  ;;  %v1911_v51 = vsel %vm1787_vm2, %v6332_v48, 0.0 }
 0x54b   : > { %5308 = vpow2.f32 %v1882_v50  ;;  %v1857_v57 = vsub.f32 %v6246_v36, %v1817_v52  ;;  %v1820_v54 = vpop.xlane.xlu1 %1819  ;;  %1912 = vadd.xlane.f32.xlu0 %v1911_v51 }
 0x54c   : > { %5310 = vpow2.f32 %v1884_v37  ;;  %v1858_v21 = vsub.f32 %v6248_v38, %v1820_v54  ;;  %1915 = vadd.xlane.f32.xlu1 %v1914_v18 }
 0x54d   : > { %v6340_v56 = vpop.eup %5300  ;;  %v1886_v17 = vmul.f32 1.442695, %v1857_v57 }
 0x54e   : > { %v6342_v6 = vpop.eup %5302  ;;  %v1888_v25 = vmul.f32 1.442695, %v1858_v21  ;;  %v1823_v12 = vpop.xlane.xlu0 %1822  ;;  %v1917_v28 = vsel %vm1787_vm2, %v6340_v56, 0.0 }
 0x54f   : > { %5312 = vpow2.f32 %v1886_v17  ;;  %v1859_v36 = vsub.f32 %v6255_v45, %v1823_v12  ;;  %v1826_v0 = vpop.xlane.xlu1 %1825  ;;  %1918 = vadd.xlane.f32.xlu0 %v1917_v28  ;;  %v1920_v2 = vsel %vm1787_vm2, %v6342_v6, 0.0 }
 0x550   : > { %5314 = vpow2.f32 %v1888_v25  ;;  %v1860_v38 = vsub.f32 %v6268_v19, %v1826_v0  ;;  %1921 = vadd.xlane.f32.xlu1 %v1920_v2 }
 0x551   : > { %v6350_v40 = vpop.eup %5304  ;;  %v1890_v44 = vmul.f32 1.442695, %v1859_v36 }
 0x552   : > { %v6352_v31 = vpop.eup %5306  ;;  %v1892_v3 = vmul.f32 1.442695, %v1860_v38  ;;  %v1829_v46 = vpop.xlane.xlu0 %1828  ;;  %v1923_v49 = vsel %vm1787_vm2, %v6350_v40, 0.0 }
 0x553   : > { %5316 = vpow2.f32 %v1890_v44  ;;  %v1861_v45 = vsub.f32 %v6274_v11, %v1829_v46  ;;  %v1832_v50 = vpop.xlane.xlu1 %1831  ;;  %1924 = vadd.xlane.f32.xlu0 %v1923_v49  ;;  %v1926_v37 = vsel %vm1787_vm2, %v6352_v31, 0.0 }
 0x554   : > { %5318 = vpow2.f32 %v1892_v3  ;;  %v1862_v19 = vsub.f32 %v6276_v16, %v1832_v50  ;;  %1927 = vadd.xlane.f32.xlu1 %v1926_v37 }
 0x555   : > { %v6360_v52 = vpop.eup %5308  ;;  %v1894_v51 = vmul.f32 1.442695, %v1861_v45 }
 0x556   : > { %v6362_v57 = vpop.eup %5310  ;;  %v1896_v54 = vmul.f32 1.442695, %v1862_v19  ;;  %v1835_v18 = vpop.xlane.xlu0 %1834  ;;  %v1929_v21 = vsel %vm1787_vm2, %v6360_v52, 0.0 }
 0x557   : > { %5320 = vpow2.f32 %v1894_v51  ;;  %v1863_v11 = vsub.f32 %v6283_v29, %v1835_v18  ;;  %v1838_v17 = vpop.xlane.xlu1 %1837  ;;  %1930 = vadd.xlane.f32.xlu0 %v1929_v21  ;;  %v1932_v25 = vsel %vm1787_vm2, %v6362_v57, 0.0 }
 0x558   : > { %5322 = vpow2.f32 %v1896_v54  ;;  %v1864_v16 = vsub.f32 %v6296_v53, %v1838_v17  ;;  %1933 = vadd.xlane.f32.xlu1 %v1932_v25 }
 0x559   : > { %v6370_v12 = vpop.eup %5312  ;;  %v1898_v28 = vmul.f32 1.442695, %v1863_v11 }
 0x55a   : > { %v6372_v36 = vpop.eup %5314  ;;  %v1900_v0 = vmul.f32 1.442695, %v1864_v16  ;;  %v1841_v2 = vpop.xlane.xlu0 %1840  ;;  %v1935_v38 = vsel %vm1787_vm2, %v6370_v12, 0.0 }
 0x55b   : > { %5324 = vpow2.f32 %v1898_v28  ;;  %v1865_v29 = vsub.f32 %v6302_v23, %v1841_v2  ;;  %v1844_v44 = vpop.xlane.xlu1 %1843  ;;  %1936 = vadd.xlane.f32.xlu0 %v1935_v38  ;;  %v1938_v3 = vsel %vm1787_vm2, %v6372_v36, 0.0 }
 0x55c   : > { %5326 = vpow2.f32 %v1900_v0  ;;  %v1866_v53 = vsub.f32 %v6304_v62, %v1844_v44  ;;  %1939 = vadd.xlane.f32.xlu1 %v1938_v3 }
 0x55d   : > { %v6380_v46 = vpop.eup %5316  ;;  %v1902_v49 = vmul.f32 1.442695, %v1865_v29 }
 0x55e   : > { %v6382_v45 = vpop.eup %5318  ;;  %v1904_v50 = vmul.f32 1.442695, %v1866_v53  ;;  %v1847_v37 = vpop.xlane.xlu0 %1846  ;;  %v1941_v19 = vsel %vm1787_vm2, %v6380_v46, 0.0 }
 0x55f   : > { %5328 = vpow2.f32 %v1902_v49  ;;  %v1867_v23 = vsub.f32 %v6311_v20, %v1847_v37  ;;  %1942 = vadd.xlane.f32.xlu0 %v1941_v19  ;;  %v1944_v51 = vsel %vm1787_vm2, %v6382_v45, 0.0 }
 0x560   : > { %5330 = vpow2.f32 %v1904_v50  ;;  %1945 = vadd.xlane.f32.xlu1 %v1944_v51 }
 0x561   : > { %v6389_v62 = vpop.eup %5320  ;;  %v1906_v54 = vmul.f32 1.442695, %v1867_v23 }
 0x562   : > { %v6391_v18 = vpop.eup %5322  ;;  %v1947_v21 = vsel %vm1787_vm2, %v6389_v62, 0.0 }
 0x563   : > { %5332 = vpow2.f32 %v1906_v54  ;;  %1948 = vadd.xlane.f32.xlu0 %v1947_v21  ;;  %v1950_v11 = vsel %vm1787_vm2, %v6391_v18, 0.0 }
 0x564   : > { %1951 = vadd.xlane.f32.xlu1 %v1950_v11 }
 0x565   : > { %v6397_v20 = vpop.eup %5324 }
 0x566   : > { %v6399_v17 = vpop.eup %5326  ;;  %v1953_v25 = vsel %vm1787_vm2, %v6397_v20, 0.0 }
 0x567   : > { %1954 = vadd.xlane.f32.xlu0 %v1953_v25  ;;  %v1956_v16 = vsel %vm1787_vm2, %v6399_v17, 0.0 }
 0x568   : > { %1957 = vadd.xlane.f32.xlu1 %v1956_v16 }
 0x569   : > { %v6405_v28 = vpop.eup %5328 }
 0x56a   : > { %v6407_v0 = vpop.eup %5330  ;;  %v1959_v2 = vsel %vm1787_vm2, %v6405_v28, 0.0 }
 0x56b   : > { %1960 = vadd.xlane.f32.xlu0 %v1959_v2  ;;  %v1962_v38 = vsel %vm1787_vm2, %v6407_v0, 0.0 }
 0x56c   : > { %1963 = vadd.xlane.f32.xlu1 %v1962_v38 }
 0x56d   : > { %v6413_v29 = vpop.eup %5332 }
 0x56e   : > { %v1965_v44 = vsel %vm1787_vm2, %v6413_v29, 0.0 }
 0x56f   : > { %1966 = vadd.xlane.f32.xlu0 %v1965_v44 }
 0x5d5   : > { %v1910_v3 = vpop.xlane.xlu1 %1909 }
 0x5d6   : > { %5334 = vrcp.f32 %v1910_v3 }
 0x5d8   : > { %v1913_v53 = vpop.xlane.xlu0 %1912 }
 0x5d9   : > { %5336 = vrcp.f32 %v1913_v53  ;;  %v1916_v49 = vpop.xlane.xlu1 %1915 }
 0x5da   : > { %5338 = vrcp.f32 %v1916_v49 }
 0x5dc   : > { %v1919_v50 = vpop.xlane.xlu0 %1918 }
 0x5dd   : > { %5340 = vrcp.f32 %v1919_v50  ;;  %v1922_v37 = vpop.xlane.xlu1 %1921 }
 0x5de   : > { %5342 = vrcp.f32 %v1922_v37 }
 0x5e0   : > { %v1925_v19 = vpop.xlane.xlu0 %1924  ;;  %v5335_v23 = vpop.eup %5334 }
 0x5e1   : > { %5344 = vrcp.f32 %v1925_v19  ;;  %v1928_v51 = vpop.xlane.xlu1 %1927  ;;  %v1988_v11 = vmul.f32 %v5335_v23, %v6324_v39 }
 0x5e2   : > { %5346 = vrcp.f32 %v1928_v51 }
 0x5e3   : > { %v5337_v54 = vpop.eup %5336 }
 0x5e4   : > { %v1931_v21 = vpop.xlane.xlu0 %1930  ;;  %v1989_v25 = vmul.f32 %v5337_v54, %v6332_v48  ;;  %v5339_v16 = vpop.eup %5338 }
 0x5e5   : > { %5348 = vrcp.f32 %v1931_v21  ;;  %v1934_v2 = vpop.xlane.xlu1 %1933  ;;  %v1990_v3 = vmul.f32 %v5339_v16, %v6329_v47 }
 0x5e6   : > { %v2008_v38 = vpack.c.bf16 %v1989_v25, %v1988_v11  ;;  %5350 = vrcp.f32 %v1934_v2 }
 0x5e7   : > { %v5341_v44 = vpop.eup %5340 }
 0x5e8   : > { %v1991_v53 = vmul.f32 %v5341_v44, %v6340_v56  ;;  %4915 = vmatprep.mubr.msk.bf16.mxu0 %vm1787_vm2, %v2008_v38  ;;  %v1937_v49 = vpop.xlane.xlu0 %1936  ;;  %v5343_v50 = vpop.eup %5342 }
 0x5e9   : > { %5352 = vrcp.f32 %v1937_v49  ;;  %v1940_v37 = vpop.xlane.xlu1 %1939  ;;  %v1992_v23 = vmul.f32 %v5343_v50, %v6342_v6 }
 0x5ea   : > { %v2009_v19 = vpack.c.bf16 %v1991_v53, %v1990_v3  ;;  %5354 = vrcp.f32 %v1940_v37 }
 0x5eb   : > { %v5345_v39 = vpop.eup %5344 }
 0x5ec   : > { %4916 = vmatmul.mubr.msk.bf16.vlgmr.msra.gmra.mrb[24].mxu0 %vm1787_vm2, %v2009_v19  ;;  %v1943_v48 = vpop.xlane.xlu0 %1942  ;;  %v1993_v51 = vmul.f32 %v5345_v39, %v6350_v40  ;;  %v5347_v54 = vpop.eup %5346 }
 0x5ed   : > { %5356 = vrcp.f32 %v1943_v48  ;;  %v1946_v47 = vpop.xlane.xlu1 %1945  ;;  %v1994_v25 = vmul.f32 %v5347_v54, %v6352_v31 }
 0x5ee   : > { %v2010_v56 = vpack.c.bf16 %v1993_v51, %v1992_v23  ;;  %5358 = vrcp.f32 %v1946_v47 }
 0x5ef   : > { %v5349_v21 = vpop.eup %5348 }
 0x5f0   : > { %4919 = vmatprep.mubr.msk.bf16.mxu0 %vm1787_vm2, %v2010_v56  ;;  %v1949_v11 = vpop.xlane.xlu0 %1948  ;;  %v1995_v16 = vmul.f32 %v5349_v21, %v6360_v52  ;;  %v5351_v2 = vpop.eup %5350 }
 0x5f1   : > { %5360 = vrcp.f32 %v1949_v11  ;;  %v1952_v38 = vpop.xlane.xlu1 %1951  ;;  %v1996_v3 = vmul.f32 %v5351_v2, %v6362_v57 }
 0x5f2   : > { %v2011_v44 = vpack.c.bf16 %v1995_v16, %v1994_v25  ;;  %5362 = vrcp.f32 %v1952_v38 }
 0x5f3   : > { %v5353_v6 = vpop.eup %5352 }
 0x5f4   : > { %4920 = vmatmul.mubr.msk.bf16.gmra.mrb[28].mxu0 %vm1787_vm2, %v2011_v44  ;;  %v1955_v40 = vpop.xlane.xlu0 %1954  ;;  %v1997_v53 = vmul.f32 %v5353_v6, %v6370_v12  ;;  %v5355_v49 = vpop.eup %5354 }
 0x5f5   : > { %5364 = vrcp.f32 %v1955_v40  ;;  %v1958_v50 = vpop.xlane.xlu1 %1957  ;;  %v1998_v19 = vmul.f32 %v5355_v49, %v6372_v36 }
 0x5f6   : > { %v2012_v37 = vpack.c.bf16 %v1997_v53, %v1996_v3  ;;  %5366 = vrcp.f32 %v1958_v50 }
 0x5f7   : > { %v5357_v31 = vpop.eup %5356 }
 0x5f8   : > { %4923 = vmatprep.mubr.msk.bf16.mxu0 %vm1787_vm2, %v2012_v37  ;;  %v1961_v52 = vpop.xlane.xlu0 %1960  ;;  %v1999_v39 = vmul.f32 %v5357_v31, %v6380_v46  ;;  %v5359_v48 = vpop.eup %5358 }
 0x5f9   : > { %5368 = vrcp.f32 %v1961_v52  ;;  %v1964_v23 = vpop.xlane.xlu1 %1963  ;;  %v2000_v54 = vmul.f32 %v5359_v48, %v6382_v45 }
 0x5fa   : > { %v2013_v51 = vpack.c.bf16 %v1999_v39, %v1998_v19  ;;  %5370 = vrcp.f32 %v1964_v23 }
 0x5fb   : > { %v5361_v57 = vpop.eup %5360 }
 0x5fc   : > { %4924 = vmatmul.mubr.msk.bf16.gmra.mrb[32].mxu0 %vm1787_vm2, %v2013_v51  ;;  %v1967_v12 = vpop.xlane.xlu0 %1966  ;;  %v2001_v47 = vmul.f32 %v5361_v57, %v6389_v62  ;;  %v5363_v56 = vpop.eup %5362 }
 0x5fd   : > { %5372 = vrcp.f32 %v1967_v12  ;;  %v2002_v36 = vmul.f32 %v5363_v56, %v6391_v18 }
 0x5fe   : > { %v2014_v21 = vpack.c.bf16 %v2001_v47, %v2000_v54 }
 0x5ff   : > { %v5365_v11 = vpop.eup %5364 }
 0x600   : > { %4927 = vmatprep.mubr.msk.bf16.mxu0 %vm1787_vm2, %v2014_v21  ;;  %v2003_v46 = vmul.f32 %v5365_v11, %v6397_v20  ;;  %v5367_v25 = vpop.eup %5366  ;;  %v5577_v20 = vmov 0.0  }
 0x601   : > { %v2004_v38 = vmul.f32 %v5367_v25, %v6399_v17  ;;  %4935 = vmatprep.subr.bf16.mxu1 %v5577_v20  ;;  %v5236_v17 = vld [vmem:[%s7445_s10] sm:$0xff]   ;;  %4955 = vmatprep.subr.bf16.mxu0 %v5577_v20 }
 0x602   : > { %v2015_v16 = vpack.c.bf16 %v2003_v46, %v2002_v36  ;;  %4936 = vmatpush3.bf16.msra.mxu1 %v5236_v17  ;;  %4943 = vmatprep.mubr.msk.bf16.mxu1 %vm5578_vm3, %v5577_v20 }
 0x603   : > { %v5369_v2 = vpop.eup %5368  ;;  %4937 = vmatprep.subr.bf16.mxu1 %v5577_v20 }
 0x604   : > { %4928 = vmatmul.mubr.msk.bf16.gmra.mrb[36].mxu0 %vm1787_vm2, %v2015_v16  ;;  %v2005_v45 = vmul.f32 %v5369_v2, %v6405_v28  ;;  %v5371_v62 = vpop.eup %5370  ;;  %v5237_v28 = vld [vmem:[%s7445_s10 + $0x8] sm:$0xff]  }
 0x605   : > { %v2006_v40 = vmul.f32 %v5371_v62, %v6407_v0  ;;  %v5238_v0 = vld [vmem:[%s7445_s10 + $0x10] sm:$0xff]  }
 0x606   : > { %v2016_v44 = vpack.c.bf16 %v2005_v45, %v2004_v38  ;;  %4938 = vmatpush3.bf16.msra.mxu1 %v5237_v28 }
 0x607   : > { %v5373_v6 = vpop.eup %5372  ;;  %4939 = vmatprep.subr.bf16.mxu1 %v5577_v20 }
 0x608   : > { %4931 = vmatprep.mubr.msk.bf16.mxu0 %vm1787_vm2, %v2016_v44  ;;  %v2007_v18 = vmul.f32 %v5373_v6, %v6413_v29  ;;  %v5239_v29 = vld [vmem:[%s7445_s10 + $0x18] sm:$0xff]  }
 0x60a   : > { %v2017_v3 = vpack.c.bf16 %v2007_v18, %v2006_v40  ;;  %4940 = vmatpush3.bf16.msra.mxu1 %v5238_v0 }
 0x60b   : > { %4941 = vmatprep.subr.bf16.mxu1 %v5577_v20 }
 0x60c   : > { %4932 = vmatmul.mubr.msk.bf16.gmra.mrb[40].mxu0 %vm1787_vm2, %v2017_v3 }
 0x60d   : > { %4963 = vmatprep.mubr.msk.bf16.mxu0 %vm5578_vm3, %v5577_v20 }
 0x60e   : > { %4942 = vmatpush3.bf16.msra.mxu1 %v5239_v29 }
 0x60f   : > { %4975 = vmatprep.subr.bf16.mxu1 %v5577_v20 }
 0x6bf   : > { %v4917_v53 = vpop.f32.mrb[24].mxu0 }
 0x6c0   : > { %v2089_v49 = vpop.f32.mrb[25].mxu0  ;;  %v2170_v23 = vmul.f32 %v4917_v53, %v6064_v33 }
 0x6c1   : > { %v4918_v50 = vpop.f32.mrb[26].mxu0  ;;  %v2168_v54 = vmul.f32 %v2089_v49, %v6007_v5 }
 0x6c2   : > { %v2092_v37 = vpop.f32.mrb[27].mxu0 }
 0x6c3   : > { %v2169_v52 = vmul.f32 %v2092_v37, %v6012_v7 }
 0x6c7   : > { %v4921_v31 = vpop.f32.mrb[28].mxu0 }
 0x6c8   : > { %v2174_v19 = vmul.f32 %v4921_v31, %v6044_v26  ;;  %v2105_v39 = vpop.f32.mrb[29].mxu0  ;;  %v2171_v26 = vmul.f32 %v4918_v50, %v6069_v35 }
 0x6c9   : > { %v4922_v48 = vpop.f32.mrb[30].mxu0  ;;  %v2172_v2 = vmul.f32 %v2105_v39, %v6122_v1 }
 0x6ca   : > { %v2189_v51 = vadd.f32 %v2174_v19, %v2169_v52  ;;  %v2175_v57 = vmul.f32 %v4922_v48, %v6049_v27  ;;  %v2108_v12 = vpop.f32.mrb[31].mxu0 }
 0x6cb   : > { %v2173_v47 = vmul.f32 %v2108_v12, %v6107_v55 }
 0x6cc   : > { %v2190_v56 = vadd.f32 %v2175_v57, %v2170_v23 }
 0x6cd   : > { %v2188_v21 = vadd.f32 %v2173_v47, %v2168_v54 }
 0x6cf   : > { %v4925_v11 = vpop.f32.mrb[32].mxu0 }
 0x6d0   : > { %v2178_v36 = vmul.f32 %v4925_v11, %v6017_v8  ;;  %v2121_v7 = vpop.f32.mrb[33].mxu0 }
 0x6d1   : > { %v2176_v46 = vmul.f32 %v2121_v7, %v6112_v58  ;;  %v4926_v25 = vpop.f32.mrb[34].mxu0 }
 0x6d2   : > { %v2193_v33 = vadd.f32 %v2188_v21, %v2178_v36  ;;  %v2179_v16 = vmul.f32 %v4926_v25, %v6022_v9  ;;  %v2124_v27 = vpop.f32.mrb[35].mxu0 }
 0x6d3   : > { %v2191_v5 = vadd.f32 %v2176_v46, %v2171_v26  ;;  %v2177_v55 = vmul.f32 %v2124_v27, %v6127_v4 }
 0x6d4   : > { %v2194_v38 = vadd.f32 %v2189_v51, %v2179_v16 }
 0x6d5   : > { %v2192_v45 = vadd.f32 %v2177_v55, %v2172_v2 }
 0x6d7   : > { %v4929_v62 = vpop.f32.mrb[36].mxu0 }
 0x6d8   : > { %v2182_v8 = vmul.f32 %v4929_v62, %v6132_v10  ;;  %v2137_v44 = vpop.f32.mrb[37].mxu0 }
 0x6d9   : > { %v2180_v35 = vmul.f32 %v2137_v44, %v6081_v41  ;;  %v4930_v6 = vpop.f32.mrb[38].mxu0 }
 0x6da   : > { %v2197_v58 = vadd.f32 %v2192_v45, %v2182_v8  ;;  %v2183_v40 = vmul.f32 %v4930_v6, %v6117_v59  ;;  %v2140_v18 = vpop.f32.mrb[39].mxu0  ;;  %v6491_v59 = vld [vmem:[%s7478_s0 + $0x88] sm:$0xff] }
 0x6db   : > { %v2195_v9 = vadd.f32 %v2190_v56, %v2180_v35  ;;  %v2181_v3 = vmul.f32 %v2140_v18, %v6086_v43 }
 0x6dc   : > { %v2198_v1 = vadd.f32 %v2193_v33, %v2183_v40 }
 0x6dd   : > { %v2196_v17 = vadd.f32 %v2191_v5, %v2181_v3 }
 0x6df   : > { %v4933_v28 = vpop.f32.mrb[40].mxu0 }
 0x6e0   : > { %v2186_v4 = vmul.f32 %v4933_v28, %v6138_v14  ;;  %v2153_v0 = vpop.f32.mrb[41].mxu0 }
 0x6e1   : > { %v2184_v29 = vmul.f32 %v2153_v0, %v6056_v30  ;;  %v4934_v10 = vpop.f32.mrb[42].mxu0 }
 0x6e2   : > { %v2201_v53 = vadd.f32 %v2196_v17, %v2186_v4  ;;  %v2187_v41 = vmul.f32 %v4934_v10, %v6143_v15  ;;  %v2156_v49 = vpop.f32.mrb[43].mxu0  ;;  %v4529_v15 = vld [vmem:[%s7446_s11] ss:$0 sm:$0xff] }
 0x6e3   : > { %v2199_v50 = vadd.f32 %v2194_v38, %v2184_v29  ;;  %v2185_v43 = vmul.f32 %v6491_v59, %v2156_v49  ;;  %v5240_v38 = vld [vmem:[%s7449_s14] sm:$0xff]  }
 0x6e4   : > { %v2202_v37 = vadd.f32 %v2197_v58, %v2187_v41  ;;  %4956 = vmatpush3.bf16.msra.mxu0 %v5240_v38 }
 0x6e5   : > { %v2211_v31 = vpack.c.bf16 %v2199_v50, %v2198_v1  ;;  %v2200_v52 = vadd.f32 %v2195_v9, %v2185_v43  ;;  %4957 = vmatprep.subr.bf16.mxu0 %v5577_v20 }
 0x6e6   : > { %v2213_v30 = vpack.c.bf16 %v2202_v37, %v2202_v37 }
 0x6e7   : > { %v2212_v14 = vpack.c.bf16 %v2201_v53, %v2200_v52  ;;  %4944 = vmatmul.mubr.msk.bf16.vlgmr.msra.gmra.mrb[44].mxu1 %vm1335_vm0, %v2211_v31  ;;  %v5241_v31 = vld [vmem:[%s7449_s14 + $0x8] sm:$0xff]   ;;  %v5242_v52 = vld [vmem:[%s7449_s14 + $0x10] sm:$0xff]  }
 0x6e8   : > { %4947 = vmatprep.mubr.msk.bf16.mxu1 %vm5578_vm3, %v5577_v20  ;;  %4958 = vmatpush3.bf16.msra.mxu0 %v5241_v31 }
 0x6e9   : > { %4959 = vmatprep.subr.bf16.mxu0 %v5577_v20 }
 0x6ec   : > { %4960 = vmatpush3.bf16.msra.mxu0 %v5242_v52 }
 0x6ed   : > { %4961 = vmatprep.subr.bf16.mxu0 %v5577_v20 }
 0x6ef   : > { %4948 = vmatmul.mubr.msk.bf16.gmra.mrb[48].mxu1 %vm1335_vm0, %v2212_v14  ;;  %v5243_v14 = vld [vmem:[%s7449_s14 + $0x18] sm:$0xff]  }
 0x6f0   : > { %4951 = vmatprep.mubr.msk.bf16.mxu1 %vm5578_vm3, %v5577_v20  ;;  %4962 = vmatpush3.bf16.msra.mxu0 %v5243_v14 }
 0x6f7   : > { %4952 = vmatmul.mubr.msk.bf16.gmra.mrb[52].mxu1 %vm1335_vm0, %v2213_v30 }
 0x6f8   : > { %4991 = vmatprep.mubr.msk.bf16.mxu1 %vm5578_vm3, %v5577_v20 }
 0x7ba   : > { %v2286_v19 = vpop.f32.mrb[44].mxu1 }
 0x7bb   : > { %v2287_v39 = vadd.f32 %v4529_v15, %v2286_v19  ;;  %v4945_v48 = vpop.f32.mrb[45].mxu1 }
 0x7bc   : > { %v2289_v23 = vpop.f32.mrb[46].mxu1 }
 0x7bd   : > { %v6507_v51 = vadd.f32 %v2287_v39, %v5900_v22  ;;  %v2290_v57 = vadd.f32 %v4529_v15, %v2289_v23  ;;  %v4946_v12 = vpop.f32.mrb[47].mxu1 }
 0x7bf   : > { %v6510_v54 = vadd.f32 %v2290_v57, %v5902_v24  ;;  %v2315_v47 = vsel %vm1335_vm0, %v6507_v51, 0.0 }
 0x7c0   : > { %2316 = vadd.xlane.f32.xlu1 %v2315_v47 }
 0x7c1   : > { %v2318_v56 = vsel %vm1335_vm0, %v6510_v54, 0.0 }
 0x7c2   : > { %2319 = vadd.xlane.f32.xlu0 %v2318_v56  ;;  %v2294_v21 = vpop.f32.mrb[48].mxu1 }
 0x7c3   : > { %v2295_v11 = vadd.f32 %v4529_v15, %v2294_v21  ;;  %v4949_v36 = vpop.f32.mrb[49].mxu1 }
 0x7c4   : > { %v2297_v7 = vpop.f32.mrb[50].mxu1 }
 0x7c5   : > { %v6517_v22 = vadd.f32 %v2295_v11, %v5908_v32  ;;  %v2298_v26 = vadd.f32 %v4529_v15, %v2297_v7  ;;  %v4950_v46 = vpop.f32.mrb[51].mxu1  ;;  %v4537_v7 = vld [vmem:[%s7447_s12] ss:$0 sm:$0xff] }
 0x7c7   : > { %v6520_v24 = vadd.f32 %v2298_v26, %v5910_v34  ;;  %v2321_v25 = vsel %vm1335_vm0, %v6517_v22, 0.0 }
 0x7c8   : > { %2322 = vadd.xlane.f32.xlu1 %v2321_v25 }
 0x7c9   : > { %v2324_v33 = vsel %vm1335_vm0, %v6520_v24, 0.0 }
 0x7ca   : > { %2325 = vadd.xlane.f32.xlu0 %v2324_v33  ;;  %v2302_v16 = vpop.f32.mrb[52].mxu1 }
 0x7cb   : > { %v2303_v27 = vadd.f32 %v4529_v15, %v2302_v16  ;;  %v4953_v2 = vpop.f32.mrb[53].mxu1 }
 0x7cc   : > { %v2305_v5 = vpop.f32.mrb[54].mxu1  ;;  %v4538_v2 = vld [vmem:[%s7448_s13] ss:$0 sm:$0xff] }
 0x7cd   : > { %v6527_v32 = vadd.f32 %v2303_v27, %v5916_v42  ;;  %v4954_v55 = vpop.f32.mrb[55].mxu1 }
 0x7cf   : > { %v2327_v34 = vsel %vm1335_vm0, %v6527_v32, 0.0 }
 0x7d0   : > { %2328 = vadd.xlane.f32.xlu1 %v2327_v34 }
 0x84d   : > { %v2317_v45 = vpop.xlane.xlu1 %2316 }
 0x84e   : > { %v2330_v62 = vmul.f32 0.015625, %v2317_v45 }
 0x84f   : > { %v2320_v8 = vpop.xlane.xlu0 %2319 }
 0x850   : > { %v2335_v44 = vsub.f32 %v6507_v51, %v2330_v62  ;;  %v2331_v35 = vmul.f32 0.015625, %v2320_v8 }
 0x852   : > { %v2336_v42 = vsub.f32 %v6510_v54, %v2331_v35  ;;  %v2340_v6 = vmul.f32 %v2335_v44, %v2335_v44 }
 0x854   : > { %v2345_v58 = vsel %vm1335_vm0, %v2340_v6, 0.0  ;;  %v2341_v40 = vmul.f32 %v2336_v42, %v2336_v42 }
 0x855   : > { %v2323_v18 = vpop.xlane.xlu1 %2322  ;;  %2346 = vadd.xlane.f32.xlu0 %v2345_v58 }
 0x856   : > { %v2332_v9 = vmul.f32 0.015625, %v2323_v18  ;;  %v2348_v3 = vsel %vm1335_vm0, %v2341_v40, 0.0 }
 0x857   : > { %v2326_v1 = vpop.xlane.xlu0 %2325  ;;  %2349 = vadd.xlane.f32.xlu1 %v2348_v3 }
 0x858   : > { %v2337_v17 = vsub.f32 %v6517_v22, %v2332_v9  ;;  %v2333_v28 = vmul.f32 0.015625, %v2326_v1 }
 0x85a   : > { %v2338_v4 = vsub.f32 %v6520_v24, %v2333_v28  ;;  %v2342_v0 = vmul.f32 %v2337_v17, %v2337_v17 }
 0x85c   : > { %v2351_v29 = vsel %vm1335_vm0, %v2342_v0, 0.0  ;;  %v2343_v10 = vmul.f32 %v2338_v4, %v2338_v4  ;;  %v5245_v0 = vld [vmem:[%s7451_s16 + $0x8] sm:$0xff]  }
 0x85d   : > { %2352 = vadd.xlane.f32.xlu0 %v2351_v29  ;;  %v2329_v53 = vpop.xlane.xlu1 %2328  ;;  %v5246_v29 = vld [vmem:[%s7451_s16 + $0x10] sm:$0xff]  }
 0x85e   : > { %v2334_v41 = vmul.f32 0.015625, %v2329_v53  ;;  %v2354_v49 = vsel %vm1335_vm0, %v2343_v10, 0.0  ;;  %v5247_v10 = vld [vmem:[%s7451_s16 + $0x18] sm:$0xff]   ;;  %v5248_v53 = vld [vmem:[%s7451_s16 + $0x20] sm:$0xff]  }
 0x85f   : > { %2355 = vadd.xlane.f32.xlu1 %v2354_v49  ;;  %v5250_v49 = vld [vmem:[%s7451_s16 + $0x30] sm:$0xff]  }
 0x860   : > { %v2339_v50 = vsub.f32 %v6527_v32, %v2334_v41  ;;  %v5249_v41 = vld [vmem:[%s7451_s16 + $0x28] sm:$0xff]  }
 0x862   : > { %v2344_v43 = vmul.f32 %v2339_v50, %v2339_v50 }
 0x864   : > { %v2357_v37 = vsel %vm1335_vm0, %v2344_v43, 0.0  ;;  %v4539_v43 = vld [vmem:[%s7450_s15] ss:$0 sm:$0xff] }
 0x865   : > { %2358 = vadd.xlane.f32.xlu0 %v2357_v37 }
 0x8e2   : > { %v2347_v30 = vpop.xlane.xlu0 %2346 }
 0x8e3   : > { %v2360_v15 = vmul.f32 0.015625, %v2347_v30 }
 0x8e4   : > { %v2350_v19 = vpop.xlane.xlu1 %2349 }
 0x8e5   : > { %v2365_v39 = vadd.f32 1e-06, %v2360_v15  ;;  %v2361_v48 = vmul.f32 0.015625, %v2350_v19 }
 0x8e7   : > { %5374 = vrsqrt.f32 %v2365_v39  ;;  %v2366_v23 = vadd.f32 1e-06, %v2361_v48 }
 0x8e9   : > { %5376 = vrsqrt.f32 %v2366_v23 }
 0x8ea   : > { %v2353_v57 = vpop.xlane.xlu0 %2352 }
 0x8eb   : > { %v2362_v12 = vmul.f32 0.015625, %v2353_v57 }
 0x8ec   : > { %v2356_v47 = vpop.xlane.xlu1 %2355 }
 0x8ed   : > { %v2367_v56 = vadd.f32 1e-06, %v2362_v12  ;;  %v2363_v21 = vmul.f32 0.015625, %v2356_v47 }
 0x8ef   : > { %5378 = vrsqrt.f32 %v2367_v56  ;;  %v2368_v11 = vadd.f32 1e-06, %v2363_v21 }
 0x8f1   : > { %v5375_v36 = vpop.eup %5374  ;;  %5380 = vrsqrt.f32 %v2368_v11 }
 0x8f2   : > { %v2375_v26 = vmul.f32 %v5375_v36, %v2335_v44  ;;  %v2359_v46 = vpop.xlane.xlu0 %2358 }
 0x8f3   : > { %v5377_v25 = vpop.eup %5376  ;;  %v2364_v33 = vmul.f32 0.015625, %v2359_v46 }
 0x8f4   : > { %v2384_v16 = vmul.f32 %v4537_v7, %v2375_v26  ;;  %v2376_v27 = vmul.f32 %v5377_v25, %v2336_v42 }
 0x8f5   : > { %v2369_v5 = vadd.f32 1e-06, %v2364_v33 }
 0x8f6   : > { %v2385_v55 = vmul.f32 %v4537_v7, %v2376_v27  ;;  %v2393_v34 = vadd.f32 %v4538_v2, %v2384_v16 }
 0x8f7   : > { %5382 = vrsqrt.f32 %v2369_v5 }
 0x8f8   : > { %v2394_v38 = vadd.f32 %v4538_v2, %v2385_v55 }
 0x8f9   : > { %v5379_v45 = vpop.eup %5378 }
 0x8fa   : > { %v2377_v62 = vmul.f32 %v5379_v45, %v2337_v17  ;;  %v2406_v8 = vpack.c.bf16 %v2394_v38, %v2393_v34 }
 0x8fb   : > { %v5381_v35 = vpop.eup %5380 }
 0x8fc   : > { %v2378_v6 = vmul.f32 %v5381_v35, %v2338_v4  ;;  %4964 = vmatmul.mubr.msk.bf16.vlgmr.msra.gmra.mrb[44].mxu0 %vm1335_vm0, %v2406_v8  ;;  %v2386_v44 = vmul.f32 %v4537_v7, %v2377_v62  ;;  %v5244_v4 = vld [vmem:[%s7451_s16] sm:$0xff]  }
 0x8fd   : > { %4967 = vmatprep.mubr.msk.bf16.mxu0 %vm5578_vm3, %v5577_v20  ;;  %4976 = vmatpush3.bf16.msra.mxu1 %v5244_v4 }
 0x8fe   : > { %v2387_v42 = vmul.f32 %v4537_v7, %v2378_v6  ;;  %v2395_v58 = vadd.f32 %v4538_v2, %v2386_v44  ;;  %4977 = vmatprep.subr.bf16.mxu1 %v5577_v20 }
 0x900   : > { %v2396_v40 = vadd.f32 %v4538_v2, %v2387_v42 }
 0x901   : > { %v5383_v18 = vpop.eup %5382  ;;  %4978 = vmatpush3.bf16.msra.mxu1 %v5245_v0 }
 0x902   : > { %v2407_v9 = vpack.c.bf16 %v2396_v40, %v2395_v58  ;;  %v2379_v3 = vmul.f32 %v5383_v18, %v2339_v50  ;;  %4979 = vmatprep.subr.bf16.mxu1 %v5577_v20  ;;  %v5251_v50 = vld [vmem:[%s7451_s16 + $0x38] sm:$0xff]  }
 0x904   : > { %4968 = vmatmul.mubr.msk.bf16.gmra.mrb[48].mxu0 %vm1335_vm0, %v2407_v9  ;;  %v2388_v1 = vmul.f32 %v4537_v7, %v2379_v3 }
 0x905   : > { %4971 = vmatprep.mubr.msk.bf16.mxu0 %vm5578_vm3, %v5577_v20  ;;  %4980 = vmatpush3.bf16.msra.mxu1 %v5246_v29 }
 0x906   : > { %v2397_v17 = vadd.f32 %v4538_v2, %v2388_v1  ;;  %4981 = vmatprep.subr.bf16.mxu1 %v5577_v20 }
 0x908   : > { %v2408_v28 = vpack.c.bf16 %v2397_v17, %v2397_v17 }
 0x909   : > { %4982 = vmatpush3.bf16.msra.mxu1 %v5247_v10 }
 0x90a   : > { %4983 = vmatprep.subr.bf16.mxu1 %v5577_v20 }
 0x90c   : > { %4972 = vmatmul.mubr.msk.bf16.gmra.mrb[52].mxu0 %vm1335_vm0, %v2408_v28 }
 0x90d   : > { %2957 = vmatprep.mubr.bf16.mxu0 %v5575_v13  ;;  %4984 = vmatpush3.bf16.msra.mxu1 %v5248_v53 }
 0x90e   : > { %4985 = vmatprep.subr.bf16.mxu1 %v5577_v20 }
 0x911   : > { %4986 = vmatpush3.bf16.msra.mxu1 %v5249_v41 }
 0x912   : > { %4987 = vmatprep.subr.bf16.mxu1 %v5577_v20 }
 0x915   : > { %4988 = vmatpush3.bf16.msra.mxu1 %v5250_v49 }
 0x916   : > { %4989 = vmatprep.subr.bf16.mxu1 %v5577_v20 }
 0x919   : > { %4990 = vmatpush3.bf16.msra.mxu1 %v5251_v50 }
 0x9cf   : > { %v2481_v37 = vpop.f32.mrb[44].mxu0 }
 0x9d0   : > { %v6604_v31 = vadd.f32 %v4539_v43, %v2481_v37  ;;  %v4965_v52 = vpop.f32.mrb[45].mxu0 }
 0x9d1   : > { %v2484_v14 = vpop.f32.mrb[46].mxu0 }
 0x9d2   : > { %v6607_v30 = vmul.f32 0.70710677, %v6604_v31  ;;  %v6609_v15 = vadd.f32 %v4539_v43, %v2484_v14  ;;  %v4966_v19 = vpop.f32.mrb[47].mxu0 }
 0x9d4   : > { %v2513_v39 = vand.u32 2147483647, %v6607_v30  ;;  %v6613_v48 = vmul.f32 0.70710677, %v6609_v15  ;;  %vm2608_vm4 = vcmp.ge.f32.partialorder %v6607_v30, 0.0  ;;  %v2504_v30 = vmul.f32 0.5, %v6609_v15 }
 0x9d6   : > { %v2518_v23 = vmul.f32 0.3275911, %v2513_v39  ;;  %v2514_v57 = vand.u32 2147483647, %v6613_v48  ;;  %v2578_v5 = vsub.f32 0.0, %v2513_v39  ;;  %vm2609_vm5 = vcmp.ge.f32.partialorder %v6613_v48, 0.0 }
 0x9d7   : > { %v2489_v12 = vpop.f32.mrb[48].mxu0 }
 0x9d8   : > { %v2523_v47 = vadd.f32 1.0, %v2518_v23  ;;  %v2519_v56 = vmul.f32 0.3275911, %v2514_v57  ;;  %v4969_v21 = vpop.f32.mrb[49].mxu0  ;;  %v6616_v11 = vadd.f32 %v4539_v43, %v2489_v12  ;;  %v2579_v6 = vsub.f32 0.0, %v2514_v57 }
 0x9d9   : > { %v2492_v36 = vpop.f32.mrb[50].mxu0  ;;  %v2583_v58 = vmul.f32 %v2578_v5, %v2513_v39 }
 0x9da   : > { %5384 = vrcp.f32 %v2523_v47  ;;  %v2524_v7 = vadd.f32 1.0, %v2519_v56  ;;  %v4970_v26 = vpop.f32.mrb[51].mxu0  ;;  %v6619_v46 = vmul.f32 0.70710677, %v6616_v11  ;;  %v6621_v25 = vadd.f32 %v4539_v43, %v2492_v36 }
 0x9db   : > { %v2584_v28 = vmul.f32 %v2579_v6, %v2514_v57  ;;  %v2588_v4 = vmul.f32 1.442695, %v2583_v58 }
 0x9dc   : > { %5386 = vrcp.f32 %v2524_v7  ;;  %v2515_v33 = vand.u32 2147483647, %v6619_v46  ;;  %v6625_v16 = vmul.f32 0.70710677, %v6621_v25  ;;  %vm2610_vm6 = vcmp.ge.f32.partialorder %v6619_v46, 0.0 }
 0x9dd   : > { %v2590_v50 = vmul.f32 1.442695, %v2584_v28 }
 0x9de   : > { %v2520_v27 = vmul.f32 0.3275911, %v2515_v33  ;;  %v2516_v55 = vand.u32 2147483647, %v6625_v16  ;;  %v2580_v53 = vsub.f32 0.0, %v2515_v33  ;;  %vm2611_vm7 = vcmp.ge.f32.partialorder %v6625_v16, 0.0 }
 0x9df   : > { %v2497_v2 = vpop.f32.mrb[52].mxu0 }
 0x9e0   : > { %v6628_v34 = vadd.f32 %v4539_v43, %v2497_v2  ;;  %v4973_v38 = vpop.f32.mrb[53].mxu0  ;;  %v2525_v45 = vadd.f32 1.0, %v2520_v27  ;;  %v2521_v8 = vmul.f32 0.3275911, %v2516_v55  ;;  %v2581_v37 = vsub.f32 0.0, %v2516_v55 }
 0x9e1   : > { %v2500_v62 = vpop.f32.mrb[54].mxu0  ;;  %v2585_v19 = vmul.f32 %v2580_v53, %v2515_v33 }
 0x9e2   : > { %v6631_v35 = vmul.f32 0.70710677, %v6628_v34  ;;  %5388 = vrcp.f32 %v2525_v45  ;;  %v4974_v44 = vpop.f32.mrb[55].mxu0  ;;  %v2526_v40 = vadd.f32 1.0, %v2521_v8  ;;  %v2586_v21 = vmul.f32 %v2581_v37, %v2516_v55 }
 0x9e3   : > { %v2592_v26 = vmul.f32 1.442695, %v2585_v19  ;;  %v2507_v16 = vmul.f32 0.5, %v6628_v34 }
 0x9e4   : > { %v5385_v42 = vpop.eup %5384  ;;  %v2517_v18 = vand.u32 2147483647, %v6631_v35  ;;  %5390 = vrcp.f32 %v2526_v40  ;;  %v2594_v33 = vmul.f32 1.442695, %v2586_v21  ;;  %vm2612_vm8 = vcmp.ge.f32.partialorder %v6631_v35, 0.0 }
 0x9e5   : > { %v2533_v9 = vmul.f32 1.0614054, %v5385_v42 }
 0x9e6   : > { %v2522_v3 = vmul.f32 0.3275911, %v2517_v18  ;;  %v5387_v1 = vpop.eup %5386  ;;  %v2582_v36 = vsub.f32 0.0, %v2517_v18 }
 0x9e7   : > { %v2538_v17 = vadd.f32 -1.4531521, %v2533_v9  ;;  %v2534_v0 = vmul.f32 1.0614054, %v5387_v1 }
 0x9e8   : > { %v2527_v29 = vadd.f32 1.0, %v2522_v3  ;;  %v2587_v44 = vmul.f32 %v2582_v36, %v2517_v18 }
 0x9e9   : > { %v2543_v10 = vmul.f32 %v5385_v42, %v2538_v17  ;;  %v2539_v41 = vadd.f32 -1.4531521, %v2534_v0 }
 0x9ea   : > { %5392 = vrcp.f32 %v2527_v29  ;;  %v2596_v53 = vmul.f32 1.442695, %v2587_v44 }
 0x9eb   : > { %v2548_v49 = vadd.f32 1.4214138, %v2543_v10  ;;  %5394 = vpow2.f32 %v2588_v4  ;;  %v2544_v43 = vmul.f32 %v5387_v1, %v2539_v41 }
 0x9ec   : > { %v5389_v52 = vpop.eup %5388  ;;  %5396 = vpow2.f32 %v2590_v50 }
 0x9ed   : > { %v2553_v14 = vmul.f32 %v5385_v42, %v2548_v49  ;;  %v2549_v39 = vadd.f32 1.4214138, %v2544_v43  ;;  %v2535_v23 = vmul.f32 1.0614054, %v5389_v52  ;;  %5398 = vpow2.f32 %v2592_v26 }
 0x9ee   : > { %v5391_v57 = vpop.eup %5390  ;;  %5400 = vpow2.f32 %v2594_v33 }
 0x9ef   : > { %v2558_v12 = vadd.f32 -0.28449672, %v2553_v14  ;;  %v2554_v47 = vmul.f32 %v5387_v1, %v2549_v39  ;;  %v2540_v56 = vadd.f32 -1.4531521, %v2535_v23  ;;  %v2536_v27 = vmul.f32 1.0614054, %v5391_v57 }
 0x9f0   : > { %5402 = vpow2.f32 %v2596_v53  ;;  %v2506_v53 = vmul.f32 0.5, %v6621_v25 }
 0x9f1   : > { %v2563_v7 = vmul.f32 %v5385_v42, %v2558_v12  ;;  %v2559_v2 = vadd.f32 -0.28449672, %v2554_v47  ;;  %v2545_v5 = vmul.f32 %v5389_v52, %v2540_v56  ;;  %v2541_v45 = vadd.f32 -1.4531521, %v2536_v27 }
 0x9f3   : > { %v2568_v38 = vadd.f32 0.2548296, %v2563_v7  ;;  %v2564_v8 = vmul.f32 %v5387_v1, %v2559_v2  ;;  %v2550_v6 = vadd.f32 1.4214138, %v2545_v5  ;;  %v2546_v40 = vmul.f32 %v5391_v57, %v2541_v45 }
 0x9f4   : > { %v5393_v62 = vpop.eup %5392  ;;  %v2503_v2 = vmul.f32 0.5, %v6604_v31 }
 0x9f5   : > { %v2573_v58 = vmul.f32 %v5385_v42, %v2568_v38  ;;  %v2537_v9 = vmul.f32 1.0614054, %v5393_v62  ;;  %v5395_v3 = vpop.eup %5394  ;;  %v2569_v17 = vadd.f32 0.2548296, %v2564_v8  ;;  %v2555_v55 = vmul.f32 %v5389_v52, %v2550_v6 }
 0x9f6   : > { %v2551_v4 = vadd.f32 1.4214138, %v2546_v40  ;;  %v5397_v41 = vpop.eup %5396 }
 0x9f7   : > { %v2598_v28 = vmul.f32 %v5395_v3, %v2573_v58  ;;  %v2542_v0 = vadd.f32 -1.4531521, %v2537_v9  ;;  %v2574_v29 = vmul.f32 %v5387_v1, %v2569_v17  ;;  %v2560_v10 = vadd.f32 -0.28449672, %v2555_v55  ;;  %v5399_v36 = vpop.eup %5398 }
 0x9f8   : > { %v2556_v50 = vmul.f32 %v5391_v57, %v2551_v4  ;;  %v5401_v33 = vpop.eup %5400 }
 0x9f9   : > { %v2603_v49 = vsub.f32 1.0, %v2598_v28  ;;  %v2547_v43 = vmul.f32 %v5393_v62, %v2542_v0  ;;  %v2599_v37 = vmul.f32 %v5397_v41, %v2574_v29  ;;  %v2565_v18 = vmul.f32 %v5389_v52, %v2560_v10 }
 0x9fa   : > { %v2561_v14 = vadd.f32 -0.28449672, %v2556_v50  ;;  %v5403_v31 = vpop.eup %5402  ;;  %v2505_v10 = vmul.f32 0.5, %v6616_v11  ;;  %v4547_v11 = vld [vmem:[%s7452_s17] ss:$0 sm:$0xff] }
 0x9fb   : > { %v2613_v42 = vsub.f32 0.0, %v2603_v49  ;;  %v2552_v19 = vadd.f32 1.4214138, %v2547_v43  ;;  %v2604_v39 = vsub.f32 1.0, %v2599_v37  ;;  %v2570_v23 = vadd.f32 0.2548296, %v2565_v18 }
 0x9fc   : > { %v2566_v47 = vmul.f32 %v5391_v57, %v2561_v14 }
 0x9fd   : > { %v2618_v12 = vsel %vm2608_vm4, %v2603_v49, %v2613_v42  ;;  %v2557_v1 = vmul.f32 %v5393_v62, %v2552_v19  ;;  %v2614_v56 = vsub.f32 0.0, %v2604_v39  ;;  %v2575_v21 = vmul.f32 %v5389_v52, %v2570_v23 }
 0x9fe   : > { %v2623_v7 = vadd.f32 1.0, %v2618_v12  ;;  %v2571_v26 = vadd.f32 0.2548296, %v2566_v47 }
 0x9ff   : > { %v2562_v27 = vadd.f32 -0.28449672, %v2557_v1  ;;  %v2619_v5 = vsel %vm2609_vm5, %v2604_v39, %v2614_v56  ;;  %v2600_v38 = vmul.f32 %v5399_v36, %v2575_v21 }
 0xa00   : > { %v2624_v45 = vadd.f32 1.0, %v2619_v5  ;;  %v2576_v8 = vmul.f32 %v5391_v57, %v2571_v26  ;;  %v2628_v58 = vmul.f32 %v2623_v7, %v2503_v2 }
 0xa01   : > { %v2567_v6 = vmul.f32 %v5393_v62, %v2562_v27  ;;  %v2605_v44 = vsub.f32 1.0, %v2600_v38 }
 0xa02   : > { %v2629_v40 = vmul.f32 %v2624_v45, %v2504_v30  ;;  %v2601_v52 = vmul.f32 %v5401_v33, %v2576_v8 }
 0xa03   : > { %v2572_v9 = vadd.f32 0.2548296, %v2567_v6  ;;  %v2615_v3 = vsub.f32 0.0, %v2605_v44 }
 0xa04   : > { %v2649_v17 = vpack.c.bf16 %v2629_v40, %v2628_v58  ;;  %v2606_v48 = vsub.f32 1.0, %v2601_v52 }
 0xa05   : > { %v2577_v55 = vmul.f32 %v5393_v62, %v2572_v9  ;;  %v2620_v28 = vsel %vm2610_vm6, %v2605_v44, %v2615_v3 }
 0xa06   : > { %v2616_v4 = vsub.f32 0.0, %v2606_v48  ;;  %4992 = vmatmul.mubr.bf16.vlgmr.msra.gmra.mrb[56].mxu1 %v2649_v17  ;;  %v2625_v0 = vadd.f32 1.0, %v2620_v28 }
 0xa07   : > { %v2602_v15 = vmul.f32 %v5403_v31, %v2577_v55  ;;  %4995 = vmatprep.mubr.msk.bf16.mxu1 %vm5578_vm3, %v5577_v20 }
 0xa08   : > { %v2621_v57 = vsel %vm2611_vm7, %v2606_v48, %v2616_v4  ;;  %v2630_v62 = vmul.f32 %v2625_v0, %v2505_v10 }
 0xa09   : > { %v2607_v29 = vsub.f32 1.0, %v2602_v15  ;;  %v2626_v46 = vadd.f32 1.0, %v2621_v57 }
 0xa0b   : > { %v2617_v41 = vsub.f32 0.0, %v2607_v29  ;;  %v2631_v49 = vmul.f32 %v2626_v46, %v2506_v53 }
 0xa0d   : > { %v2622_v50 = vsel %vm2612_vm8, %v2607_v29, %v2617_v41  ;;  %v2650_v43 = vpack.c.bf16 %v2631_v49, %v2630_v62 }
 0xa0e   : > { %v2627_v37 = vadd.f32 1.0, %v2622_v50 }
 0xa0f   : > { %4996 = vmatmul.mubr.bf16.gmra.mrb[60].mxu1 %v2650_v43  ;;  %v5254_v43 = vld [vmem:[%s7443_s8 + $0x44] ss:$8 sps:$4 sm:$0xff]  }
 0xa10   : > { %4999 = vmatprep.mubr.msk.bf16.mxu1 %vm5578_vm3, %v5577_v20  ;;  %v2632_v18 = vmul.f32 %v2627_v37, %v2507_v16  ;;  %v5252_v37 = vld [vmem:[%s7443_s8 + $0x40] ss:$8 sps:$4 sm:$0xff]   ;;  %2925 = vmatprep.subr.bf16.mxu0 %v5254_v43  ;;  %v5257_v16 = vld [vmem:[%s7443_s8 + $0x54] ss:$8 sps:$4 sm:$0xff]  }
 0xa11   : > { %2926 = vmatpush1.bf16.msra.mxu0 %v5252_v37 }
 0xa12   : > { %v2651_v42 = vpack.c.bf16 %v2632_v18, %v2632_v18  ;;  %v5255_v18 = vld [vmem:[%s7443_s8 + $0x50] ss:$8 sps:$4 sm:$0xff]   ;;  %2927 = vmatprep.subr.bf16.mxu0 %v5257_v16 }
 0xa15   : > { %2928 = vmatpush1.bf16.msra.mxu0 %v5255_v18 }
 0xa17   : > { %5000 = vmatmul.mubr.bf16.gmra.mrb[64].mxu1 %v2651_v42  ;;  %v5260_v42 = vld [vmem:[%s7443_s8 + $0x64] ss:$8 sps:$4 sm:$0xff]  }
 0xa18   : > { %2929 = vmatprep.subr.bf16.mxu0 %v5260_v42 }
 0xad9   : > { %v2739_v25 = vpop.f32.mrb[56].mxu1 }
 0xada   : > { %v2740_v14 = vadd.f32 %v4547_v11, %v2739_v25  ;;  %v4993_v19 = vpop.f32.mrb[57].mxu1  ;;  %v5263_v25 = vld [vmem:[%s7443_s8 + $0x74] ss:$8 sps:$4 sm:$0xff]  }
 0xadb   : > { %v2742_v35 = vpop.f32.mrb[58].mxu1 }
 0xadc   : > { %v6652_v39 = vadd.f32 %v2740_v14, %v6507_v51  ;;  %v2743_v23 = vadd.f32 %v4547_v11, %v2742_v35  ;;  %v4994_v34 = vpop.f32.mrb[59].mxu1  ;;  %v5261_v14 = vld [vmem:[%s7443_s8 + $0x70] ss:$8 sps:$4 sm:$0xff]  }
 0xade   : > { %v6655_v12 = vadd.f32 %v2743_v23, %v6510_v54  ;;  %v2768_v47 = vsel %vm1335_vm0, %v6652_v39, 0.0 }
 0xadf   : > { %2769 = vadd.xlane.f32.xlu1 %v2768_v47 }
 0xae0   : > { %v2771_v1 = vsel %vm1335_vm0, %v6655_v12, 0.0 }
 0xae1   : > { %2772 = vadd.xlane.f32.xlu0 %v2771_v1 }
 0xae2   : > { %v2747_v56 = vpop.f32.mrb[60].mxu1 }
 0xae3   : > { %v2748_v21 = vadd.f32 %v4547_v11, %v2747_v56  ;;  %v4997_v36 = vpop.f32.mrb[61].mxu1 }
 0xae4   : > { %v2750_v7 = vpop.f32.mrb[62].mxu1 }
 0xae5   : > { %v6662_v51 = vadd.f32 %v2748_v21, %v6517_v22  ;;  %v2751_v26 = vadd.f32 %v4547_v11, %v2750_v7  ;;  %v4998_v27 = vpop.f32.mrb[63].mxu1 }
 0xae7   : > { %v6665_v54 = vadd.f32 %v2751_v26, %v6520_v24  ;;  %v2774_v2 = vsel %vm1335_vm0, %v6662_v51, 0.0 }
 0xae8   : > { %2775 = vadd.xlane.f32.xlu1 %v2774_v2 }
 0xae9   : > { %v2777_v5 = vsel %vm1335_vm0, %v6665_v54, 0.0 }
 0xaea   : > { %2778 = vadd.xlane.f32.xlu0 %v2777_v5  ;;  %v2755_v38 = vpop.f32.mrb[64].mxu1  ;;  %v4556_v5 = vld [vmem:[%s7477_s6 + $0x1] ss:$0 sm:$0xff] }
 0xaeb   : > { %v2756_v30 = vadd.f32 %v4547_v11, %v2755_v38  ;;  %v5001_v45 = vpop.f32.mrb[65].mxu1  ;;  %v5258_v11 = vld [vmem:[%s7443_s8 + $0x60] ss:$8 sps:$4 sm:$0xff]  }
 0xaec   : > { %v2758_v8 = vpop.f32.mrb[66].mxu1  ;;  %2930 = vmatpush1.bf16.msra.mxu0 %v5258_v11  ;;  %v6753_v11 = vld [vmem:[%s7478_s0] sm:$0xff] }
 0xaed   : > { %v6672_v22 = vadd.f32 %v2756_v30, %v6527_v32  ;;  %v5002_v6 = vpop.f32.mrb[67].mxu1  ;;  %2931 = vmatprep.subr.bf16.mxu0 %v5263_v25 }
 0xaef   : > { %v2780_v24 = vsel %vm1335_vm0, %v6672_v22, 0.0 }
 0xaf0   : > { %2781 = vadd.xlane.f32.xlu1 %v2780_v24  ;;  %2932 = vmatpush1.bf16.msra.mxu0 %v5261_v14  ;;  %v6767_v14 = vld [vmem:[%s7478_s0 + $0x50] sm:$0xff] }
 0xb6c   : > { %v2770_v33 = vpop.xlane.xlu1 %2769 }
 0xb6d   : > { %v2783_v44 = vmul.f32 0.015625, %v2770_v33  ;;  %v4557_v33 = vld [vmem:[%s7442_s7 + $0x1] ss:$0 sm:$0xff] }
 0xb6e   : > { %v2773_v58 = vpop.xlane.xlu0 %2772 }
 0xb6f   : > { %v2788_v40 = vsub.f32 %v6652_v39, %v2783_v44  ;;  %v2784_v52 = vmul.f32 0.015625, %v2773_v58 }
 0xb71   : > { %v6678_v9 = vsub.f32 %v6655_v12, %v2784_v52  ;;  %v2793_v3 = vmul.f32 %v2788_v40, %v2788_v40 }
 0xb73   : > { %v2798_v17 = vsel %vm1335_vm0, %v2793_v3, 0.0  ;;  %v2794_v32 = vmul.f32 %v6678_v9, %v6678_v9 }
 0xb74   : > { %2799 = vadd.xlane.f32.xlu0 %v2798_v17 }
 0xb75   : > { %v2776_v48 = vpop.xlane.xlu1 %2775  ;;  %v2801_v55 = vsel %vm1335_vm0, %v2794_v32, 0.0 }
 0xb76   : > { %v2785_v31 = vmul.f32 0.015625, %v2776_v48  ;;  %2802 = vadd.xlane.f32.xlu1 %v2801_v55 }
 0xb77   : > { %v2779_v28 = vpop.xlane.xlu0 %2778 }
 0xb78   : > { %v6685_v4 = vsub.f32 %v6662_v51, %v2785_v31  ;;  %v2786_v15 = vmul.f32 0.015625, %v2779_v28 }
 0xb7a   : > { %v6688_v0 = vsub.f32 %v6665_v54, %v2786_v15  ;;  %v2795_v57 = vmul.f32 %v6685_v4, %v6685_v4 }
 0xb7c   : > { %v2804_v29 = vsel %vm1335_vm0, %v2795_v57, 0.0  ;;  %v2796_v10 = vmul.f32 %v6688_v0, %v6688_v0 }
 0xb7d   : > { %2805 = vadd.xlane.f32.xlu0 %v2804_v29  ;;  %v2782_v53 = vpop.xlane.xlu1 %2781 }
 0xb7e   : > { %v2787_v46 = vmul.f32 0.015625, %v2782_v53  ;;  %v2807_v41 = vsel %vm1335_vm0, %v2796_v10, 0.0 }
 0xb7f   : > { %2808 = vadd.xlane.f32.xlu1 %v2807_v41 }
 0xb80   : > { %v6697_v62 = vsub.f32 %v6672_v22, %v2787_v46 }
 0xb82   : > { %v2797_v49 = vmul.f32 %v6697_v62, %v6697_v62 }
 0xb84   : > { %v2810_v50 = vsel %vm1335_vm0, %v2797_v49, 0.0 }
 0xb85   : > { %2811 = vadd.xlane.f32.xlu0 %v2810_v50 }
 0xc01   : > { %v2800_v19 = vpop.xlane.xlu0 %2799 }
 0xc02   : > { %v2813_v35 = vmul.f32 0.015625, %v2800_v19 }
 0xc03   : > { %v2803_v23 = vpop.xlane.xlu1 %2802 }
 0xc04   : > { %v2818_v34 = vadd.f32 1e-06, %v2813_v35  ;;  %v2814_v47 = vmul.f32 0.015625, %v2803_v23  ;;  %v6776_v35 = vld [vmem:[%s7478_s0 + $0x58] sm:$0xff] }
 0xc06   : > { %5404 = vrsqrt.f32 %v2818_v34  ;;  %v2819_v1 = vadd.f32 1e-06, %v2814_v47 }
 0xc08   : > { %5406 = vrsqrt.f32 %v2819_v1 }
 0xc0a   : > { %v2806_v56 = vpop.xlane.xlu0 %2805 }
 0xc0b   : > { %v2815_v21 = vmul.f32 0.015625, %v2806_v56 }
 0xc0c   : > { %v2809_v36 = vpop.xlane.xlu1 %2808 }
 0xc0d   : > { %v2820_v7 = vadd.f32 1e-06, %v2815_v21  ;;  %v2816_v26 = vmul.f32 0.015625, %v2809_v36 }
 0xc0f   : > { %5408 = vrsqrt.f32 %v2820_v7  ;;  %v2821_v27 = vadd.f32 1e-06, %v2816_v26 }
 0xc10   : > { %v5405_v2 = vpop.eup %5404 }
 0xc11   : > { %v2828_v38 = vmul.f32 %v5405_v2, %v2788_v40  ;;  %5410 = vrsqrt.f32 %v2821_v27  ;;  %v6788_v2 = vld [vmem:[%s7478_s0 + $0x30] sm:$0xff] }
 0xc12   : > { %v5407_v30 = vpop.eup %5406  ;;  %v2812_v45 = vpop.xlane.xlu0 %2811 }
 0xc13   : > { %v2837_v8 = vmul.f32 %v4556_v5, %v2828_v38  ;;  %v2829_v6 = vmul.f32 %v5407_v30, %v6678_v9  ;;  %v2817_v24 = vmul.f32 0.015625, %v2812_v45  ;;  %v6796_v38 = vld [vmem:[%s7478_s0 + $0x38] sm:$0xff] }
 0xc15   : > { %v2838_v44 = vmul.f32 %v4556_v5, %v2829_v6  ;;  %v2822_v58 = vadd.f32 1e-06, %v2817_v24  ;;  %v2846_v52 = vadd.f32 %v4557_v33, %v2837_v8  ;;  %v6804_v6 = vld [vmem:[%s7478_s0 + $0x80] sm:$0xff] }
 0xc17   : > { %v2847_v3 = vadd.f32 %v4557_v33, %v2838_v44  ;;  %5412 = vrsqrt.f32 %v2822_v58  ;;  %v6815_v44 = vld [vmem:[%s7478_s0 + $0x10] sm:$0xff] }
 0xc19   : > { %v5409_v17 = vpop.eup %5408  ;;  %v2860_v32 = vpack.c.bf16 %v2847_v3, %v2846_v52  ;;  %v6823_v52 = vld [vmem:[%s7478_s0 + $0x18] sm:$0xff] }
 0xc1a   : > { %v2830_v40 = vmul.f32 %v5409_v17, %v6685_v4 }
 0xc1b   : > { %v5411_v48 = vpop.eup %5410  ;;  %4575 = vmatmul.mubr.msk.bf16.vlgmr.msra.gmra.mrb[56].mxu0 %vm1335_vm0, %v2860_v32 }
 0xc1c   : > { %v2831_v55 = vmul.f32 %v5411_v48, %v6688_v0  ;;  %2967 = vmatprep.mubr.bf16.mxu0 %v5575_v13  ;;  %v2839_v9 = vmul.f32 %v4556_v5, %v2830_v40  ;;  %v4566_v0 = vld [vmem:[%s7444_s9 + $0x1] ss:$2 sm:$0x3] }
 0xc1d   : > { %v2869_v41 = vrot.slane %v4566_v0, %v1435_v61  ;;  %v6831_v40 = vld [vmem:[%s7478_s0 + $0x60] sm:$0xff] }
 0xc1e   : > { %v2840_v31 = vmul.f32 %v4556_v5, %v2831_v55  ;;  %v2848_v28 = vadd.f32 %v4557_v33, %v2839_v9  ;;  %v6837_v55 = vld [vmem:[%s7478_s0 + $0x68] sm:$0xff] }
 0xc20   : > { %v2849_v15 = vadd.f32 %v4557_v33, %v2840_v31 }
 0xc21   : > { %v5413_v57 = vpop.eup %5412 }
 0xc22   : > { %v2861_v29 = vpack.c.bf16 %v2849_v15, %v2848_v28  ;;  %v2832_v10 = vmul.f32 %v5413_v57, %v6697_v62  ;;  %v2873_v62 = vrot.slane %v4566_v0, %v1439_v63 }
 0xc24   : > { %4576 = vmatmul.mubr.msk.bf16.gmra.mrb[60].mxu0 %vm1335_vm0, %v2861_v29  ;;  %v2841_v53 = vmul.f32 %v4556_v5, %v2832_v10 }
 0xc25   : > { %2977 = vmatprep.mubr.bf16.mxu0 %v5575_v13 }
 0xc26   : > { %v2850_v4 = vadd.f32 %v4557_v33, %v2841_v53 }
 0xc28   : > { %v2862_v46 = vpack.c.bf16 %v2850_v4, %v2850_v4 }
 0xc2c   : > { %4577 = vmatmul.mubr.msk.bf16.gmra.mrb[64].mxu0 %vm1335_vm0, %v2862_v46  ;;  %v6847_v46 = vld [vmem:[%s7478_s0 + $0x28] sm:$0xff] }
 0xcee   : > { %v2959_v49 = vpop.f32.mrb[56].mxu0 }
 0xcef   : > { %v6748_v50 = vadd.f32 %v2959_v49, %v2869_v41  ;;  %v2961_v43 = vpop.f32.mrb[57].mxu0  ;;  %v6854_v49 = vld [vmem:[%s7478_s0 + $0x40] sm:$0xff] }
 0xcf0   : > { %v2963_v37 = vpop.f32.mrb[58].mxu0  ;;  %v2962_v18 = vadd.f32 %v2961_v43, %v2873_v62 }
 0xcf1   : > { %v2964_v13 = vadd.f32 %v2963_v37, %v2869_v41  ;;  %v2965_v16 = vpop.f32.mrb[59].mxu0  ;;  %v2986_v61 = vmul.f32 %v6753_v11, %v6748_v50  ;;  %v6771_v19 = vmul.f32 %v6767_v14, %v6748_v50  ;;  %v2991_v0 = vmul.f32 %v6847_v46, %v6748_v50 }
 0xcf2   : > { %v2966_v42 = vadd.f32 %v2965_v16, %v2873_v62  ;;  %v6867_v16 = vld [vmem:[%s7478_s0 + $0x20] sm:$0xff] }
 0xcf3   : > { %v3016_v25 = vpack.c.bf16 %v2964_v13, %v6748_v50  ;;  %v2987_v63 = vmul.f32 %v6761_v60, %v2964_v13  ;;  %v6779_v23 = vmul.f32 %v6776_v35, %v2964_v13  ;;  %v6791_v5 = vmul.f32 %v6788_v2, %v2964_v13 }
 0xcf4   : > { %v3450_v34 = vpack.c.bf16 %v2966_v42, %v2962_v18  ;;  %v6807_v24 = vmul.f32 %v6804_v6, %v2964_v13  ;;  %v6873_v42 = vld [vmem:[%s7478_s0 + $0x48] sm:$0xff] }
 0xcf5   : > { %3022 = vrot.lane.b32.xlu1 %v3016_v25, %s7480_s26  ;;  %v3006_v47 = vpack.c.bf16 %v2987_v63, %v2986_v61  ;;  %v3011_v1 = vpack.c.bf16 %v6779_v23, %v6771_v19 }
 0xcf6   : > { %5029 = vmatprep.subr.bf16.mxu1 %v3450_v34 }
 0xcf7   : > { %v2969_v56 = vpop.f32.mrb[60].mxu0  ;;  %5009 = vmatprep.mubr.msk.bf16.mxu0 %vm1335_vm0, %v3006_v47  ;;  %5030 = vmatpush3.bf16.msra.mxu1 %v3450_v34  ;;  %v6885_v34 = vld [vmem:[%s7478_s0 + $0x90] sm:$0xff] }
 0xcf8   : > { %v2970_v21 = vadd.f32 %v2969_v56, %v2869_v41  ;;  %v2971_v36 = vpop.f32.mrb[61].mxu0  ;;  %v6891_v56 = vld [vmem:[%s7478_s0 + $0x98] sm:$0xff] }
 0xcf9   : > { %v2973_v7 = vpop.f32.mrb[62].mxu0  ;;  %v2972_v45 = vadd.f32 %v2971_v36, %v2873_v62 }
 0xcfa   : > { %v2974_v26 = vadd.f32 %v2973_v7, %v2869_v41  ;;  %v2975_v27 = vpop.f32.mrb[63].mxu0  ;;  %v6799_v30 = vmul.f32 %v6796_v38, %v2970_v21  ;;  %v6810_v33 = vmul.f32 %v6491_v59, %v2970_v21  ;;  %v6818_v58 = vmul.f32 %v6815_v44, %v2970_v21 }
 0xcfb   : > { %v2976_v8 = vadd.f32 %v2975_v27, %v2873_v62  ;;  %v2998_v48 = vmul.f32 %v6831_v40, %v2970_v21 }
 0xcfc   : > { %v2989_v3 = vmul.f32 %v6823_v52, %v2974_v26  ;;  %v3017_v17 = vpack.c.bf16 %v2974_v26, %v2970_v21  ;;  %v3009_v59 = vpack.c.bf16 %v6799_v30, %v6791_v5  ;;  %v2999_v9 = vmul.f32 %v6837_v55, %v2974_v26 }
 0xcfd   : > { %v3451_v32 = vpack.c.bf16 %v2976_v8, %v2972_v45  ;;  %v3014_v31 = vpack.c.bf16 %v6810_v33, %v6807_v24  ;;  %v2994_v43 = vmul.f32 %v6854_v49, %v2974_v26  ;;  %v3004_v47 = vmul.f32 %v6885_v34, %v2974_v26 }
 0xcfe   : > { %v3007_v28 = vpack.c.bf16 %v2989_v3, %v6818_v58  ;;  %3024 = vrot.lane.b32.xlu0 %v3017_v17, %s7480_s26  ;;  %v3012_v57 = vpack.c.bf16 %v2999_v9, %v2998_v48 }
 0xcff   : > { %v2979_v15 = vpop.f32.mrb[64].mxu0  ;;  %5031 = vmatprep.subr.bf16.mxu1 %v3451_v32 }
 0xd00   : > { %v2980_v29 = vadd.f32 %v2979_v15, %v2869_v41  ;;  %v2981_v10 = vpop.f32.mrb[65].mxu0  ;;  %5032 = vmatpush3.bf16.msra.mxu1 %v3451_v32  ;;  %v6860_v41 = vld [vmem:[%s7478_s0 + $0x78] sm:$0xff]  ;;  %v5547_v15 = vld [vmem:[%s7479_s23 + $0x8] sm:$0xff] }
 0xd01   : > { %v2982_v53 = vadd.f32 %v2981_v10, %v2873_v62  ;;  %v2983_v4 = vpop.f32.mrb[66].mxu0  ;;  %v3001_v62 = vmul.f32 %v6860_v41, %v6748_v50  ;;  %v6879_v50 = vld [vmem:[%s7478_s0 + $0x70] sm:$0xff] }
 0xd02   : > { %v2984_v37 = vpop.f32.mrb[67].mxu0  ;;  %v3018_v13 = vpack.c.bf16 %v2980_v29, %v2980_v29  ;;  %v2990_v18 = vmul.f32 %v6867_v16, %v2980_v29  ;;  %v2995_v61 = vmul.f32 %v6873_v42, %v2980_v29  ;;  %v3000_v25 = vmul.f32 %v6879_v50, %v2980_v29 }
 0xd03   : > { %v3452_v63 = vpack.c.bf16 %v2982_v53, %v2982_v53  ;;  %v3005_v21 = vmul.f32 %v6891_v56, %v2980_v29  ;;  %v5548_v29 = vld [vmem:[%s7479_s23 + $0x18] sm:$0xff] }
 0xd04   : > { %3026 = vrot.lane.b32.xlu1 %v3018_v13, %s7480_s26  ;;  %v3008_v36 = vpack.c.bf16 %v2991_v0, %v2990_v18  ;;  %v3010_v7 = vpack.c.bf16 %v2995_v61, %v2994_v43  ;;  %v3013_v27 = vpack.c.bf16 %v3001_v62, %v3000_v25  ;;  %v5549_v0 = vld [vmem:[%s7479_s23 + $0x10] sm:$0xff] }
 0xd05   : > { %v3484_v5 = vsel %vm2051_vm1, %v3452_v63, 0  ;;  %5161 = vmatprep.subr.msk.bf16.mxu1 %vm2051_vm1, %v3452_v63  ;;  %v3015_v30 = vpack.c.bf16 %v3005_v21, %v3004_v47 }
 0xd06   : > { %5034 = vmatpush3.bf16.msra.mxu1 %v3484_v5 }
 0xd07   : > { %5075 = vmatprep.subr.bf16.mxu1 %v5577_v20 }
 0xd67   : > { %v3023_v26 = vpop.permute.xlu1 %3022 }
 0xd68   : > { %v3059_v45 = vsel %vm1335_vm0, %v3023_v26, 0  ;;  %5158 = vmatprep.subr.msk.bf16.mxu0 %vm1335_vm0, %v3023_v26 }
 0xd69   : > { %5004 = vmatpush3.bf16.xpose.msra.mxu0 %v3059_v45  ;;  %v5553_v45 = vld [vmem:[%s7479_s23 + $0x38] sm:$0xff] }
 0xd70   : > { %v3025_v8 = vpop.permute.xlu0 %3024 }
 0xd71   : > { %v3062_v24 = vsel %vm1335_vm0, %v3025_v8, 0  ;;  %5159 = vmatprep.subr.msk.bf16.mxu0 %vm1335_vm0, %v3025_v8 }
 0xd72   : > { %5006 = vmatpush3.bf16.xpose.msra.mxu0 %v3062_v24 }
 0xd76   : > { %v3027_v33 = vpop.permute.xlu1 %3026 }
 0xd77   : > { %5160 = vmatprep.subr.msk.bf16.mxu0 %vm1335_vm0, %v3027_v33  ;;  %v3065_v58 = vsel %vm1335_vm0, %v3027_v33, 0 }
 0xd7a   : > { %5008 = vmatpush3.bf16.xpose.msra.mxu0 %v3065_v58 }
 0xd7b   : > { %5055 = vmatprep.subr.bf16.mxu0 %v5577_v20 }
 0xd81   : > { %5010 = vmatmul.mubr.msk.bf16.vlgmr.msra.gmra.mrb[68].mxu0 %vm1335_vm0, %v3007_v28 }
 0xd82   : > { %5013 = vmatprep.mubr.msk.bf16.mxu0 %vm1335_vm0, %v3008_v36  ;;  %v5550_v36 = vld [vmem:[%s7479_s23 + $0x20] sm:$0xff] }
 0xd89   : > { %5014 = vmatmul.mubr.msk.bf16.gmra.mrb[72].mxu0 %vm1335_vm0, %v3009_v59 }
 0xd8a   : > { %5017 = vmatprep.mubr.msk.bf16.mxu0 %vm1335_vm0, %v3010_v7 }
 0xd91   : > { %5018 = vmatmul.mubr.msk.bf16.gmra.mrb[76].mxu0 %vm1335_vm0, %v3011_v1  ;;  %v5546_v1 = vld [vmem:[%s7479_s23] sm:$0xff] }
 0xd92   : > { %5021 = vmatprep.mubr.msk.bf16.mxu0 %vm1335_vm0, %v3012_v57 }
 0xd99   : > { %5022 = vmatmul.mubr.msk.bf16.gmra.mrb[80].mxu0 %vm1335_vm0, %v3013_v27  ;;  %v5551_v27 = vld [vmem:[%s7479_s23 + $0x28] sm:$0xff] }
 0xd9a   : > { %5025 = vmatprep.mubr.msk.bf16.mxu0 %vm1335_vm0, %v3014_v31 }
 0xda1   : > { %5026 = vmatmul.mubr.msk.bf16.gmra.mrb[84].mxu0 %vm1335_vm0, %v3015_v30  ;;  %v5552_v30 = vld [vmem:[%s7479_s23 + $0x30] sm:$0xff] }
 0xda2   : > { %5063 = vmatprep.mubr.msk.bf16.mxu0 %vm5578_vm3, %v5577_v20 }
 0xe54   : > { %v5011_v3 = vpop.f32.mrb[68].mxu0 }
 0xe55   : > { %v3101_v17 = vpop.f32.mrb[69].mxu0  ;;  %v3182_v19 = vmul.f32 0.25, %v5011_v3 }
 0xe56   : > { %v3180_v59 = vmul.f32 0.25, %v3101_v17  ;;  %v5012_v32 = vpop.f32.mrb[70].mxu0 }
 0xe57   : > { %v3183_v48 = vmul.f32 0.25, %v5012_v32  ;;  %v3104_v9 = vpop.f32.mrb[71].mxu0  ;;  %v6941_v43 = vadd.f32 %v5549_v0, %v3182_v19 }
 0xe58   : > { %v3181_v23 = vmul.f32 0.25, %v3104_v9  ;;  %v6922_v28 = vadd.f32 %v5546_v1, %v3180_v59 }
 0xe59   : > { %v6934_v10 = vadd.f32 %v5548_v29, %v3183_v48  ;;  %v3226_v21 = vsel %vm1787_vm2, %v6941_v43, -inf  ;;  %v5555_v29 = vld [vmem:[%s7479_s23 + $0x48] sm:$0xff] }
 0xe5a   : > { %v3220_v31 = vsel %vm1787_vm2, %v6922_v28, -inf  ;;  %v6929_v57 = vadd.f32 %v5547_v15, %v3181_v23 }
 0xe5b   : > { %3221 = vmax.xlane.f32.xlu1 %v3220_v31  ;;  %v3229_v18 = vsel %vm1787_vm2, %v6934_v10, -inf  ;;  %v5554_v31 = vld [vmem:[%s7479_s23 + $0x40] sm:$0xff] }
 0xe5c   : > { %v5015_v53 = vpop.f32.mrb[72].mxu0  ;;  %v3223_v4 = vsel %vm1787_vm2, %v6929_v57, -inf }
 0xe5d   : > { %3224 = vmax.xlane.f32.xlu0 %v3223_v4  ;;  %v3117_v62 = vpop.f32.mrb[73].mxu0  ;;  %v3186_v61 = vmul.f32 0.25, %v5015_v53 }
 0xe5e   : > { %v3184_v37 = vmul.f32 0.25, %v3117_v62  ;;  %v5016_v13 = vpop.f32.mrb[74].mxu0 }
 0xe5f   : > { %v3187_v25 = vmul.f32 0.25, %v5016_v13  ;;  %3230 = vmax.xlane.f32.xlu1 %v3229_v18  ;;  %v3120_v63 = vpop.f32.mrb[75].mxu0  ;;  %v6960_v26 = vadd.f32 %v5552_v30, %v3186_v61  ;;  %v5557_v18 = vld [vmem:[%s7479_s23 + $0x58] sm:$0xff] }
 0xe60   : > { %v3185_v47 = vmul.f32 0.25, %v3120_v63  ;;  %v6950_v7 = vadd.f32 %v5550_v36, %v3184_v37  ;;  %v5556_v37 = vld [vmem:[%s7479_s23 + $0x50] sm:$0xff] }
 0xe61   : > { %3227 = vmax.xlane.f32.xlu0 %v3226_v21  ;;  %v6965_v8 = vadd.f32 %v5553_v45, %v3187_v25  ;;  %v3238_v48 = vsel %vm1787_vm2, %v6960_v26, -inf }
 0xe62   : > { %v6955_v5 = vadd.f32 %v5551_v27, %v3185_v47  ;;  %v3232_v33 = vsel %vm1787_vm2, %v6950_v7, -inf }
 0xe63   : > { %v3241_v9 = vsel %vm1787_vm2, %v6965_v8, -inf }
 0xe64   : > { %v5019_v24 = vpop.f32.mrb[76].mxu0  ;;  %v3235_v58 = vsel %vm1787_vm2, %v6955_v5, -inf }
 0xe65   : > { %3233 = vmax.xlane.f32.xlu0 %v3232_v33  ;;  %3236 = vmax.xlane.f32.xlu1 %v3235_v58  ;;  %v3133_v3 = vpop.f32.mrb[77].mxu0  ;;  %v3190_v19 = vmul.f32 0.25, %v5019_v24  ;;  %v5558_v33 = vld [vmem:[%s7479_s23 + $0x60] sm:$0xff] }
 0xe66   : > { %v3188_v17 = vmul.f32 0.25, %v3133_v3  ;;  %v5020_v59 = vpop.f32.mrb[78].mxu0  ;;  %v5559_v3 = vld [vmem:[%s7479_s23 + $0x68] sm:$0xff] }
 0xe67   : > { %v3136_v32 = vpop.f32.mrb[79].mxu0  ;;  %v3191_v23 = vmul.f32 0.25, %v5020_v59  ;;  %v6992_v13 = vadd.f32 %v5556_v37, %v3190_v19  ;;  %v5560_v59 = vld [vmem:[%s7479_s23 + $0x70] sm:$0xff] }
 0xe68   : > { %v3189_v1 = vmul.f32 0.25, %v3136_v32  ;;  %v6978_v15 = vadd.f32 %v5554_v31, %v3188_v17 }
 0xe69   : > { %3239 = vmax.xlane.f32.xlu0 %v3238_v48  ;;  %3242 = vmax.xlane.f32.xlu1 %v3241_v9  ;;  %v6997_v61 = vadd.f32 %v5557_v18, %v3191_v23  ;;  %v3250_v45 = vsel %vm1787_vm2, %v6992_v13, -inf  ;;  %v5561_v48 = vld [vmem:[%s7479_s23 + $0x78] sm:$0xff] }
 0xe6a   : > { %v6983_v53 = vadd.f32 %v5555_v29, %v3189_v1  ;;  %v3244_v0 = vsel %vm1787_vm2, %v6978_v15, -inf }
 0xe6b   : > { %v3253_v24 = vsel %vm1787_vm2, %v6997_v61, -inf }
 0xe6c   : > { %v5023_v4 = vpop.f32.mrb[80].mxu0  ;;  %v3247_v62 = vsel %vm1787_vm2, %v6983_v53, -inf }
 0xe6d   : > { %3245 = vmax.xlane.f32.xlu0 %v3244_v0  ;;  %3248 = vmax.xlane.f32.xlu1 %v3247_v62  ;;  %v3149_v25 = vpop.f32.mrb[81].mxu0  ;;  %v3194_v21 = vmul.f32 0.25, %v5023_v4 }
 0xe6e   : > { %v3192_v63 = vmul.f32 0.25, %v3149_v25  ;;  %v5024_v47 = vpop.f32.mrb[82].mxu0 }
 0xe6f   : > { %v3195_v36 = vmul.f32 0.25, %v5024_v47  ;;  %v3152_v27 = vpop.f32.mrb[83].mxu0  ;;  %v7016_v32 = vadd.f32 %v5560_v59, %v3194_v21  ;;  %v5562_v47 = vld [vmem:[%s7479_s23 + $0x80] sm:$0xff] }
 0xe70   : > { %v3193_v30 = vmul.f32 0.25, %v3152_v27  ;;  %v7006_v58 = vadd.f32 %v5558_v33, %v3192_v63 }
 0xe71   : > { %3251 = vmax.xlane.f32.xlu0 %v3250_v45  ;;  %3254 = vmax.xlane.f32.xlu1 %v3253_v24  ;;  %v7021_v9 = vadd.f32 %v5561_v48, %v3195_v36  ;;  %v3262_v62 = vsel %vm1787_vm2, %v7016_v32, -inf  ;;  %v5563_v36 = vld [vmem:[%s7479_s23 + $0x88] sm:$0xff]  ;;  %v5564_v24 = vld [vmem:[%s7479_s23 + $0x90] sm:$0xff] }
 0xe72   : > { %v7011_v17 = vadd.f32 %v5559_v3, %v3193_v30  ;;  %v3256_v23 = vsel %vm1787_vm2, %v7006_v58, -inf  ;;  %v5565_v3 = vld [vmem:[%s7479_s23 + $0x98] sm:$0xff] }
 0xe73   : > { %v3265_v37 = vsel %vm1787_vm2, %v7021_v9, -inf }
 0xe74   : > { %v5027_v19 = vpop.f32.mrb[84].mxu0  ;;  %v3259_v1 = vsel %vm1787_vm2, %v7011_v17, -inf }
 0xe75   : > { %3257 = vmax.xlane.f32.xlu0 %v3256_v23  ;;  %3260 = vmax.xlane.f32.xlu1 %v3259_v1  ;;  %v3165_v31 = vpop.f32.mrb[85].mxu0  ;;  %v3198_v18 = vmul.f32 0.25, %v5027_v19 }
 0xe76   : > { %v3196_v29 = vmul.f32 0.25, %v3165_v31  ;;  %v5028_v4 = vpop.f32.mrb[86].mxu0 }
 0xe77   : > { %v3168_v0 = vpop.f32.mrb[87].mxu0  ;;  %v3199_v25 = vmul.f32 0.25, %v5028_v4  ;;  %v7048_v33 = vadd.f32 %v5564_v24, %v3198_v18 }
 0xe78   : > { %v3197_v63 = vmul.f32 0.25, %v3168_v0  ;;  %v7034_v21 = vadd.f32 %v5562_v47, %v3196_v29 }
 0xe79   : > { %3263 = vmax.xlane.f32.xlu0 %v3262_v62  ;;  %3266 = vmax.xlane.f32.xlu1 %v3265_v37  ;;  %v7053_v59 = vadd.f32 %v5565_v3, %v3199_v25  ;;  %v3274_v48 = vsel %vm1787_vm2, %v7048_v33, -inf }
 0xe7a   : > { %v7039_v27 = vadd.f32 %v5563_v36, %v3197_v63  ;;  %v3268_v30 = vsel %vm1787_vm2, %v7034_v21, -inf }
 0xe7b   : > { %v3277_v19 = vsel %vm1787_vm2, %v7053_v59, -inf }
 0xe7c   : > { %v3271_v45 = vsel %vm1787_vm2, %v7039_v27, -inf }
 0xe7d   : > { %3269 = vmax.xlane.f32.xlu0 %v3268_v30  ;;  %3272 = vmax.xlane.f32.xlu1 %v3271_v45 }
 0xe81   : > { %3275 = vmax.xlane.f32.xlu0 %v3274_v48  ;;  %3278 = vmax.xlane.f32.xlu1 %v3277_v19 }
 0xee8   : > { %v3222_v23 = vpop.xlane.xlu1 %3221 }
 0xee9   : > { %v3280_v1 = vsub.f32 %v6922_v28, %v3222_v23 }
 0xeea   : > { %v3225_v31 = vpop.xlane.xlu0 %3224 }
 0xeeb   : > { %v3300_v29 = vmul.f32 1.442695, %v3280_v1  ;;  %v3281_v4 = vsub.f32 %v6929_v57, %v3225_v31 }
 0xeec   : > { %v3231_v0 = vpop.xlane.xlu1 %3230 }
 0xeed   : > { %5414 = vpow2.f32 %v3300_v29  ;;  %v3302_v62 = vmul.f32 1.442695, %v3281_v4  ;;  %v3283_v37 = vsub.f32 %v6934_v10, %v3231_v0 }
 0xeee   : > { %v3228_v18 = vpop.xlane.xlu0 %3227 }
 0xeef   : > { %5416 = vpow2.f32 %v3302_v62  ;;  %v3306_v25 = vmul.f32 1.442695, %v3283_v37  ;;  %v3282_v63 = vsub.f32 %v6941_v43, %v3228_v18 }
 0xef1   : > { %5418 = vpow2.f32 %v3306_v25  ;;  %v3304_v47 = vmul.f32 1.442695, %v3282_v63 }
 0xef2   : > { %v3234_v36 = vpop.xlane.xlu0 %3233  ;;  %v3237_v30 = vpop.xlane.xlu1 %3236 }
 0xef3   : > { %5420 = vpow2.f32 %v3304_v47  ;;  %v3284_v28 = vsub.f32 %v6950_v7, %v3234_v36  ;;  %v3285_v45 = vsub.f32 %v6955_v5, %v3237_v30 }
 0xef5   : > { %v3308_v57 = vmul.f32 1.442695, %v3284_v28  ;;  %v3310_v24 = vmul.f32 1.442695, %v3285_v45 }
 0xef6   : > { %v3240_v3 = vpop.xlane.xlu0 %3239  ;;  %v3243_v48 = vpop.xlane.xlu1 %3242 }
 0xef7   : > { %v7065_v19 = vpop.eup %5414  ;;  %5422 = vpow2.f32 %v3308_v57  ;;  %v3286_v10 = vsub.f32 %v6960_v26, %v3240_v3  ;;  %v3287_v43 = vsub.f32 %v6965_v8, %v3243_v48 }
 0xef8   : > { %5424 = vpow2.f32 %v3310_v24  ;;  %v3340_v23 = vsel %vm1787_vm2, %v7065_v19, 0.0 }
 0xef9   : > { %v7071_v1 = vpop.eup %5416  ;;  %v3312_v7 = vmul.f32 1.442695, %v3286_v10  ;;  %v3314_v31 = vmul.f32 1.442695, %v3287_v43  ;;  %3341 = vadd.xlane.f32.xlu0 %v3340_v23 }
 0xefa   : > { %v3246_v5 = vpop.xlane.xlu0 %3245  ;;  %v3249_v29 = vpop.xlane.xlu1 %3248  ;;  %v3343_v4 = vsel %vm1787_vm2, %v7071_v1, 0.0 }
 0xefb   : > { %v7075_v0 = vpop.eup %5418  ;;  %5426 = vpow2.f32 %v3312_v7  ;;  %v3288_v26 = vsub.f32 %v6978_v15, %v3246_v5  ;;  %v3289_v8 = vsub.f32 %v6983_v53, %v3249_v29  ;;  %3344 = vadd.xlane.f32.xlu1 %v3343_v4 }
 0xefc   : > { %5428 = vpow2.f32 %v3314_v31  ;;  %v3349_v36 = vsel %vm1787_vm2, %v7075_v0, 0.0 }
 0xefd   : > { %v7079_v62 = vpop.eup %5420  ;;  %v3316_v37 = vmul.f32 1.442695, %v3288_v26  ;;  %v3318_v18 = vmul.f32 1.442695, %v3289_v8 }
 0xefe   : > { %v3252_v25 = vpop.xlane.xlu0 %3251  ;;  %v3255_v63 = vpop.xlane.xlu1 %3254  ;;  %v3346_v47 = vsel %vm1787_vm2, %v7079_v62, 0.0 }
 0xeff   : > { %5430 = vpow2.f32 %v3316_v37  ;;  %v3290_v30 = vsub.f32 %v6992_v13, %v3252_v25  ;;  %v3291_v15 = vsub.f32 %v6997_v61, %v3255_v63  ;;  %3347 = vadd.xlane.f32.xlu0 %v3346_v47  ;;  %3350 = vadd.xlane.f32.xlu1 %v3349_v36 }
 0xf00   : > { %5432 = vpow2.f32 %v3318_v18 }
 0xf01   : > { %v7087_v53 = vpop.eup %5422  ;;  %v3320_v28 = vmul.f32 1.442695, %v3290_v30  ;;  %v3322_v45 = vmul.f32 1.442695, %v3291_v15 }
 0xf02   : > { %v7089_v57 = vpop.eup %5424  ;;  %v3258_v24 = vpop.xlane.xlu0 %3257  ;;  %v3352_v48 = vsel %vm1787_vm2, %v7087_v53, 0.0 }
 0xf03   : > { %v3261_v3 = vpop.xlane.xlu1 %3260  ;;  %5434 = vpow2.f32 %v3320_v28  ;;  %v3292_v10 = vsub.f32 %v7006_v58, %v3258_v24  ;;  %3353 = vadd.xlane.f32.xlu0 %v3352_v48  ;;  %v3355_v61 = vsel %vm1787_vm2, %v7089_v57, 0.0 }
 0xf04   : > { %v3293_v13 = vsub.f32 %v7011_v17, %v3261_v3  ;;  %5436 = vpow2.f32 %v3322_v45  ;;  %3356 = vadd.xlane.f32.xlu1 %v3355_v61 }
 0xf05   : > { %v7097_v43 = vpop.eup %5426  ;;  %v3324_v23 = vmul.f32 1.442695, %v3292_v10 }
 0xf06   : > { %v3326_v7 = vmul.f32 1.442695, %v3293_v13  ;;  %v7099_v31 = vpop.eup %5428  ;;  %v3264_v5 = vpop.xlane.xlu0 %3263  ;;  %v3358_v4 = vsel %vm1787_vm2, %v7097_v43, 0.0 }
 0xf07   : > { %v3267_v29 = vpop.xlane.xlu1 %3266  ;;  %5438 = vpow2.f32 %v3324_v23  ;;  %v3294_v58 = vsub.f32 %v7016_v32, %v3264_v5  ;;  %3359 = vadd.xlane.f32.xlu0 %v3358_v4  ;;  %v3361_v26 = vsel %vm1787_vm2, %v7099_v31, 0.0 }
 0xf08   : > { %v3295_v17 = vsub.f32 %v7021_v9, %v3267_v29  ;;  %5440 = vpow2.f32 %v3326_v7  ;;  %3362 = vadd.xlane.f32.xlu1 %v3361_v26 }
 0xf09   : > { %v7107_v8 = vpop.eup %5430  ;;  %v3328_v37 = vmul.f32 1.442695, %v3294_v58 }
 0xf0a   : > { %v3330_v18 = vmul.f32 1.442695, %v3295_v17  ;;  %v7109_v25 = vpop.eup %5432  ;;  %v3270_v63 = vpop.xlane.xlu0 %3269  ;;  %v3364_v36 = vsel %vm1787_vm2, %v7107_v8, 0.0 }
 0xf0b   : > { %v3273_v47 = vpop.xlane.xlu1 %3272  ;;  %5442 = vpow2.f32 %v3328_v37  ;;  %v3296_v32 = vsub.f32 %v7034_v21, %v3270_v63  ;;  %3365 = vadd.xlane.f32.xlu0 %v3364_v36  ;;  %v3367_v30 = vsel %vm1787_vm2, %v7109_v25, 0.0 }
 0xf0c   : > { %v3297_v9 = vsub.f32 %v7039_v27, %v3273_v47  ;;  %5444 = vpow2.f32 %v3330_v18  ;;  %3368 = vadd.xlane.f32.xlu1 %v3367_v30 }
 0xf0d   : > { %v7117_v15 = vpop.eup %5434  ;;  %v3332_v28 = vmul.f32 1.442695, %v3296_v32 }
 0xf0e   : > { %v3334_v45 = vmul.f32 1.442695, %v3297_v9  ;;  %v7119_v24 = vpop.eup %5436  ;;  %v3276_v3 = vpop.xlane.xlu0 %3275  ;;  %v3370_v10 = vsel %vm1787_vm2, %v7117_v15, 0.0 }
 0xf0f   : > { %v3279_v48 = vpop.xlane.xlu1 %3278  ;;  %5446 = vpow2.f32 %v3332_v28  ;;  %v3298_v21 = vsub.f32 %v7048_v33, %v3276_v3  ;;  %3371 = vadd.xlane.f32.xlu0 %v3370_v10  ;;  %v3373_v13 = vsel %vm1787_vm2, %v7119_v24, 0.0 }
 0xf10   : > { %v3299_v27 = vsub.f32 %v7053_v59, %v3279_v48  ;;  %5448 = vpow2.f32 %v3334_v45  ;;  %3374 = vadd.xlane.f32.xlu1 %v3373_v13 }
 0xf11   : > { %v7127_v61 = vpop.eup %5438  ;;  %v3336_v23 = vmul.f32 1.442695, %v3298_v21 }
 0xf12   : > { %v3338_v7 = vmul.f32 1.442695, %v3299_v27  ;;  %v7129_v5 = vpop.eup %5440  ;;  %v3376_v29 = vsel %vm1787_vm2, %v7127_v61, 0.0 }
 0xf13   : > { %5450 = vpow2.f32 %v3336_v23  ;;  %3377 = vadd.xlane.f32.xlu0 %v3376_v29  ;;  %v3379_v33 = vsel %vm1787_vm2, %v7129_v5, 0.0 }
 0xf14   : > { %5452 = vpow2.f32 %v3338_v7  ;;  %3380 = vadd.xlane.f32.xlu1 %v3379_v33 }
 0xf15   : > { %v7135_v59 = vpop.eup %5442 }
 0xf16   : > { %v7137_v4 = vpop.eup %5444  ;;  %v3382_v58 = vsel %vm1787_vm2, %v7135_v59, 0.0 }
 0xf17   : > { %3383 = vadd.xlane.f32.xlu0 %v3382_v58  ;;  %v3385_v17 = vsel %vm1787_vm2, %v7137_v4, 0.0 }
 0xf18   : > { %3386 = vadd.xlane.f32.xlu1 %v3385_v17 }
 0xf19   : > { %v7143_v26 = vpop.eup %5446 }
 0xf1a   : > { %v7145_v37 = vpop.eup %5448  ;;  %v3388_v18 = vsel %vm1787_vm2, %v7143_v26, 0.0 }
 0xf1b   : > { %3389 = vadd.xlane.f32.xlu0 %v3388_v18  ;;  %v3391_v63 = vsel %vm1787_vm2, %v7145_v37, 0.0 }
 0xf1c   : > { %3392 = vadd.xlane.f32.xlu1 %v3391_v63 }
 0xf1d   : > { %v7151_v47 = vpop.eup %5450 }
 0xf1e   : > { %v7153_v36 = vpop.eup %5452  ;;  %v3394_v32 = vsel %vm1787_vm2, %v7151_v47, 0.0 }
 0xf1f   : > { %3395 = vadd.xlane.f32.xlu0 %v3394_v32  ;;  %v3397_v9 = vsel %vm1787_vm2, %v7153_v36, 0.0 }
 0xf20   : > { %3398 = vadd.xlane.f32.xlu1 %v3397_v9 }
 0xf86   : > { %v3342_v30 = vpop.xlane.xlu0 %3341 }
 0xf87   : > { %5454 = vrcp.f32 %v3342_v30 }
 0xf88   : > { %v3345_v28 = vpop.xlane.xlu1 %3344 }
 0xf89   : > { %5456 = vrcp.f32 %v3345_v28 }
 0xf8c   : > { %v3348_v45 = vpop.xlane.xlu0 %3347  ;;  %v3351_v3 = vpop.xlane.xlu1 %3350 }
 0xf8d   : > { %5458 = vrcp.f32 %v3348_v45 }
 0xf8e   : > { %5460 = vrcp.f32 %v3351_v3 }
 0xf90   : > { %v3354_v48 = vpop.xlane.xlu0 %3353 }
 0xf91   : > { %v5455_v10 = vpop.eup %5454  ;;  %5462 = vrcp.f32 %v3354_v48  ;;  %v3357_v21 = vpop.xlane.xlu1 %3356 }
 0xf92   : > { %5464 = vrcp.f32 %v3357_v21  ;;  %v3420_v23 = vmul.f32 %v5455_v10, %v7065_v19 }
 0xf93   : > { %v5457_v27 = vpop.eup %5456 }
 0xf94   : > { %v3360_v13 = vpop.xlane.xlu0 %3359  ;;  %v3421_v7 = vmul.f32 %v5457_v27, %v7071_v1 }
 0xf95   : > { %5466 = vrcp.f32 %v3360_v13  ;;  %v3363_v29 = vpop.xlane.xlu1 %3362 }
 0xf96   : > { %5468 = vrcp.f32 %v3363_v29  ;;  %v3440_v33 = vpack.c.bf16 %v3421_v7, %v3420_v23 }
 0xf97   : > { %v5459_v58 = vpop.eup %5458 }
 0xf98   : > { %v5461_v17 = vpop.eup %5460  ;;  %v3422_v18 = vmul.f32 %v5459_v58, %v7079_v62  ;;  %v3366_v63 = vpop.xlane.xlu0 %3365  ;;  %5035 = vmatprep.mubr.msk.bf16.mxu1 %vm1787_vm2, %v3440_v33 }
 0xf99   : > { %v3423_v32 = vmul.f32 %v5461_v17, %v7075_v0  ;;  %5470 = vrcp.f32 %v3366_v63  ;;  %v3369_v9 = vpop.xlane.xlu1 %3368 }
 0xf9a   : > { %5472 = vrcp.f32 %v3369_v9 }
 0xf9b   : > { %v5463_v30 = vpop.eup %5462  ;;  %v3441_v19 = vpack.c.bf16 %v3423_v32, %v3422_v18 }
 0xf9c   : > { %v5465_v28 = vpop.eup %5464  ;;  %v3372_v1 = vpop.xlane.xlu0 %3371  ;;  %v3424_v45 = vmul.f32 %v5463_v30, %v7087_v53 }
 0xf9d   : > { %5474 = vrcp.f32 %v3372_v1  ;;  %5036 = vmatmul.mubr.msk.bf16.vlgmr.msra.gmra.mrb[68].mxu1 %vm1787_vm2, %v3441_v19  ;;  %v3375_v3 = vpop.xlane.xlu1 %3374  ;;  %v3425_v62 = vmul.f32 %v5465_v28, %v7089_v57 }
 0xf9e   : > { %5476 = vrcp.f32 %v3375_v3 }
 0xf9f   : > { %v5467_v48 = vpop.eup %5466  ;;  %v3442_v10 = vpack.c.bf16 %v3425_v62, %v3424_v45 }
 0xfa0   : > { %v5469_v21 = vpop.eup %5468  ;;  %v3378_v0 = vpop.xlane.xlu0 %3377  ;;  %v3426_v27 = vmul.f32 %v5467_v48, %v7097_v43 }
 0xfa1   : > { %5478 = vrcp.f32 %v3378_v0  ;;  %5039 = vmatprep.mubr.msk.bf16.mxu1 %vm1787_vm2, %v3442_v10  ;;  %v3381_v13 = vpop.xlane.xlu1 %3380  ;;  %v3427_v23 = vmul.f32 %v5469_v21, %v7099_v31 }
 0xfa2   : > { %5480 = vrcp.f32 %v3381_v13 }
 0xfa3   : > { %v5471_v53 = vpop.eup %5470  ;;  %v3443_v7 = vpack.c.bf16 %v3427_v23, %v3426_v27 }
 0xfa4   : > { %v5473_v29 = vpop.eup %5472  ;;  %v3384_v33 = vpop.xlane.xlu0 %3383  ;;  %v3428_v57 = vmul.f32 %v5471_v53, %v7107_v8 }
 0xfa5   : > { %5482 = vrcp.f32 %v3384_v33  ;;  %5040 = vmatmul.mubr.msk.bf16.gmra.mrb[72].mxu1 %vm1787_vm2, %v3443_v7  ;;  %v3387_v58 = vpop.xlane.xlu1 %3386  ;;  %v3429_v17 = vmul.f32 %v5473_v29, %v7109_v25 }
 0xfa6   : > { %5484 = vrcp.f32 %v3387_v58 }
 0xfa7   : > { %v5475_v43 = vpop.eup %5474  ;;  %v3444_v18 = vpack.c.bf16 %v3429_v17, %v3428_v57 }
 0xfa8   : > { %v5477_v63 = vpop.eup %5476  ;;  %v3390_v32 = vpop.xlane.xlu0 %3389  ;;  %v3430_v31 = vmul.f32 %v5475_v43, %v7117_v15 }
 0xfa9   : > { %5486 = vrcp.f32 %v3390_v32  ;;  %5043 = vmatprep.mubr.msk.bf16.mxu1 %vm1787_vm2, %v3444_v18  ;;  %v3393_v9 = vpop.xlane.xlu1 %3392  ;;  %v3431_v30 = vmul.f32 %v5477_v63, %v7119_v24 }
 0xfaa   : > { %5488 = vrcp.f32 %v3393_v9 }
 0xfab   : > { %v5479_v8 = vpop.eup %5478  ;;  %v3445_v19 = vpack.c.bf16 %v3431_v30, %v3430_v31 }
 0xfac   : > { %v5481_v28 = vpop.eup %5480  ;;  %v3396_v1 = vpop.xlane.xlu0 %3395  ;;  %v3432_v25 = vmul.f32 %v5479_v8, %v7127_v61 }
 0xfad   : > { %5490 = vrcp.f32 %v3396_v1  ;;  %5044 = vmatmul.mubr.msk.bf16.gmra.mrb[76].mxu1 %vm1787_vm2, %v3445_v19  ;;  %v3399_v45 = vpop.xlane.xlu1 %3398  ;;  %v3433_v3 = vmul.f32 %v5481_v28, %v7129_v5 }
 0xfae   : > { %5492 = vrcp.f32 %v3399_v45 }
 0xfaf   : > { %v5483_v15 = vpop.eup %5482  ;;  %v3446_v62 = vpack.c.bf16 %v3433_v3, %v3432_v25 }
 0xfb0   : > { %v5485_v48 = vpop.eup %5484  ;;  %v3434_v10 = vmul.f32 %v5483_v15, %v7135_v59 }
 0xfb1   : > { %5047 = vmatprep.mubr.msk.bf16.mxu1 %vm1787_vm2, %v3446_v62  ;;  %v3435_v24 = vmul.f32 %v5485_v48, %v7137_v4  ;;  %v5264_v4 = vld [vmem:[%s7445_s10 + $0x20] sm:$0xff]  }
 0xfb2   : > { %5056 = vmatpush3.bf16.msra.mxu0 %v5264_v4 }
 0xfb3   : > { %v5487_v21 = vpop.eup %5486  ;;  %v3447_v0 = vpack.c.bf16 %v3435_v24, %v3434_v10  ;;  %5057 = vmatprep.subr.bf16.mxu0 %v5577_v20 }
 0xfb4   : > { %v5489_v27 = vpop.eup %5488  ;;  %v3436_v61 = vmul.f32 %v5487_v21, %v7143_v26  ;;  %v5265_v26 = vld [vmem:[%s7445_s10 + $0x28] sm:$0xff]  }
 0xfb5   : > { %5048 = vmatmul.mubr.msk.bf16.gmra.mrb[80].mxu1 %vm1787_vm2, %v3447_v0  ;;  %v3437_v13 = vmul.f32 %v5489_v27, %v7145_v37  ;;  %v5266_v37 = vld [vmem:[%s7445_s10 + $0x30] sm:$0xff]  }
 0xfb6   : > { %5058 = vmatpush3.bf16.msra.mxu0 %v5265_v26 }
 0xfb7   : > { %v5491_v5 = vpop.eup %5490  ;;  %v3448_v23 = vpack.c.bf16 %v3437_v13, %v3436_v61  ;;  %5059 = vmatprep.subr.bf16.mxu0 %v5577_v20 }
 0xfb8   : > { %v5493_v53 = vpop.eup %5492  ;;  %v3438_v7 = vmul.f32 %v5491_v5, %v7151_v47  ;;  %v5267_v47 = vld [vmem:[%s7445_s10 + $0x38] sm:$0xff]  }
 0xfb9   : > { %5051 = vmatprep.mubr.msk.bf16.mxu1 %vm1787_vm2, %v3448_v23  ;;  %v3439_v59 = vmul.f32 %v5493_v53, %v7153_v36 }
 0xfba   : > { %5060 = vmatpush3.bf16.msra.mxu0 %v5266_v37 }
 0xfbb   : > { %v3449_v29 = vpack.c.bf16 %v3439_v59, %v3438_v7  ;;  %5061 = vmatprep.subr.bf16.mxu0 %v5577_v20 }
 0xfbd   : > { %5052 = vmatmul.mubr.msk.bf16.gmra.mrb[84].mxu1 %vm1787_vm2, %v3449_v29 }
 0xfbe   : > { %5083 = vmatprep.mubr.msk.bf16.mxu1 %vm5578_vm3, %v5577_v20  ;;  %5062 = vmatpush3.bf16.msra.mxu0 %v5267_v47 }
 0xfbf   : > { %5095 = vmatprep.subr.bf16.mxu0 %v5577_v20 }
0x1070   : > { %v5037_v36 = vpop.f32.mrb[68].mxu1 }
0x1071   : > { %v3520_v33 = vpop.f32.mrb[69].mxu1  ;;  %v3601_v31 = vmul.f32 %v6815_v44, %v5037_v36 }
0x1072   : > { %v5038_v57 = vpop.f32.mrb[70].mxu1  ;;  %v3599_v19 = vmul.f32 %v6753_v11, %v3520_v33 }
0x1073   : > { %v3523_v58 = vpop.f32.mrb[71].mxu1 }
0x1074   : > { %v3600_v43 = vmul.f32 %v6761_v60, %v3523_v58 }
0x1078   : > { %v5041_v17 = vpop.f32.mrb[72].mxu1 }
0x1079   : > { %v3605_v18 = vmul.f32 %v6788_v2, %v5041_v17  ;;  %v3536_v63 = vpop.f32.mrb[73].mxu1  ;;  %v3602_v2 = vmul.f32 %v6823_v52, %v5038_v57 }
0x107a   : > { %v5042_v32 = vpop.f32.mrb[74].mxu1  ;;  %v3603_v10 = vmul.f32 %v6867_v16, %v3536_v63 }
0x107b   : > { %v3620_v9 = vadd.f32 %v3605_v18, %v3600_v43  ;;  %v3606_v30 = vmul.f32 %v6796_v38, %v5042_v32  ;;  %v3539_v8 = vpop.f32.mrb[75].mxu1 }
0x107c   : > { %v3604_v28 = vmul.f32 %v6847_v46, %v3539_v8 }
0x107d   : > { %v3621_v1 = vadd.f32 %v3606_v30, %v3601_v31 }
0x107e   : > { %v3619_v25 = vadd.f32 %v3604_v28, %v3599_v19 }
0x1080   : > { %v5045_v45 = vpop.f32.mrb[76].mxu1 }
0x1081   : > { %v3609_v3 = vmul.f32 %v6767_v14, %v5045_v45  ;;  %v3552_v60 = vpop.f32.mrb[77].mxu1 }
0x1082   : > { %v3607_v15 = vmul.f32 %v6854_v49, %v3552_v60  ;;  %v5046_v62 = vpop.f32.mrb[78].mxu1 }
0x1083   : > { %v3624_v44 = vadd.f32 %v3619_v25, %v3609_v3  ;;  %v3610_v48 = vmul.f32 %v6776_v35, %v5046_v62  ;;  %v3555_v38 = vpop.f32.mrb[79].mxu1 }
0x1084   : > { %v3622_v11 = vadd.f32 %v3607_v15, %v3602_v2  ;;  %v3608_v46 = vmul.f32 %v6873_v42, %v3555_v38  ;;  %v5268_v38 = vld [vmem:[%s7449_s14 + $0x20] sm:$0xff]  }
0x1085   : > { %v3625_v24 = vadd.f32 %v3620_v9, %v3610_v48  ;;  %5076 = vmatpush3.bf16.msra.mxu1 %v5268_v38 }
0x1086   : > { %v3623_v21 = vadd.f32 %v3608_v46, %v3603_v10  ;;  %5077 = vmatprep.subr.bf16.mxu1 %v5577_v20 }
0x1088   : > { %v5049_v0 = vpop.f32.mrb[80].mxu1 }
0x1089   : > { %v3613_v14 = vmul.f32 %v6879_v50, %v5049_v0  ;;  %v3568_v27 = vpop.f32.mrb[81].mxu1 }
0x108a   : > { %v3611_v52 = vmul.f32 %v6831_v40, %v3568_v27  ;;  %v5050_v61 = vpop.f32.mrb[82].mxu1 }
0x108b   : > { %v3628_v49 = vadd.f32 %v3623_v21, %v3613_v14  ;;  %v3614_v13 = vmul.f32 %v6860_v41, %v5050_v61  ;;  %v3571_v5 = vpop.f32.mrb[83].mxu1  ;;  %v5566_v41 = vld [vmem:[%s7478_s0 + $0x88] sm:$0xff] }
0x108c   : > { %v3626_v35 = vadd.f32 %v3621_v1, %v3611_v52  ;;  %v3612_v23 = vmul.f32 %v6837_v55, %v3571_v5 }
0x108d   : > { %v3629_v16 = vadd.f32 %v3624_v44, %v3614_v13 }
0x108e   : > { %v3627_v53 = vadd.f32 %v3622_v11, %v3612_v23 }
0x1090   : > { %v5053_v7 = vpop.f32.mrb[84].mxu1 }
0x1091   : > { %v3617_v42 = vmul.f32 %v6885_v34, %v5053_v7  ;;  %v3584_v59 = vpop.f32.mrb[85].mxu1  ;;  %v4606_v34 = vld [vmem:[%s7446_s11 + $0x1] ss:$0 sm:$0xff] }
0x1092   : > { %v3615_v29 = vmul.f32 %v6804_v6, %v3584_v59  ;;  %v5054_v50 = vpop.f32.mrb[86].mxu1 }
0x1093   : > { %v3632_v4 = vadd.f32 %v3627_v53, %v3617_v42  ;;  %v3618_v40 = vmul.f32 %v6891_v56, %v5054_v50  ;;  %v3587_v26 = vpop.f32.mrb[87].mxu1 }
0x1094   : > { %v3630_v37 = vadd.f32 %v3625_v24, %v3615_v29  ;;  %v3616_v47 = vmul.f32 %v5566_v41, %v3587_v26  ;;  %v5269_v26 = vld [vmem:[%s7449_s14 + $0x28] sm:$0xff]   ;;  %v5271_v41 = vld [vmem:[%s7449_s14 + $0x38] sm:$0xff]  }
0x1095   : > { %v3633_v55 = vadd.f32 %v3628_v49, %v3618_v40  ;;  %5078 = vmatpush3.bf16.msra.mxu1 %v5269_v26 }
0x1096   : > { %v3643_v36 = vpack.c.bf16 %v3630_v37, %v3629_v16  ;;  %v3631_v33 = vadd.f32 %v3626_v35, %v3616_v47  ;;  %5079 = vmatprep.subr.bf16.mxu1 %v5577_v20  ;;  %v5270_v37 = vld [vmem:[%s7449_s14 + $0x30] sm:$0xff]  }
0x1097   : > { %v3645_v6 = vpack.c.bf16 %v3633_v55, %v3633_v55 }
0x1098   : > { %v3644_v57 = vpack.c.bf16 %v3632_v4, %v3631_v33  ;;  %5064 = vmatmul.mubr.msk.bf16.vlgmr.msra.gmra.mrb[88].mxu0 %vm1335_vm0, %v3643_v36 }
0x1099   : > { %5067 = vmatprep.mubr.msk.bf16.mxu0 %vm5578_vm3, %v5577_v20  ;;  %5080 = vmatpush3.bf16.msra.mxu1 %v5270_v37 }
0x109a   : > { %5081 = vmatprep.subr.bf16.mxu1 %v5577_v20 }
0x109d   : > { %5082 = vmatpush3.bf16.msra.mxu1 %v5271_v41 }
0x10a0   : > { %5068 = vmatmul.mubr.msk.bf16.gmra.mrb[92].mxu0 %vm1335_vm0, %v3644_v57 }
0x10a1   : > { %5071 = vmatprep.mubr.msk.bf16.mxu0 %vm5578_vm3, %v5577_v20 }
0x10a8   : > { %5072 = vmatmul.mubr.msk.bf16.gmra.mrb[96].mxu0 %vm1335_vm0, %v3645_v6 }
0x10a9   : > { %5111 = vmatprep.mubr.msk.bf16.mxu0 %vm5578_vm3, %v5577_v20 }
0x116b   : > { %v3718_v56 = vpop.f32.mrb[88].mxu0 }
0x116c   : > { %v3719_v58 = vadd.f32 %v4606_v34, %v3718_v56  ;;  %v5065_v17 = vpop.f32.mrb[89].mxu0 }
0x116d   : > { %v3721_v43 = vpop.f32.mrb[90].mxu0 }
0x116e   : > { %v7242_v18 = vadd.f32 %v3719_v58, %v6652_v39  ;;  %v3722_v63 = vadd.f32 %v4606_v34, %v3721_v43  ;;  %v5066_v32 = vpop.f32.mrb[91].mxu0 }
0x1170   : > { %v7245_v31 = vadd.f32 %v3722_v63, %v6655_v12  ;;  %v3747_v9 = vsel %vm1335_vm0, %v7242_v18, 0.0 }
0x1171   : > { %3748 = vadd.xlane.f32.xlu0 %v3747_v9  ;;  %v4614_v9 = vld [vmem:[%s7447_s12 + $0x1] ss:$0 sm:$0xff] }
0x1172   : > { %v3750_v30 = vsel %vm1335_vm0, %v7245_v31, 0.0 }
0x1173   : > { %3751 = vadd.xlane.f32.xlu1 %v3750_v30  ;;  %v3726_v8 = vpop.f32.mrb[92].mxu0 }
0x1174   : > { %v3727_v19 = vadd.f32 %v4606_v34, %v3726_v8  ;;  %v5069_v28 = vpop.f32.mrb[93].mxu0 }
0x1175   : > { %v3729_v1 = vpop.f32.mrb[94].mxu0 }
0x1176   : > { %v7252_v39 = vadd.f32 %v3727_v19, %v6662_v51  ;;  %v3730_v25 = vadd.f32 %v4606_v34, %v3729_v1  ;;  %v5070_v45 = vpop.f32.mrb[95].mxu0 }
0x1177   : > { %v4615_v45 = vld [vmem:[%s7448_s13 + $0x1] ss:$0 sm:$0xff] }
0x1178   : > { %v7255_v12 = vadd.f32 %v3730_v25, %v6665_v54  ;;  %v3753_v3 = vsel %vm1335_vm0, %v7252_v39, 0.0 }
0x1179   : > { %3754 = vadd.xlane.f32.xlu0 %v3753_v3 }
0x117a   : > { %v3756_v60 = vsel %vm1335_vm0, %v7255_v12, 0.0 }
0x117b   : > { %3757 = vadd.xlane.f32.xlu1 %v3756_v60  ;;  %v3734_v2 = vpop.f32.mrb[96].mxu0 }
0x117c   : > { %v3735_v15 = vadd.f32 %v4606_v34, %v3734_v2  ;;  %v5073_v62 = vpop.f32.mrb[97].mxu0 }
0x117d   : > { %v3737_v44 = vpop.f32.mrb[98].mxu0 }
0x117e   : > { %v7262_v51 = vadd.f32 %v3735_v15, %v6672_v22  ;;  %v5074_v48 = vpop.f32.mrb[99].mxu0 }
0x1180   : > { %v3759_v54 = vsel %vm1335_vm0, %v7262_v51, 0.0 }
0x1181   : > { %3760 = vadd.xlane.f32.xlu0 %v3759_v54 }
0x11fe   : > { %v3749_v10 = vpop.xlane.xlu0 %3748 }
0x11ff   : > { %v3762_v11 = vmul.f32 0.015625, %v3749_v10 }
0x1200   : > { %v3752_v46 = vpop.xlane.xlu1 %3751 }
0x1201   : > { %v3767_v24 = vsub.f32 %v7242_v18, %v3762_v11  ;;  %v3763_v21 = vmul.f32 0.015625, %v3752_v46 }
0x1203   : > { %v3768_v22 = vsub.f32 %v7245_v31, %v3763_v21  ;;  %v3772_v0 = vmul.f32 %v3767_v24, %v3767_v24 }
0x1205   : > { %v3777_v14 = vsel %vm1335_vm0, %v3772_v0, 0.0  ;;  %v3773_v27 = vmul.f32 %v3768_v22, %v3768_v22 }
0x1206   : > { %v3755_v52 = vpop.xlane.xlu0 %3754  ;;  %3778 = vadd.xlane.f32.xlu1 %v3777_v14 }
0x1207   : > { %v3764_v61 = vmul.f32 0.015625, %v3755_v52  ;;  %v3780_v49 = vsel %vm1335_vm0, %v3773_v27, 0.0 }
0x1208   : > { %v3758_v13 = vpop.xlane.xlu1 %3757  ;;  %3781 = vadd.xlane.f32.xlu0 %v3780_v49  ;;  %v5273_v49 = vld [vmem:[%s7451_s16 + $0x48] sm:$0xff]  }
0x1209   : > { %v3769_v5 = vsub.f32 %v7252_v39, %v3764_v61  ;;  %v3765_v35 = vmul.f32 0.015625, %v3758_v13  ;;  %v5272_v61 = vld [vmem:[%s7451_s16 + $0x40] sm:$0xff]   ;;  %v5274_v13 = vld [vmem:[%s7451_s16 + $0x50] sm:$0xff]  }
0x120a   : > { %5096 = vmatpush3.bf16.msra.mxu0 %v5272_v61 }
0x120b   : > { %v3770_v23 = vsub.f32 %v7255_v12, %v3765_v35  ;;  %v3774_v16 = vmul.f32 %v3769_v5, %v3769_v5  ;;  %5097 = vmatprep.subr.bf16.mxu0 %v5577_v20  ;;  %v5276_v35 = vld [vmem:[%s7451_s16 + $0x60] sm:$0xff]  }
0x120d   : > { %v3783_v53 = vsel %vm1335_vm0, %v3774_v16, 0.0  ;;  %v3775_v7 = vmul.f32 %v3770_v23, %v3770_v23  ;;  %v5278_v16 = vld [vmem:[%s7451_s16 + $0x70] sm:$0xff]  }
0x120e   : > { %3784 = vadd.xlane.f32.xlu1 %v3783_v53  ;;  %v3761_v42 = vpop.xlane.xlu0 %3760  ;;  %5098 = vmatpush3.bf16.msra.mxu0 %v5273_v49  ;;  %v5279_v53 = vld [vmem:[%s7451_s16 + $0x78] sm:$0xff]  }
0x120f   : > { %v3766_v59 = vmul.f32 0.015625, %v3761_v42  ;;  %v3786_v29 = vsel %vm1335_vm0, %v3775_v7, 0.0  ;;  %5099 = vmatprep.subr.bf16.mxu0 %v5577_v20  ;;  %v4624_v7 = vld [vmem:[%s7450_s15 + $0x1] ss:$0 sm:$0xff] }
0x1210   : > { %3787 = vadd.xlane.f32.xlu0 %v3786_v29 }
0x1211   : > { %v3771_v50 = vsub.f32 %v7262_v51, %v3766_v59 }
0x1212   : > { %5100 = vmatpush3.bf16.msra.mxu0 %v5274_v13 }
0x1213   : > { %v3776_v4 = vmul.f32 %v3771_v50, %v3771_v50  ;;  %5101 = vmatprep.subr.bf16.mxu0 %v5577_v20 }
0x1215   : > { %v3789_v40 = vsel %vm1335_vm0, %v3776_v4, 0.0 }
0x1216   : > { %3790 = vadd.xlane.f32.xlu1 %v3789_v40 }
0x1293   : > { %v3779_v47 = vpop.xlane.xlu1 %3778 }
0x1294   : > { %v3792_v55 = vmul.f32 0.015625, %v3779_v47 }
0x1295   : > { %v3782_v36 = vpop.xlane.xlu0 %3781 }
0x1296   : > { %v3797_v33 = vadd.f32 1e-06, %v3792_v55  ;;  %v3793_v57 = vmul.f32 0.015625, %v3782_v36 }
0x1298   : > { %5494 = vrsqrt.f32 %v3797_v33  ;;  %v3798_v6 = vadd.f32 1e-06, %v3793_v57 }
0x129a   : > { %5496 = vrsqrt.f32 %v3798_v6 }
0x129b   : > { %v3785_v34 = vpop.xlane.xlu1 %3784 }
0x129c   : > { %v3794_v56 = vmul.f32 0.015625, %v3785_v34 }
0x129d   : > { %v3788_v58 = vpop.xlane.xlu0 %3787 }
0x129e   : > { %v3799_v17 = vadd.f32 1e-06, %v3794_v56  ;;  %v3795_v43 = vmul.f32 0.015625, %v3788_v58 }
0x12a0   : > { %5498 = vrsqrt.f32 %v3799_v17  ;;  %v3800_v63 = vadd.f32 1e-06, %v3795_v43 }
0x12a2   : > { %v5495_v32 = vpop.eup %5494  ;;  %5500 = vrsqrt.f32 %v3800_v63 }
0x12a3   : > { %v3807_v30 = vmul.f32 %v5495_v32, %v3767_v24  ;;  %v3791_v8 = vpop.xlane.xlu1 %3790 }
0x12a4   : > { %v5497_v19 = vpop.eup %5496  ;;  %v3796_v28 = vmul.f32 0.015625, %v3791_v8 }
0x12a5   : > { %v3816_v1 = vmul.f32 %v4614_v9, %v3807_v30  ;;  %v3808_v25 = vmul.f32 %v5497_v19, %v3768_v22 }
0x12a6   : > { %v3801_v3 = vadd.f32 1e-06, %v3796_v28 }
0x12a7   : > { %v3817_v60 = vmul.f32 %v4614_v9, %v3808_v25  ;;  %v3825_v2 = vadd.f32 %v4615_v45, %v3816_v1 }
0x12a8   : > { %5502 = vrsqrt.f32 %v3801_v3 }
0x12a9   : > { %v3826_v15 = vadd.f32 %v4615_v45, %v3817_v60 }
0x12aa   : > { %v5499_v62 = vpop.eup %5498 }
0x12ab   : > { %v3809_v44 = vmul.f32 %v5499_v62, %v3769_v5  ;;  %v3839_v48 = vpack.c.bf16 %v3826_v15, %v3825_v2  ;;  %v5275_v5 = vld [vmem:[%s7451_s16 + $0x58] sm:$0xff]  }
0x12ac   : > { %v5501_v54 = vpop.eup %5500  ;;  %5102 = vmatpush3.bf16.msra.mxu0 %v5275_v5 }
0x12ad   : > { %v3810_v38 = vmul.f32 %v5501_v54, %v3770_v23  ;;  %5084 = vmatmul.mubr.msk.bf16.vlgmr.msra.gmra.mrb[88].mxu1 %vm1335_vm0, %v3839_v48  ;;  %v3818_v10 = vmul.f32 %v4614_v9, %v3809_v44  ;;  %5103 = vmatprep.subr.bf16.mxu0 %v5577_v20  ;;  %v5277_v23 = vld [vmem:[%s7451_s16 + $0x68] sm:$0xff]  }
0x12ae   : > { %5087 = vmatprep.mubr.msk.bf16.mxu1 %vm5578_vm3, %v5577_v20 }
0x12af   : > { %v3819_v11 = vmul.f32 %v4614_v9, %v3810_v38  ;;  %v3827_v46 = vadd.f32 %v4615_v45, %v3818_v10 }
0x12b0   : > { %5104 = vmatpush3.bf16.msra.mxu0 %v5276_v35 }
0x12b1   : > { %v3828_v24 = vadd.f32 %v4615_v45, %v3819_v11  ;;  %5105 = vmatprep.subr.bf16.mxu0 %v5577_v20 }
0x12b2   : > { %v5503_v21 = vpop.eup %5502 }
0x12b3   : > { %v3840_v22 = vpack.c.bf16 %v3828_v24, %v3827_v46  ;;  %v3811_v0 = vmul.f32 %v5503_v21, %v3771_v50 }
0x12b4   : > { %5106 = vmatpush3.bf16.msra.mxu0 %v5277_v23 }
0x12b5   : > { %5088 = vmatmul.mubr.msk.bf16.gmra.mrb[92].mxu1 %vm1335_vm0, %v3840_v22  ;;  %v3820_v14 = vmul.f32 %v4614_v9, %v3811_v0  ;;  %5107 = vmatprep.subr.bf16.mxu0 %v5577_v20 }
0x12b6   : > { %5091 = vmatprep.mubr.msk.bf16.mxu1 %vm5578_vm3, %v5577_v20 }
0x12b7   : > { %v3829_v27 = vadd.f32 %v4615_v45, %v3820_v14 }
0x12b8   : > { %5108 = vmatpush3.bf16.msra.mxu0 %v5278_v16 }
0x12b9   : > { %v3841_v52 = vpack.c.bf16 %v3829_v27, %v3829_v27  ;;  %5109 = vmatprep.subr.bf16.mxu0 %v5577_v20 }
0x12bc   : > { %5110 = vmatpush3.bf16.msra.mxu0 %v5279_v53 }
0x12bd   : > { %5092 = vmatmul.mubr.msk.bf16.gmra.mrb[96].mxu1 %vm1335_vm0, %v3841_v52 }
0x12be   : > { %5133 = vmatprep.mubr.msk.f32.mxu1 %vm5578_vm3, %v5577_v20 }
0x1380   : > { %v3914_v42 = vpop.f32.mrb[88].mxu1 }
0x1381   : > { %v7340_v59 = vadd.f32 %v4624_v7, %v3914_v42  ;;  %v5085_v29 = vpop.f32.mrb[89].mxu1 }
0x1382   : > { %v3917_v50 = vpop.f32.mrb[90].mxu1 }
0x1383   : > { %v7343_v4 = vmul.f32 0.70710677, %v7340_v59  ;;  %v7345_v40 = vadd.f32 %v4624_v7, %v3917_v50  ;;  %v5086_v26 = vpop.f32.mrb[91].mxu1 }
0x1385   : > { %v3946_v37 = vand.u32 2147483647, %v7343_v4  ;;  %v7349_v41 = vmul.f32 0.70710677, %v7345_v40  ;;  %vm4041_vm9 = vcmp.ge.f32.partialorder %v7343_v4, 0.0  ;;  %v3937_v4 = vmul.f32 0.5, %v7345_v40 }
0x1387   : > { %v3951_v47 = vmul.f32 0.3275911, %v3946_v37  ;;  %v3947_v55 = vand.u32 2147483647, %v7349_v41  ;;  %v4011_v19 = vsub.f32 0.0, %v3946_v37  ;;  %vm4042_vm10 = vcmp.ge.f32.partialorder %v7349_v41, 0.0 }
0x1388   : > { %v3922_v36 = vpop.f32.mrb[92].mxu1 }
0x1389   : > { %v3956_v33 = vadd.f32 1.0, %v3951_v47  ;;  %v3952_v57 = vmul.f32 0.3275911, %v3947_v55  ;;  %v5089_v6 = vpop.f32.mrb[93].mxu1  ;;  %v7352_v34 = vadd.f32 %v4624_v7, %v3922_v36  ;;  %v4012_v15 = vsub.f32 0.0, %v3947_v55 }
0x138a   : > { %v3925_v56 = vpop.f32.mrb[94].mxu1  ;;  %v4016_v48 = vmul.f32 %v4011_v19, %v3946_v37 }
0x138b   : > { %5504 = vrcp.f32 %v3956_v33  ;;  %v3957_v58 = vadd.f32 1.0, %v3952_v57  ;;  %v5090_v17 = vpop.f32.mrb[95].mxu1  ;;  %v7355_v43 = vmul.f32 0.70710677, %v7352_v34  ;;  %v7357_v63 = vadd.f32 %v4624_v7, %v3925_v56 }
0x138c   : > { %v4017_v21 = vmul.f32 %v4012_v15, %v3947_v55  ;;  %v4021_v22 = vmul.f32 1.442695, %v4016_v48 }
0x138d   : > { %5506 = vrcp.f32 %v3957_v58  ;;  %v3948_v32 = vand.u32 2147483647, %v7355_v43  ;;  %v7361_v9 = vmul.f32 0.70710677, %v7357_v63  ;;  %vm4043_vm11 = vcmp.ge.f32.partialorder %v7355_v43, 0.0 }
0x138e   : > { %v4023_v13 = vmul.f32 1.442695, %v4017_v21 }
0x138f   : > { %v3953_v30 = vmul.f32 0.3275911, %v3948_v32  ;;  %v3949_v28 = vand.u32 2147483647, %v7361_v9  ;;  %v4013_v52 = vsub.f32 0.0, %v3948_v32  ;;  %vm4044_vm12 = vcmp.ge.f32.partialorder %v7361_v9, 0.0 }
0x1390   : > { %v3930_v8 = vpop.f32.mrb[96].mxu1 }
0x1391   : > { %v7364_v1 = vadd.f32 %v4624_v7, %v3930_v8  ;;  %v5093_v25 = vpop.f32.mrb[97].mxu1  ;;  %v3958_v45 = vadd.f32 1.0, %v3953_v30  ;;  %v3954_v60 = vmul.f32 0.3275911, %v3949_v28  ;;  %v4014_v35 = vsub.f32 0.0, %v3949_v28 }
0x1392   : > { %v3933_v3 = vpop.f32.mrb[98].mxu1  ;;  %v4018_v53 = vmul.f32 %v4013_v52, %v3948_v32 }
0x1393   : > { %v7367_v2 = vmul.f32 0.70710677, %v7364_v1  ;;  %5508 = vrcp.f32 %v3958_v45  ;;  %v5094_v62 = vpop.f32.mrb[99].mxu1  ;;  %v3959_v54 = vadd.f32 1.0, %v3954_v60  ;;  %v4019_v47 = vmul.f32 %v4014_v35, %v3949_v28 }
0x1394   : > { %v4025_v33 = vmul.f32 1.442695, %v4018_v53  ;;  %v3940_v9 = vmul.f32 0.5, %v7364_v1 }
0x1395   : > { %v5505_v44 = vpop.eup %5504  ;;  %v3950_v38 = vand.u32 2147483647, %v7367_v2  ;;  %5510 = vrcp.f32 %v3959_v54  ;;  %v4027_v32 = vmul.f32 1.442695, %v4019_v47  ;;  %v3936_v47 = vmul.f32 0.5, %v7340_v59 }
0x1396   : > { %v3966_v10 = vmul.f32 1.0614054, %v5505_v44  ;;  %vm4045_vm13 = vcmp.ge.f32.partialorder %v7367_v2, 0.0 }
0x1397   : > { %v3955_v11 = vmul.f32 0.3275911, %v3950_v38  ;;  %v5507_v46 = vpop.eup %5506  ;;  %v4015_v55 = vsub.f32 0.0, %v3950_v38 }
0x1398   : > { %v3971_v24 = vadd.f32 -1.4531521, %v3966_v10  ;;  %v3967_v0 = vmul.f32 1.0614054, %v5507_v46 }
0x1399   : > { %v3960_v14 = vadd.f32 1.0, %v3955_v11  ;;  %v4020_v25 = vmul.f32 %v4015_v55, %v3950_v38 }
0x139a   : > { %v3976_v27 = vmul.f32 %v5505_v44, %v3971_v24  ;;  %v3972_v61 = vadd.f32 -1.4531521, %v3967_v0 }
0x139b   : > { %5512 = vrcp.f32 %v3960_v14  ;;  %v4029_v21 = vmul.f32 1.442695, %v4020_v25 }
0x139c   : > { %v3981_v49 = vadd.f32 1.4214138, %v3976_v27  ;;  %5514 = vpow2.f32 %v4021_v22  ;;  %v3977_v5 = vmul.f32 %v5507_v46, %v3972_v61 }
0x139d   : > { %v5509_v23 = vpop.eup %5508  ;;  %5516 = vpow2.f32 %v4023_v13 }
0x139e   : > { %v3986_v16 = vmul.f32 %v5505_v44, %v3981_v49  ;;  %v3982_v7 = vadd.f32 1.4214138, %v3977_v5  ;;  %v3968_v42 = vmul.f32 1.0614054, %v5509_v23  ;;  %5518 = vpow2.f32 %v4025_v33 }
0x139f   : > { %v5511_v50 = vpop.eup %5510  ;;  %5520 = vpow2.f32 %v4027_v32 }
0x13a0   : > { %v3991_v29 = vadd.f32 -0.28449672, %v3986_v16  ;;  %v3987_v26 = vmul.f32 %v5507_v46, %v3982_v7  ;;  %v3973_v37 = vadd.f32 -1.4531521, %v3968_v42  ;;  %v3969_v57 = vmul.f32 1.0614054, %v5511_v50 }
0x13a1   : > { %5522 = vpow2.f32 %v4029_v21 }
0x13a2   : > { %v3996_v36 = vmul.f32 %v5505_v44, %v3991_v29  ;;  %v3992_v6 = vadd.f32 -0.28449672, %v3987_v26  ;;  %v3978_v56 = vmul.f32 %v5509_v23, %v3973_v37  ;;  %v3974_v17 = vadd.f32 -1.4531521, %v3969_v57 }
0x13a4   : > { %v4001_v58 = vadd.f32 0.2548296, %v3996_v36  ;;  %v3997_v8 = vmul.f32 %v5507_v46, %v3992_v6  ;;  %v3983_v19 = vadd.f32 1.4214138, %v3978_v56  ;;  %v3979_v3 = vmul.f32 %v5511_v50, %v3974_v17 }
0x13a5   : > { %v5513_v30 = vpop.eup %5512 }
0x13a6   : > { %v4006_v45 = vmul.f32 %v5505_v44, %v4001_v58  ;;  %v3970_v60 = vmul.f32 1.0614054, %v5513_v30  ;;  %v5515_v15 = vpop.eup %5514  ;;  %v4002_v62 = vadd.f32 0.2548296, %v3997_v8  ;;  %v3988_v28 = vmul.f32 %v5509_v23, %v3983_v19 }
0x13a7   : > { %v3984_v54 = vadd.f32 1.4214138, %v3979_v3  ;;  %v5517_v22 = vpop.eup %5516 }
0x13a8   : > { %v4031_v48 = vmul.f32 %v5515_v15, %v4006_v45  ;;  %v3975_v10 = vadd.f32 -1.4531521, %v3970_v60  ;;  %v4007_v11 = vmul.f32 %v5507_v46, %v4002_v62  ;;  %v3993_v24 = vadd.f32 -0.28449672, %v3988_v28  ;;  %v5519_v42 = vpop.eup %5518 }
0x13a9   : > { %v3989_v14 = vmul.f32 %v5511_v50, %v3984_v54  ;;  %v5521_v56 = vpop.eup %5520  ;;  %v3938_v28 = vmul.f32 0.5, %v7352_v34  ;;  %v5579_v34 = vmov 0.0|0.0  }
0x13aa   : > { %v4036_v0 = vsub.f32 1.0, %v4031_v48  ;;  %v3980_v27 = vmul.f32 %v5513_v30, %v3975_v10  ;;  %v4032_v52 = vmul.f32 %v5517_v22, %v4007_v11  ;;  %v3998_v38 = vmul.f32 %v5509_v23, %v3993_v24  ;;  %5148 = vmatprep.subr.bf16.mxu1 %v5579_v34 }
0x13ab   : > { %v3994_v61 = vadd.f32 -0.28449672, %v3989_v14  ;;  %v5523_v59 = vpop.eup %5522  ;;  %v3939_v48 = vmul.f32 0.5, %v7357_v63  ;;  %v4648_v63 = vld [vmem:[%s7452_s17 + $0x1] ss:$0 sm:$0xff] }
0x13ac   : > { %v4046_v44 = vsub.f32 0.0, %v4036_v0  ;;  %v3985_v49 = vadd.f32 1.4214138, %v3980_v27  ;;  %v4037_v13 = vsub.f32 1.0, %v4032_v52  ;;  %v4003_v5 = vadd.f32 0.2548296, %v3998_v38 }
0x13ad   : > { %v3999_v16 = vmul.f32 %v5511_v50, %v3994_v61 }
0x13ae   : > { %v4051_v35 = vsel %vm4041_vm9, %v4036_v0, %v4046_v44  ;;  %v3990_v46 = vmul.f32 %v5513_v30, %v3985_v49  ;;  %v4047_v53 = vsub.f32 0.0, %v4037_v13  ;;  %v4008_v7 = vmul.f32 %v5509_v23, %v4003_v5 }
0x13af   : > { %v4056_v29 = vadd.f32 1.0, %v4051_v35  ;;  %v4004_v26 = vadd.f32 0.2548296, %v3999_v16 }
0x13b0   : > { %v3995_v37 = vadd.f32 -0.28449672, %v3990_v46  ;;  %v4052_v55 = vsel %vm4042_vm10, %v4037_v13, %v4047_v53  ;;  %v4033_v36 = vmul.f32 %v5519_v42, %v4008_v7 }
0x13b1   : > { %v4057_v33 = vadd.f32 1.0, %v4052_v55  ;;  %v4009_v57 = vmul.f32 %v5511_v50, %v4004_v26  ;;  %v4061_v17 = vmul.f32 %v4056_v29, %v3936_v47 }
0x13b2   : > { %v4000_v6 = vmul.f32 %v5513_v30, %v3995_v37  ;;  %v4038_v58 = vsub.f32 1.0, %v4033_v36  ;;  %v4200_v36 = vld [vmem:[%s7481_s25] sm:$0xff] }
0x13b3   : > { %v4062_v8 = vmul.f32 %v4057_v33, %v3937_v4  ;;  %v4034_v23 = vmul.f32 %v5521_v56, %v4009_v57 }
0x13b4   : > { %v4005_v19 = vadd.f32 0.2548296, %v4000_v6  ;;  %v4048_v32 = vsub.f32 0.0, %v4038_v58 }
0x13b5   : > { %v4083_v25 = vpack.c.bf16 %v4062_v8, %v4061_v17  ;;  %v4039_v41 = vsub.f32 1.0, %v4034_v23  ;;  %v5281_v17 = vld [vmem:[%s7455_s20 + $0x8] sm:$0xff]   ;;  %v5282_v8 = vld [vmem:[%s7455_s20 + $0x10] sm:$0xff]   ;;  %v5283_v23 = vld [vmem:[%s7455_s20 + $0x18] sm:$0xff]  }
0x13b6   : > { %v4010_v45 = vmul.f32 %v5513_v30, %v4005_v19  ;;  %v4053_v3 = vsel %vm4043_vm11, %v4038_v58, %v4048_v32  ;;  %v5280_v58 = vld [vmem:[%s7455_s20] sm:$0xff]  }
0x13b7   : > { %v4049_v60 = vsub.f32 0.0, %v4039_v41  ;;  %5112 = vmatmul.mubr.bf16.vlgmr.msra.gmra.mrb[100].mxu0 %v4083_v25  ;;  %v4058_v15 = vadd.f32 1.0, %v4053_v3 }
0x13b8   : > { %v4035_v40 = vmul.f32 %v5523_v59, %v4010_v45  ;;  %5115 = vmatprep.mubr.msk.bf16.mxu0 %vm5578_vm3, %v5577_v20  ;;  %v4658_v45 = vld [vmem:[%s7453_s18] ss:$0 sm:$0xff] }
0x13b9   : > { %v4054_v50 = vsel %vm4044_vm12, %v4039_v41, %v4049_v60  ;;  %v4063_v30 = vmul.f32 %v4058_v15, %v3938_v28  ;;  %v4660_v15 = vld [vmem:[%s7456_s21] ss:$0 sm:$0xff] }
0x13ba   : > { %v4040_v62 = vsub.f32 1.0, %v4035_v40  ;;  %v4059_v43 = vadd.f32 1.0, %v4054_v50 }
0x13bc   : > { %v4050_v54 = vsub.f32 0.0, %v4040_v62  ;;  %v4064_v10 = vmul.f32 %v4059_v43, %v3939_v48 }
0x13be   : > { %v4055_v11 = vsel %vm4045_vm13, %v4040_v62, %v4050_v54  ;;  %v4084_v24 = vpack.c.bf16 %v4064_v10, %v4063_v30 }
0x13bf   : > { %v4060_v21 = vadd.f32 1.0, %v4055_v11 }
0x13c0   : > { %5116 = vmatmul.mubr.bf16.gmra.mrb[104].mxu0 %v4084_v24 }
0x13c1   : > { %5119 = vmatprep.mubr.msk.bf16.mxu0 %vm5578_vm3, %v5577_v20  ;;  %v4065_v22 = vmul.f32 %v4060_v21, %v3940_v9 }
0x13c3   : > { %v4085_v0 = vpack.c.bf16 %v4065_v22, %v4065_v22 }
0x13c8   : > { %5120 = vmatmul.mubr.bf16.gmra.mrb[108].mxu0 %v4085_v0 }
0x148a   : > { %v4173_v14 = vpop.f32.mrb[100].mxu0 }
0x148b   : > { %v4174_v2 = vadd.f32 %v4648_v63, %v4173_v14  ;;  %v5113_v27 = vpop.f32.mrb[101].mxu0 }
0x148c   : > { %v4176_v52 = vpop.f32.mrb[102].mxu0 }
0x148d   : > { %v4177_v38 = vadd.f32 %v4648_v63, %v4176_v52  ;;  %v5114_v44 = vpop.f32.mrb[103].mxu0  ;;  %v4195_v1 = vadd.f32 %v4174_v2, %v7242_v18 }
0x148f   : > { %v4196_v61 = vadd.f32 %v4177_v38, %v7245_v31 }
0x1491   : > { %v5149_v49 = vpack.c.bf16 %v4196_v61, %v4195_v1 }
0x1493   : > { %v4181_v13 = vpop.f32.mrb[104].mxu0  ;;  %5150 = vmatpush3.bf16.msra.mxu1 %v5149_v49 }
0x1494   : > { %v4182_v5 = vadd.f32 %v4648_v63, %v4181_v13  ;;  %v5117_v35 = vpop.f32.mrb[105].mxu0  ;;  %5151 = vmatprep.subr.bf16.mxu1 %v5579_v34 }
0x1495   : > { %v4184_v16 = vpop.f32.mrb[106].mxu0 }
0x1496   : > { %v4185_v46 = vadd.f32 %v4648_v63, %v4184_v16  ;;  %v5118_v53 = vpop.f32.mrb[107].mxu0  ;;  %v4197_v7 = vadd.f32 %v4182_v5, %v7252_v39 }
0x1498   : > { %v4198_v42 = vadd.f32 %v4185_v46, %v7255_v12 }
0x149a   : > { %v5152_v29 = vpack.c.bf16 %v4198_v42, %v4197_v7 }
0x149b   : > { %v4189_v26 = vpop.f32.mrb[108].mxu0 }
0x149c   : > { %v4190_v37 = vadd.f32 %v4648_v63, %v4189_v26  ;;  %v5121_v47 = vpop.f32.mrb[109].mxu0  ;;  %5153 = vmatpush3.bf16.msra.mxu1 %v5152_v29 }
0x149d   : > { %v4192_v18 = vpop.f32.mrb[110].mxu0  ;;  %5131 = vmatprep.subr.mxu1 %v5577_v20 }
0x149e   : > { %v4199_v31 = vadd.f32 %v4190_v37, %v7262_v51  ;;  %v5122_v55 = vpop.f32.mrb[111].mxu0 }
0x14a0   : > { %5132 = vmatpush3.msra.mxu1 %v4199_v31 }
0x14a1   : > { %5134 = vmatmul.mubr.msk.f32.vlgmr.msra.gmra.mrb[100].mxu1 %vm1787_vm2, %v4200_v36  ;;  %5136 = vmatprep.subr.bf16.mxu1 %v5577_v20 }
0x14a2   : > { %5144 = vmatprep.mubr.msk.bf16.mxu1 %vm5578_vm3, %v5577_v20  ;;  %5137 = vmatpush3.bf16.msra.mxu1 %v5280_v58 }
0x14a3   : > { %5138 = vmatprep.subr.bf16.mxu1 %v5577_v20 }
0x14a6   : > { %5139 = vmatpush3.bf16.msra.mxu1 %v5281_v17 }
0x14a7   : > { %5140 = vmatprep.subr.bf16.mxu1 %v5577_v20 }
0x14aa   : > { %5141 = vmatpush3.bf16.msra.mxu1 %v5282_v8 }
0x14ab   : > { %5142 = vmatprep.subr.bf16.mxu1 %v5577_v20  ;;  %v4659_v20 = vld [vmem:[%s7454_s19] ss:$0 sm:$0xff] }
0x14ae   : > { %5143 = vmatpush3.bf16.msra.mxu1 %v5283_v23 }
0x1574   : > { %v4270_v39 = vpop.f32.mrb[100].mxu1 }
0x1575   : > { %v4276_v12 = vsel %vm1335_vm0, %v4270_v39, 0.0  ;;  %v5135_v4 = vpop.f32.mrb[101].mxu1 }
0x1576   : > { %4277 = vadd.xlane.f32.xlu0 %v4276_v12 }
0x1603   : > { %v4278_v33 = vpop.xlane.xlu0 %4277 }
0x1604   : > { %v4279_v51 = vmul.f32 0.015625, %v4278_v33 }
0x1606   : > { %v4280_v57 = vsub.f32 %v4270_v39, %v4279_v51 }
0x1608   : > { %v4281_v6 = vmul.f32 %v4280_v57, %v4280_v57 }
0x160a   : > { %v4282_v56 = vsel %vm1335_vm0, %v4281_v6, 0.0 }
0x160b   : > { %4283 = vadd.xlane.f32.xlu1 %v4282_v56 }
0x1698   : > { %v4284_v19 = vpop.xlane.xlu1 %4283 }
0x1699   : > { %v4285_v32 = vmul.f32 0.015625, %v4284_v19 }
0x169b   : > { %v4286_v25 = vadd.f32 1e-06, %v4285_v32 }
0x169d   : > { %5524 = vrsqrt.f32 %v4286_v25 }
0x16a7   : > { %v5525_v41 = vpop.eup %5524 }
0x16a8   : > { %v4288_v59 = vmul.f32 %v5525_v41, %v4280_v57 }
0x16aa   : > { %v4295_v3 = vmul.f32 %v4658_v45, %v4288_v59 }
0x16ac   : > { %v4302_v60 = vadd.f32 %v4659_v20, %v4295_v3 }
0x16ae   : > { %v4311_v40 = vpack.c.bf16 %v4302_v60, %v4302_v60 }
0x16b0   : > { %5145 = vmatmul.mubr.msk.bf16.vlgmr.msra.gmra.mrb[104].mxu1 %vm1335_vm0, %v4311_v40 }
0x1783   : > { %v4380_v50 = vpop.f32.mrb[104].mxu1 }
0x1784   : > { %v4381_v62 = vadd.f32 %v4660_v15, %v4380_v50  ;;  %v5146_v28 = vpop.f32.mrb[105].mxu1 }
0x1785   : > { %v4383_v48 = vpop.f32.mrb[106].mxu1 }
0x1786   : > { %4387 = vst.msk [vmem:[%s686_s30] sm:$0xff] %vm4386_vm14, %v4381_v62  ;;  %v5147_v43 = vpop.f32.mrb[107].mxu1 }
0x1787 PF: > { %s32_s3 = sadd.s32 1, %s5573_s3  }
0x1788   : > { %p29_p5 = scmp.ge.s32.totalorder %s32_s3, 4  }
0x178a   :  { %31 = sbr.rel (!%p29_p5) target bundleno = 8 (0x8), region = 143 }

</bundles_post_ra>
